<compile_context>
chip_gen: v5e
topology: v5e:2x2
jax: 0.10.0
libtpu: 0.0.40
codegen_flags: <defaults>
</compile_context>

<pallas_src>
import math

import jax
import jax.numpy as jnp
from jax import lax
from jax.experimental import pallas as pl
from jax.experimental.pallas import tpu as pltpu

FIBER_DIM = 32
HEADS = 8
POINT_DIM = 4
PACK = 4 * POINT_DIM            # per-head packed width: [scalar(P) | point(3P)] = 16
QK_PACK = 24                    # packed q/k width: 16 data + 1 bias column + 7 zero pad
NUM_ATTN_LOGITS = 2
DIST_SCALE = 10.0
SCALAR_SCALE = (NUM_ATTN_LOGITS * POINT_DIM) ** (-0.5)
POINT_SCALE = (NUM_ATTN_LOGITS * POINT_DIM * (9.0 / 2.0)) ** (-0.5)
NEG_INF = -1e30                 # finite "masked" value (bf16-representable, no NaN from inf-inf)


def _round_up(x, m):
    return ((x + m - 1) // m) * m


def _vmem_limit_bytes():
    # Generation-aware VMEM budget: ~75% of per-core capacity (48 MiB on v7x, ~96 MiB on
    # v5e/v6e), with a safe fallback if the query is unavailable.
    try:
        cap = int(pltpu.get_tpu_info().vmem_capacity_bytes)
        return max(32 << 20, min(int(cap * 3 // 4), 100 << 20))
    except Exception:
        return 48 << 20


_VMEM_LIMIT = _vmem_limit_bytes()


def _q_tile_and_pad(n_q):
    # >= 2 grid steps on the "parallel" query axis (both v7x TensorCores busy); tiles are
    # multiples of 16 (bf16 sublane quantum), capped at 256.
    tq = min(256, max(16, _round_up((n_q + 1) // 2, 16)))
    n_pad = max(_round_up(n_q, tq), 2 * tq)
    return tq, n_pad


def _k_tile_and_pad(n_k):
    # Key tiles are lane-dense multiples of 128, up to 512 (reduction axis, "arbitrary").
    tk = min(512, _round_up(n_k, 128))
    return tk, _round_up(n_k, tk)


# ----------------------------- Pallas kernels ------------------------------ #

def _matmul_kernel(a_ref, b_ref, o_ref):
    # DEFAULT (single-pass bf16) MXU precision, f32 accumulate.
    o_ref[...] = jnp.dot(a_ref[...], b_ref[...], preferred_element_type=jnp.float32)


def pallas_matmul(a, b):
    """Row-tiled (M,K)@(K,N) matmul; M padded so the grid is at least 2 steps."""
    m, k = a.shape
    _, n = b.shape
    tm = min(256, max(8, _round_up(max(m // 2, 1), 8)))
    m_pad = _round_up(m, tm)
    if m_pad != m:
        a = jnp.pad(a, ((0, m_pad - m), (0, 0)))
    out = pl.pallas_call(
        _matmul_kernel,
        grid=(m_pad // tm,),
        in_specs=[
            pl.BlockSpec((tm, k), lambda i: (i, 0)),
            pl.BlockSpec((k, n), lambda i: (0, 0)),
        ],
        out_specs=pl.BlockSpec((tm, n), lambda i: (i, 0)),
        out_shape=jax.ShapeDtypeStruct((m_pad, n), jnp.float32),
        compiler_params=pltpu.CompilerParams(dimension_semantics=("parallel",)),
    )(a, b)
    return out[:m]


def _attn_kernel(qp_ref, kp_ref, vp_ref, mb_ref, w_ref, out_ref,
                 m_ref, l_ref, acc_ref):
    """All-heads point-set attention over one (query tile, key tile) grid cell.

    qp  : (H, TQ, 24) bf16 -- [sq*SCALAR_SCALE | pq*w*POINT_SCALE | 1 | 0...] per head
    kp  : (H, TK, 24) bf16 -- [sk              | pk               | kb| 0...] per head,
                              kb = -0.5*w*POINT_SCALE*|pk|^2 (rank-1 bias folded into MXU)
    vp  : (H, TK, 16) bf16 -- packed values [scalar(4) | x(4) | y(4) | z(4)]
    mb  : (TQ, TK)    bf16 -- additive edge-mask bias (0 on edges, NEG_INF elsewhere)
    w   : (H, 16, 4f) f32  -- per-head permuted/replicated output-projection weight
    out : (TQ, 4f)    f32  -- fused, lane-dense projected result (written on last k step)
    scratch: m (H,TQ,1), l (H,TQ,1), acc (H,TQ,16) -- online-softmax carry across k tiles
    """
    kt = pl.program_id(1)

    @pl.when(kt == 0)
    def _():
        m_ref[...] = jnp.full(m_ref.shape, NEG_INF, jnp.float32)
        l_ref[...] = jnp.zeros(l_ref.shape, jnp.float32)
        acc_ref[...] = jnp.zeros(acc_ref.shape, jnp.float32)

    mask = mb_ref[...].astype(jnp.float32)            # one upcast, shared by all heads

    for h in range(HEADS):                            # static unroll over heads
        # fused scalar + point + bias logits: ONE K=24 MXU matmul per head
        logits = lax.dot_general(
            qp_ref[h], kp_ref[h], (((1,), (1,)), ((), ())),
            preferred_element_type=jnp.float32)       # (TQ, TK) f32
        logits = logits + mask

        m_prev = m_ref[h]                             # (TQ, 1)
        m_cur = jnp.max(logits, axis=-1, keepdims=True)
        m_new = jnp.maximum(m_prev, m_cur)
        corr = jnp.exp(m_prev - m_new)                # <= 1, finite (NEG_INF is finite)
        p = jnp.exp(logits - m_new)                   # masked entries underflow to 0

        l_ref[h] = corr * l_ref[h] + jnp.sum(p, axis=-1, keepdims=True)
        m_ref[h] = m_new
        # deferred normalization: accumulate the unnormalized numerator only
        acc_ref[h] = corr * acc_ref[h] + jnp.dot(
            p, vp_ref[h].astype(jnp.float32), preferred_element_type=jnp.float32)

    @pl.when(kt == pl.num_programs(1) - 1)
    def _():
        # finalize: normalize once per head (EUP reciprocal) and fuse the output
        # projection so the packed result never touches HBM; single 128-wide store.
        res = jnp.zeros(out_ref.shape, jnp.float32)
        for h in range(HEADS):
            inv = pl.reciprocal(l_ref[h], approx=True)
            # rows with no (unmasked) keys -> zero aggregate (local-frame shift is
            # applied in the wrapper, matching torch index_add_ semantics)
            inv = jnp.where(m_ref[h] > 0.5 * NEG_INF, inv, 0.0)
            res = res + jnp.dot(acc_ref[h] * inv, w_ref[h],
                                preferred_element_type=jnp.float32)
        out_ref[...] = res


def _attention(qp, kp, vp, mbias, w3, tq, tk):
    nq_pad = qp.shape[1]
    nk_pad = kp.shape[1]
    fo = w3.shape[-1]
    return pl.pallas_call(
        _attn_kernel,
        grid=(nq_pad // tq, nk_pad // tk),
        in_specs=[
            pl.BlockSpec((HEADS, tq, QK_PACK), lambda i, k: (0, i, 0)),
            pl.BlockSpec((HEADS, tk, QK_PACK), lambda i, k: (0, k, 0)),
            pl.BlockSpec((HEADS, tk, PACK), lambda i, k: (0, k, 0)),
            pl.BlockSpec((tq, tk), lambda i, k: (i, k)),
            pl.BlockSpec((HEADS, PACK, fo), lambda i, k: (0, 0, 0)),
        ],
        out_specs=pl.BlockSpec((tq, fo), lambda i, k: (i, 0)),
        out_shape=jax.ShapeDtypeStruct((nq_pad, fo), jnp.float32),
        scratch_shapes=[
            pltpu.VMEM((HEADS, tq, 1), jnp.float32),     # running max
            pltpu.VMEM((HEADS, tq, 1), jnp.float32),     # running denom
            pltpu.VMEM((HEADS, tq, PACK), jnp.float32),  # running packed numerator
        ],
        compiler_params=pltpu.CompilerParams(
            dimension_semantics=("parallel", "arbitrary"),
            vmem_limit_bytes=_VMEM_LIMIT,
        ),
    )(qp, kp, vp, mbias, w3)


# ------------------------------- glue / wrapper ----------------------------- #

def _pack_heads(scalar, point):
    # scalar: (N, H, P), point: (N, 3, H, P) -> (H, N, 4P), per head [scalar | x | y | z]
    n = scalar.shape[0]
    s = jnp.transpose(scalar, (1, 0, 2))                                  # (H, N, P)
    p = jnp.transpose(point, (2, 0, 1, 3)).reshape(HEADS, n, 3 * POINT_DIM)
    return jnp.concatenate([s, p], axis=-1)                               # (H, N, 16)


@jax.jit
def point_set_attention_pallas(params, x_k, x_q, edge_index, pc_k, pc_q):
    H, P = HEADS, POINT_DIM
    n_q, n_k = x_q.shape[0], x_k.shape[0]
    f = x_q.shape[-1]

    # Re-center coordinates (exact-math no-op for attended rows; softens bf16
    # cancellation in the difference-of-dots point logit -- review concern).
    center = (jnp.sum(pc_k, axis=0) + jnp.sum(pc_q, axis=0)) / float(n_k + n_q)
    pc_k_c = (pc_k - center) / DIST_SCALE                                  # (Nk, 3)
    pc_q_c = (pc_q - center) / DIST_SCALE                                  # (Nq, 3)

    # --- fused q|k|v projection: ONE lane-dense (rows,32)@(32,128) Pallas matmul ---
    w_qkv = jnp.concatenate(
        [params["wq_t"], params["wk_t"], params["wv_t"],
         jnp.zeros((f, 128 - 3 * H * P), jnp.float32)], axis=1)            # (f, 128)
    rows = jnp.concatenate([x_q.reshape(-1, f), x_k.reshape(-1, f)], axis=0)
    proj = pallas_matmul(rows, w_qkv)                                      # (4(Nq+Nk), 128)
    q = proj[:4 * n_q, 0 * H * P:1 * H * P].reshape(n_q, 4, H, P)
    k = proj[4 * n_q:, 1 * H * P:2 * H * P].reshape(n_k, 4, H, P)
    v = proj[4 * n_q:, 2 * H * P:3 * H * P].reshape(n_k, 4, H, P)

    pw = jax.nn.softplus(params["point_weights"])                          # (H,)

    scalar_q, scalar_k, scalar_v = q[:, 0], k[:, 0], v[:, 0]
    point_q = q[:, 1:] + pc_q_c[:, :, None, None]                          # (Nq, 3, H, P)
    point_k = k[:, 1:] + pc_k_c[:, :, None, None]
    point_v = v[:, 1:] + pc_k_c[:, :, None, None]

    # Packed, head-major operands.  Q' is pre-scaled so ONE in-kernel dot yields
    # scalar + point logits + the rank-1 |pk|^2 bias (folded via a constant-1 column);
    # the |pq|^2 term is constant along keys and cancels in softmax.
    qp16 = _pack_heads(scalar_q * SCALAR_SCALE,
                       point_q * (pw * POINT_SCALE)[None, None, :, None])  # (H, Nq, 16)
    kp16 = _pack_heads(scalar_k, point_k)                                  # (H, Nk, 16)
    vp16 = _pack_heads(scalar_v, point_v)                                  # (H, Nk, 16)

    kb = ((-0.5 * POINT_SCALE) * pw[:, None]
          * jnp.sum(jnp.square(point_k), axis=(1, 3)).T)                   # (H, Nk)
    pad_cols = QK_PACK - PACK - 1
    qp = jnp.concatenate(
        [qp16, jnp.ones((H, n_q, 1), jnp.float32),
         jnp.zeros((H, n_q, pad_cols), jnp.float32)], axis=-1)             # (H, Nq, 24)
    kp = jnp.concatenate(
        [kp16, kb[:, :, None],
         jnp.zeros((H, n_k, pad_cols), jnp.float32)], axis=-1)             # (H, Nk, 24)

    # Tile sizes + padding (>=2 query grid steps; key tiles multiple of 128).
    tq, nq_pad = _q_tile_and_pad(n_q)
    tk, nk_pad = _k_tile_and_pad(n_k)

    # bf16 storage for the big matmul operands (MXU truncates to bf16 anyway);
    # element-wise softmax math stays f32 inside the kernel.
    qp = jnp.pad(qp, ((0, 0), (0, nq_pad - n_q), (0, 0))).astype(jnp.bfloat16)
    kp = jnp.pad(kp, ((0, 0), (0, nk_pad - n_k), (0, 0))).astype(jnp.bfloat16)
    vp = jnp.pad(vp16, ((0, 0), (0, nk_pad - n_k), (0, 0))).astype(jnp.bfloat16)

    # Dense additive edge mask in bf16 (half the DMA of f32); padded rows/cols masked.
    # NOTE: O(Nq*Nk) memory; duplicate edges collapse (duplicate-free edge_index assumed).
    src, dst = edge_index[0], edge_index[1]
    mbias = jnp.full((nq_pad, nk_pad), NEG_INF, jnp.bfloat16).at[dst, src].set(0.0)

    # Per-head fused output-projection weight: lane h*16 + c*4 + p of the packed result
    # maps to output channel c, fiber j  ->  w3[h, c*4+p, c*f+j] = wo_t[h*P+p, j].
    wo3 = params["wo_t"].reshape(H, P, f)
    w3 = jnp.einsum("hpj,cd->hcpdj", wo3,
                    jnp.eye(4, dtype=jnp.float32)).reshape(H, 4 * P, 4 * f)

    out_proj = _attention(qp, kp, vp, mbias, w3, tq, tk)                   # (Nq_pad, 4f)
    out_proj = out_proj[:n_q].reshape(n_q, 4, f)

    # Rank-1 local-frame correction:  out[n,c,:] -= shift[n,c] * colsum(W_o).
    # Isolated queries (zero in-degree) have a zero aggregate, so their shift must be the
    # UNcentered pc_q/10 to exactly match the torch index_add_ semantics.
    indeg = jnp.zeros((n_q,), jnp.float32).at[dst].add(1.0)
    iso = (indeg == 0).astype(jnp.float32)[:, None]                        # (Nq, 1)
    shift_pts = pc_q_c + iso * (center / DIST_SCALE)[None, :]              # (Nq, 3)
    shift = jnp.concatenate([jnp.zeros((n_q, 1), jnp.float32), shift_pts], axis=1)
    colsum = jnp.sum(params["wo_t"], axis=0)                               # (f,)
    return out_proj - shift[:, :, None] * colsum[None, None, :]

    # TODO(synk): move the K-side projection + packing into the attention-kernel prologue
    # (raw x_k DMA per key tile) for very large key sets.


# ----------------------------- pure-JAX reference --------------------------- #

def point_set_attention_reference(params, x_k, x_q, edge_index, pc_k, pc_q):
    H, P = HEADS, POINT_DIM
    n_q, n_k = x_q.shape[0], x_k.shape[0]
    hp = lax.Precision.HIGHEST

    q = jnp.einsum("ncf,fo->nco", x_q, params["wq_t"], precision=hp)
    k = jnp.einsum("ncf,fo->nco", x_k, params["wk_t"], precision=hp)
    v = jnp.einsum("ncf,fo->nco", x_k, params["wv_t"], precision=hp)

    scalar_q = q[:, 0, :].reshape(n_q, H, P)
    scalar_k = k[:, 0, :].reshape(n_k, H, P)
    scalar_v = v[:, 0, :].reshape(n_k, H, P)
    point_q = q[:, 1:, :].reshape(n_q, 3, H, P) + pc_q[:, :, None, None] / DIST_SCALE
    point_k = k[:, 1:, :].reshape(n_k, 3, H, P) + pc_k[:, :, None, None] / DIST_SCALE
    point_v = v[:, 1:, :].reshape(n_k, 3, H, P) + pc_k[:, :, None, None] / DIST_SCALE

    src, dst = edge_index[0], edge_index[1]
    sq_e, sk_e = scalar_q[dst], scalar_k[src]
    pq_e, pk_e = point_q[dst], point_k[src]

    scalar_logits = jnp.sum(sq_e * sk_e, axis=-1) * SCALAR_SCALE
    pw = jax.nn.softplus(params["point_weights"])[None, :]
    point_logits = jnp.sum(jnp.square(pq_e - pk_e), axis=(-3, -1)) * POINT_SCALE
    logits = scalar_logits - 0.5 * point_logits * pw

    seg_max = jax.ops.segment_max(logits, dst, num_segments=n_q)
    ex = jnp.exp(logits - seg_max[dst])
    seg_sum = jax.ops.segment_sum(ex, dst, num_segments=n_q)
    alpha = ex / seg_sum[dst]

    res_scalar = jax.ops.segment_sum(alpha[:, :, None] * scalar_v[src], dst, num_segments=n_q)
    res_points = jax.ops.segment_sum(alpha[:, None, :, None] * point_v[src], dst, num_segments=n_q)
    res_points_local = res_points - pc_q[:, :, None, None] / DIST_SCALE
    res = jnp.concatenate([res_scalar[:, None], res_points_local], axis=1).reshape(n_q, 4, H * P)
    return jnp.einsum("nco,of->ncf", res, params["wo_t"], precision=hp)


# ----------------------------------- main ----------------------------------- #

def init_params(key):
    kq, kk, kv, ko = jax.random.split(key, 4)
    b_in = 1.0 / math.sqrt(FIBER_DIM)
    b_out = 1.0 / math.sqrt(HEADS * POINT_DIM)
    wq = jax.random.uniform(kq, (HEADS * POINT_DIM, FIBER_DIM), jnp.float32, -b_in, b_in)
    wk = jax.random.uniform(kk, (HEADS * POINT_DIM, FIBER_DIM), jnp.float32, -b_in, b_in)
    wv = jax.random.uniform(kv, (HEADS * POINT_DIM, FIBER_DIM), jnp.float32, -b_in, b_in)
    wo = jax.random.uniform(ko, (FIBER_DIM, HEADS * POINT_DIM), jnp.float32, -b_out, b_out)
    point_weights = jnp.full((HEADS,), math.log(math.e - 1.0), jnp.float32)
    return {"wq_t": wq.T, "wk_t": wk.T, "wv_t": wv.T, "wo_t": wo.T,
            "point_weights": point_weights}


if __name__ == "__main__":
    key = jax.random.PRNGKey(0)
    kp_, kxk, kxq, kck, kcq, kadj = jax.random.split(key, 6)
    N = 16

    params = init_params(kp_)
    x_k = jax.random.normal(kxk, (N, 4, FIBER_DIM), jnp.float32)
    x_q = jax.random.normal(kxq, (N, 4, FIBER_DIM), jnp.float32)
    pc_k = jax.random.normal(kck, (N, 3), jnp.float32) * 3.0
    pc_q = jax.random.normal(kcq, (N, 3), jnp.float32) * 3.0

    # random sparse graph, guaranteed >= 1 incoming edge per query, no duplicates
    adj = jax.random.uniform(kadj, (N, N)) < 0.4
    adj = jnp.logical_or(adj, jnp.eye(N, dtype=bool))
    dst_idx, src_idx = jnp.nonzero(adj)          # rows = dst(query), cols = src(key)
    edge_index = jnp.stack([src_idx, dst_idx]).astype(jnp.int32)

    out = point_set_attention_pallas(params, x_k, x_q, edge_index, pc_k, pc_q)
    out = jax.block_until_ready(out)

    ref = point_set_attention_reference(params, x_k, x_q, edge_index, pc_k, pc_q)
    assert out.shape == (N, 4, FIBER_DIM)
    max_err = float(jnp.max(jnp.abs(out - ref)))
    # Kernel matmul operands are bf16 / DEFAULT MXU precision; reference is full-f32
    # (HIGHEST) -> tolerance is bf16-level, not f32-level.
    assert bool(jnp.allclose(out, ref, rtol=5e-2, atol=5e-2)), f"max abs err {max_err}"

    # TODO(synk): edge_update=True branch (GELUMLP) and edge_dim bias are not exercised
    # (module defaults edge_dim=None, edge_update=False, dropout=0.0).
    print("KERNEL_OK")
</pallas_src>

<mosaic_0001>
module attributes {stable_mosaic.version = 11 : i64} {
  func.func @_matmul_kernel(%arg0: i32, %arg1: memref<64x32xf32, #tpu.memory_space<vmem>>, %arg2: memref<32x128xf32, #tpu.memory_space<vmem>>, %arg3: memref<64x128xf32, #tpu.memory_space<vmem>>) attributes {dimension_semantics = [#tpu.dimension_semantics<parallel>], iteration_bounds = array<i64: 2>, scalar_prefetch = 0 : i64, scratch_operands = 0 : i64, tpu.core_type = #tpu.core_type<tc>, window_params = [{transform_indices = @transform_0, window_bounds = array<i64: 64, 32>}, {pipeline_mode = #tpu.pipeline_mode<synchronous>, transform_indices = @transform_1, window_bounds = array<i64: 32, 128>}, {transform_indices = @transform_2, window_bounds = array<i64: 64, 128>}]} {
    %c0 = arith.constant 0 : index
    %c0_0 = arith.constant 0 : index
    %0 = vector.load %arg1[%c0, %c0_0] : memref<64x32xf32, #tpu.memory_space<vmem>>, vector<64x32xf32>
    %c0_1 = arith.constant 0 : index
    %c0_2 = arith.constant 0 : index
    %1 = vector.load %arg2[%c0_1, %c0_2] : memref<32x128xf32, #tpu.memory_space<vmem>>, vector<32x128xf32>
    %cst = arith.constant dense<0.000000e+00> : vector<64x128xf32>
    %2 = tpu.matmul %0, %1, %cst {dimension_numbers = #tpu.dot_dimension_numbers<[1], [0], [0], [1], [0, 0, 1, 1], [], []>} : vector<64x32xf32>, vector<32x128xf32>, vector<64x128xf32> -> vector<64x128xf32>
    %c0_3 = arith.constant 0 : index
    %c0_4 = arith.constant 0 : index
    %3 = vector.load %arg3[%c0_3, %c0_4] : memref<64x128xf32, #tpu.memory_space<vmem>>, vector<64x128xf32>
    tpu.vector_store %arg3[%c0_3, %c0_4], %2 {strides = array<i32>} : memref<64x128xf32, #tpu.memory_space<vmem>>, vector<64x128xf32>,
    return
  }
  func.func @transform_0(%arg0: i32) -> (i32, i32) {
    %c0_i32 = arith.constant 0 : i32
    %c0_i32_0 = arith.constant 0 : i32
    return %arg0, %c0_i32 : i32, i32
  }
  func.func @transform_1(%arg0: i32) -> (i32, i32) {
    %c0_i32 = arith.constant 0 : i32
    %c0_i32_0 = arith.constant 0 : i32
    %c0_i32_1 = arith.constant 0 : i32
    return %c0_i32, %c0_i32_0 : i32, i32
  }
  func.func @transform_2(%arg0: i32) -> (i32, i32) {
    %c0_i32 = arith.constant 0 : i32
    %c0_i32_0 = arith.constant 0 : i32
    return %arg0, %c0_i32 : i32, i32
  }
}

module attributes {stable_mosaic.version = 11 : i64} {
  func.func @_attn_kernel(%arg0: i32, %arg1: i32, %arg2: memref<8x16x24xbf16, #tpu.memory_space<vmem>>, %arg3: memref<8x128x24xbf16, #tpu.memory_space<vmem>>, %arg4: memref<8x128x16xbf16, #tpu.memory_space<vmem>>, %arg5: memref<16x128xbf16, #tpu.memory_space<vmem>>, %arg6: memref<8x16x128xf32, #tpu.memory_space<vmem>>, %arg7: memref<16x128xf32, #tpu.memory_space<vmem>>, %arg8: memref<8x16x1xf32, #tpu.memory_space<vmem>>, %arg9: memref<8x16x1xf32, #tpu.memory_space<vmem>>, %arg10: memref<8x16x16xf32, #tpu.memory_space<vmem>>) attributes {dimension_semantics = [#tpu.dimension_semantics<parallel>, #tpu.dimension_semantics<arbitrary>], iteration_bounds = array<i64: 2, 1>, scalar_prefetch = 0 : i64, scratch_operands = 3 : i64, tpu.core_type = #tpu.core_type<tc>, window_params = [{transform_indices = @transform_0, window_bounds = array<i64: 8, 16, 24>}, {transform_indices = @transform_1, window_bounds = array<i64: 8, 128, 24>}, {transform_indices = @transform_2, window_bounds = array<i64: 8, 128, 16>}, {transform_indices = @transform_3, window_bounds = array<i64: 16, 128>}, {pipeline_mode = #tpu.pipeline_mode<synchronous>, transform_indices = @transform_4, window_bounds = array<i64: 8, 16, 128>}, {transform_indices = @transform_5, window_bounds = array<i64: 16, 128>}]} {
    %c0_i32 = arith.constant 0 : i32
    %0 = arith.cmpi eq, %arg1, %c0_i32 : i32
    %1 = arith.extui %0 : i1 to i32
    %c0_i32_0 = arith.constant 0 : i32
    %2 = arith.cmpi ne, %1, %c0_i32_0 : i32
    scf.if %2 {
      %cst_244 = arith.constant -1.000000e+30 : f32
      %328 = vector.broadcast %cst_244 : f32 to vector<8x16x1xf32>
      %c0_245 = arith.constant 0 : index
      %c0_246 = arith.constant 0 : index
      %c0_247 = arith.constant 0 : index
      %329 = vector.load %arg8[%c0_245, %c0_246, %c0_247] : memref<8x16x1xf32, #tpu.memory_space<vmem>>, vector<8x16x1xf32>
      tpu.vector_store %arg8[%c0_245, %c0_246, %c0_247], %328 {strides = array<i32>} : memref<8x16x1xf32, #tpu.memory_space<vmem>>, vector<8x16x1xf32>,
      %cst_248 = arith.constant 0.000000e+00 : f32
      %330 = vector.broadcast %cst_248 : f32 to vector<8x16x1xf32>
      %c0_249 = arith.constant 0 : index
      %c0_250 = arith.constant 0 : index
      %c0_251 = arith.constant 0 : index
      %331 = vector.load %arg9[%c0_249, %c0_250, %c0_251] : memref<8x16x1xf32, #tpu.memory_space<vmem>>, vector<8x16x1xf32>
      tpu.vector_store %arg9[%c0_249, %c0_250, %c0_251], %330 {strides = array<i32>} : memref<8x16x1xf32, #tpu.memory_space<vmem>>, vector<8x16x1xf32>,
      %cst_252 = arith.constant 0.000000e+00 : f32
      %332 = vector.broadcast %cst_252 : f32 to vector<8x16x16xf32>
      %c0_253 = arith.constant 0 : index
      %c0_254 = arith.constant 0 : index
      %c0_255 = arith.constant 0 : index
      %333 = vector.load %arg10[%c0_253, %c0_254, %c0_255] : memref<8x16x16xf32, #tpu.memory_space<vmem>>, vector<8x16x16xf32>
      tpu.vector_store %arg10[%c0_253, %c0_254, %c0_255], %332 {strides = array<i32>} : memref<8x16x16xf32, #tpu.memory_space<vmem>>, vector<8x16x16xf32>,
    } else {
    }
    %c0 = arith.constant 0 : index
    %c0_1 = arith.constant 0 : index
    %3 = vector.load %arg5[%c0, %c0_1] : memref<16x128xbf16, #tpu.memory_space<vmem>>, vector<16x128xbf16>
    %4 = arith.extf %3 : vector<16x128xbf16> to vector<16x128xf32>
    %c0_2 = arith.constant 0 : index
    %c0_3 = arith.constant 0 : index
    %c0_4 = arith.constant 0 : index
    %5 = vector.load %arg2[%c0_2, %c0_3, %c0_4] : memref<8x16x24xbf16, #tpu.memory_space<vmem>>, vector<1x16x24xbf16>
    %6 = vector.shape_cast %5 : vector<1x16x24xbf16> to vector<16x24xbf16>
    %c0_5 = arith.constant 0 : index
    %c0_6 = arith.constant 0 : index
    %c0_7 = arith.constant 0 : index
    %7 = vector.load %arg3[%c0_5, %c0_6, %c0_7] : memref<8x128x24xbf16, #tpu.memory_space<vmem>>, vector<1x128x24xbf16>
    %8 = vector.shape_cast %7 : vector<1x128x24xbf16> to vector<128x24xbf16>
    %cst = arith.constant dense<0.000000e+00> : vector<16x128xf32>
    %9 = tpu.matmul %6, %8, %cst {dimension_numbers = #tpu.dot_dimension_numbers<[1], [1], [0], [0], [0, 0, 1, 0], [], []>} : vector<16x24xbf16>, vector<128x24xbf16>, vector<16x128xf32> -> vector<16x128xf32>
    %10 = arith.addf %9, %4 : vector<16x128xf32>
    %c0_8 = arith.constant 0 : index
    %c0_9 = arith.constant 0 : index
    %c0_10 = arith.constant 0 : index
    %11 = vector.load %arg8[%c0_8, %c0_9, %c0_10] : memref<8x16x1xf32, #tpu.memory_space<vmem>>, vector<1x16x1xf32>
    %12 = vector.shape_cast %11 : vector<1x16x1xf32> to vector<16x1xf32>
    %cst_11 = arith.constant dense<0xFF800000> : vector<16xf32>
    %13 = vector.multi_reduction <maximumf>, %10, %cst_11 [1] : vector<16x128xf32> to vector<16xf32>
    %14 = vector.shape_cast %13 : vector<16xf32> to vector<16x1xf32>
    %15 = arith.maximumf %12, %14 : vector<16x1xf32>
    %16 = arith.subf %12, %15 : vector<16x1xf32>
    %17 = math.exp %16 : vector<16x1xf32>
    %18 = vector.broadcast %15 : vector<16x1xf32> to vector<16x128xf32>
    %19 = arith.subf %10, %18 : vector<16x128xf32>
    %20 = math.exp %19 : vector<16x128xf32>
    %c0_12 = arith.constant 0 : index
    %c0_13 = arith.constant 0 : index
    %c0_14 = arith.constant 0 : index
    %21 = vector.load %arg9[%c0_12, %c0_13, %c0_14] : memref<8x16x1xf32, #tpu.memory_space<vmem>>, vector<1x16x1xf32>
    %22 = vector.shape_cast %21 : vector<1x16x1xf32> to vector<16x1xf32>
    %23 = arith.mulf %17, %22 : vector<16x1xf32>
    %cst_15 = arith.constant dense<0.000000e+00> : vector<16xf32>
    %24 = vector.multi_reduction <add>, %20, %cst_15 [1] : vector<16x128xf32> to vector<16xf32>
    %25 = vector.shape_cast %24 : vector<16xf32> to vector<16x1xf32>
    %26 = arith.addf %23, %25 : vector<16x1xf32>
    %c0_16 = arith.constant 0 : index
    %c0_17 = arith.constant 0 : index
    %c0_18 = arith.constant 0 : index
    %27 = vector.load %arg9[%c0_16, %c0_17, %c0_18] : memref<8x16x1xf32, #tpu.memory_space<vmem>>, vector<1x16x1xf32>
    %28 = vector.shape_cast %27 : vector<1x16x1xf32> to vector<16x1xf32>
    %29 = vector.shape_cast %26 : vector<16x1xf32> to vector<1x16x1xf32>
    tpu.vector_store %arg9[%c0_16, %c0_17, %c0_18], %29 {strides = array<i32>} : memref<8x16x1xf32, #tpu.memory_space<vmem>>, vector<1x16x1xf32>,
    %c0_19 = arith.constant 0 : index
    %c0_20 = arith.constant 0 : index
    %c0_21 = arith.constant 0 : index
    %30 = vector.load %arg8[%c0_19, %c0_20, %c0_21] : memref<8x16x1xf32, #tpu.memory_space<vmem>>, vector<1x16x1xf32>
    %31 = vector.shape_cast %30 : vector<1x16x1xf32> to vector<16x1xf32>
    %32 = vector.shape_cast %15 : vector<16x1xf32> to vector<1x16x1xf32>
    tpu.vector_store %arg8[%c0_19, %c0_20, %c0_21], %32 {strides = array<i32>} : memref<8x16x1xf32, #tpu.memory_space<vmem>>, vector<1x16x1xf32>,
    %c0_22 = arith.constant 0 : index
    %c0_23 = arith.constant 0 : index
    %c0_24 = arith.constant 0 : index
    %33 = vector.load %arg10[%c0_22, %c0_23, %c0_24] : memref<8x16x16xf32, #tpu.memory_space<vmem>>, vector<1x16x16xf32>
    %34 = vector.shape_cast %33 : vector<1x16x16xf32> to vector<16x16xf32>
    %35 = vector.broadcast %17 : vector<16x1xf32> to vector<16x16xf32>
    %36 = arith.mulf %35, %34 : vector<16x16xf32>
    %c0_25 = arith.constant 0 : index
    %c0_26 = arith.constant 0 : index
    %c0_27 = arith.constant 0 : index
    %37 = vector.load %arg4[%c0_25, %c0_26, %c0_27] : memref<8x128x16xbf16, #tpu.memory_space<vmem>>, vector<1x128x16xbf16>
    %38 = vector.shape_cast %37 : vector<1x128x16xbf16> to vector<128x16xbf16>
    %39 = arith.extf %38 : vector<128x16xbf16> to vector<128x16xf32>
    %cst_28 = arith.constant dense<0.000000e+00> : vector<16x16xf32>
    %40 = tpu.matmul %20, %39, %cst_28 {dimension_numbers = #tpu.dot_dimension_numbers<[1], [0], [0], [1], [0, 0, 1, 1], [], []>} : vector<16x128xf32>, vector<128x16xf32>, vector<16x16xf32> -> vector<16x16xf32>
    %41 = arith.addf %36, %40 : vector<16x16xf32>
    %c0_29 = arith.constant 0 : index
    %c0_30 = arith.constant 0 : index
    %c0_31 = arith.constant 0 : index
    %42 = vector.load %arg10[%c0_29, %c0_30, %c0_31] : memref<8x16x16xf32, #tpu.memory_space<vmem>>, vector<1x16x16xf32>
    %43 = vector.shape_cast %42 : vector<1x16x16xf32> to vector<16x16xf32>
    %44 = vector.shape_cast %41 : vector<16x16xf32> to vector<1x16x16xf32>
    tpu.vector_store %arg10[%c0_29, %c0_30, %c0_31], %44 {strides = array<i32>} : memref<8x16x16xf32, #tpu.memory_space<vmem>>, vector<1x16x16xf32>,
    %c1 = arith.constant 1 : index
    %c0_32 = arith.constant 0 : index
    %c0_33 = arith.constant 0 : index
    %45 = vector.load %arg2[%c1, %c0_32, %c0_33] : memref<8x16x24xbf16, #tpu.memory_space<vmem>>, vector<1x16x24xbf16>
    %46 = vector.shape_cast %45 : vector<1x16x24xbf16> to vector<16x24xbf16>
    %c1_34 = arith.constant 1 : index
    %c0_35 = arith.constant 0 : index
    %c0_36 = arith.constant 0 : index
    %47 = vector.load %arg3[%c1_34, %c0_35, %c0_36] : memref<8x128x24xbf16, #tpu.memory_space<vmem>>, vector<1x128x24xbf16>
    %48 = vector.shape_cast %47 : vector<1x128x24xbf16> to vector<128x24xbf16>
    %cst_37 = arith.constant dense<0.000000e+00> : vector<16x128xf32>
    %49 = tpu.matmul %46, %48, %cst_37 {dimension_numbers = #tpu.dot_dimension_numbers<[1], [1], [0], [0], [0, 0, 1, 0], [], []>} : vector<16x24xbf16>, vector<128x24xbf16>, vector<16x128xf32> -> vector<16x128xf32>
    %50 = arith.addf %49, %4 : vector<16x128xf32>
    %c1_38 = arith.constant 1 : index
    %c0_39 = arith.constant 0 : index
    %c0_40 = arith.constant 0 : index
    %51 = vector.load %arg8[%c1_38, %c0_39, %c0_40] : memref<8x16x1xf32, #tpu.memory_space<vmem>>, vector<1x16x1xf32>
    %52 = vector.shape_cast %51 : vector<1x16x1xf32> to vector<16x1xf32>
    %cst_41 = arith.constant dense<0xFF800000> : vector<16xf32>
    %53 = vector.multi_reduction <maximumf>, %50, %cst_41 [1] : vector<16x128xf32> to vector<16xf32>
    %54 = vector.shape_cast %53 : vector<16xf32> to vector<16x1xf32>
    %55 = arith.maximumf %52, %54 : vector<16x1xf32>
    %56 = arith.subf %52, %55 : vector<16x1xf32>
    %57 = math.exp %56 : vector<16x1xf32>
    %58 = vector.broadcast %55 : vector<16x1xf32> to vector<16x128xf32>
    %59 = arith.subf %50, %58 : vector<16x128xf32>
    %60 = math.exp %59 : vector<16x128xf32>
    %c1_42 = arith.constant 1 : index
    %c0_43 = arith.constant 0 : index
    %c0_44 = arith.constant 0 : index
    %61 = vector.load %arg9[%c1_42, %c0_43, %c0_44] : memref<8x16x1xf32, #tpu.memory_space<vmem>>, vector<1x16x1xf32>
    %62 = vector.shape_cast %61 : vector<1x16x1xf32> to vector<16x1xf32>
    %63 = arith.mulf %57, %62 : vector<16x1xf32>
    %cst_45 = arith.constant dense<0.000000e+00> : vector<16xf32>
    %64 = vector.multi_reduction <add>, %60, %cst_45 [1] : vector<16x128xf32> to vector<16xf32>
    %65 = vector.shape_cast %64 : vector<16xf32> to vector<16x1xf32>
    %66 = arith.addf %63, %65 : vector<16x1xf32>
    %c1_46 = arith.constant 1 : index
    %c0_47 = arith.constant 0 : index
    %c0_48 = arith.constant 0 : index
    %67 = vector.load %arg9[%c1_46, %c0_47, %c0_48] : memref<8x16x1xf32, #tpu.memory_space<vmem>>, vector<1x16x1xf32>
    %68 = vector.shape_cast %67 : vector<1x16x1xf32> to vector<16x1xf32>
    %69 = vector.shape_cast %66 : vector<16x1xf32> to vector<1x16x1xf32>
    tpu.vector_store %arg9[%c1_46, %c0_47, %c0_48], %69 {strides = array<i32>} : memref<8x16x1xf32, #tpu.memory_space<vmem>>, vector<1x16x1xf32>,
    %c1_49 = arith.constant 1 : index
    %c0_50 = arith.constant 0 : index
    %c0_51 = arith.constant 0 : index
    %70 = vector.load %arg8[%c1_49, %c0_50, %c0_51] : memref<8x16x1xf32, #tpu.memory_space<vmem>>, vector<1x16x1xf32>
    %71 = vector.shape_cast %70 : vector<1x16x1xf32> to vector<16x1xf32>
    %72 = vector.shape_cast %55 : vector<16x1xf32> to vector<1x16x1xf32>
    tpu.vector_store %arg8[%c1_49, %c0_50, %c0_51], %72 {strides = array<i32>} : memref<8x16x1xf32, #tpu.memory_space<vmem>>, vector<1x16x1xf32>,
    %c1_52 = arith.constant 1 : index
    %c0_53 = arith.constant 0 : index
    %c0_54 = arith.constant 0 : index
    %73 = vector.load %arg10[%c1_52, %c0_53, %c0_54] : memref<8x16x16xf32, #tpu.memory_space<vmem>>, vector<1x16x16xf32>
    %74 = vector.shape_cast %73 : vector<1x16x16xf32> to vector<16x16xf32>
    %75 = vector.broadcast %57 : vector<16x1xf32> to vector<16x16xf32>
    %76 = arith.mulf %75, %74 : vector<16x16xf32>
    %c1_55 = arith.constant 1 : index
    %c0_56 = arith.constant 0 : index
    %c0_57 = arith.constant 0 : index
    %77 = vector.load %arg4[%c1_55, %c0_56, %c0_57] : memref<8x128x16xbf16, #tpu.memory_space<vmem>>, vector<1x128x16xbf16>
    %78 = vector.shape_cast %77 : vector<1x128x16xbf16> to vector<128x16xbf16>
    %79 = arith.extf %78 : vector<128x16xbf16> to vector<128x16xf32>
    %cst_58 = arith.constant dense<0.000000e+00> : vector<16x16xf32>
    %80 = tpu.matmul %60, %79, %cst_58 {dimension_numbers = #tpu.dot_dimension_numbers<[1], [0], [0], [1], [0, 0, 1, 1], [], []>} : vector<16x128xf32>, vector<128x16xf32>, vector<16x16xf32> -> vector<16x16xf32>
    %81 = arith.addf %76, %80 : vector<16x16xf32>
    %c1_59 = arith.constant 1 : index
    %c0_60 = arith.constant 0 : index
    %c0_61 = arith.constant 0 : index
    %82 = vector.load %arg10[%c1_59, %c0_60, %c0_61] : memref<8x16x16xf32, #tpu.memory_space<vmem>>, vector<1x16x16xf32>
    %83 = vector.shape_cast %82 : vector<1x16x16xf32> to vector<16x16xf32>
    %84 = vector.shape_cast %81 : vector<16x16xf32> to vector<1x16x16xf32>
    tpu.vector_store %arg10[%c1_59, %c0_60, %c0_61], %84 {strides = array<i32>} : memref<8x16x16xf32, #tpu.memory_space<vmem>>, vector<1x16x16xf32>,
    %c2 = arith.constant 2 : index
    %c0_62 = arith.constant 0 : index
    %c0_63 = arith.constant 0 : index
    %85 = vector.load %arg2[%c2, %c0_62, %c0_63] : memref<8x16x24xbf16, #tpu.memory_space<vmem>>, vector<1x16x24xbf16>
    %86 = vector.shape_cast %85 : vector<1x16x24xbf16> to vector<16x24xbf16>
    %c2_64 = arith.constant 2 : index
    %c0_65 = arith.constant 0 : index
    %c0_66 = arith.constant 0 : index
    %87 = vector.load %arg3[%c2_64, %c0_65, %c0_66] : memref<8x128x24xbf16, #tpu.memory_space<vmem>>, vector<1x128x24xbf16>
    %88 = vector.shape_cast %87 : vector<1x128x24xbf16> to vector<128x24xbf16>
    %cst_67 = arith.constant dense<0.000000e+00> : vector<16x128xf32>
    %89 = tpu.matmul %86, %88, %cst_67 {dimension_numbers = #tpu.dot_dimension_numbers<[1], [1], [0], [0], [0, 0, 1, 0], [], []>} : vector<16x24xbf16>, vector<128x24xbf16>, vector<16x128xf32> -> vector<16x128xf32>
    %90 = arith.addf %89, %4 : vector<16x128xf32>
    %c2_68 = arith.constant 2 : index
    %c0_69 = arith.constant 0 : index
    %c0_70 = arith.constant 0 : index
    %91 = vector.load %arg8[%c2_68, %c0_69, %c0_70] : memref<8x16x1xf32, #tpu.memory_space<vmem>>, vector<1x16x1xf32>
    %92 = vector.shape_cast %91 : vector<1x16x1xf32> to vector<16x1xf32>
    %cst_71 = arith.constant dense<0xFF800000> : vector<16xf32>
    %93 = vector.multi_reduction <maximumf>, %90, %cst_71 [1] : vector<16x128xf32> to vector<16xf32>
    %94 = vector.shape_cast %93 : vector<16xf32> to vector<16x1xf32>
    %95 = arith.maximumf %92, %94 : vector<16x1xf32>
    %96 = arith.subf %92, %95 : vector<16x1xf32>
    %97 = math.exp %96 : vector<16x1xf32>
    %98 = vector.broadcast %95 : vector<16x1xf32> to vector<16x128xf32>
    %99 = arith.subf %90, %98 : vector<16x128xf32>
    %100 = math.exp %99 : vector<16x128xf32>
    %c2_72 = arith.constant 2 : index
    %c0_73 = arith.constant 0 : index
    %c0_74 = arith.constant 0 : index
    %101 = vector.load %arg9[%c2_72, %c0_73, %c0_74] : memref<8x16x1xf32, #tpu.memory_space<vmem>>, vector<1x16x1xf32>
    %102 = vector.shape_cast %101 : vector<1x16x1xf32> to vector<16x1xf32>
    %103 = arith.mulf %97, %102 : vector<16x1xf32>
    %cst_75 = arith.constant dense<0.000000e+00> : vector<16xf32>
    %104 = vector.multi_reduction <add>, %100, %cst_75 [1] : vector<16x128xf32> to vector<16xf32>
    %105 = vector.shape_cast %104 : vector<16xf32> to vector<16x1xf32>
    %106 = arith.addf %103, %105 : vector<16x1xf32>
    %c2_76 = arith.constant 2 : index
    %c0_77 = arith.constant 0 : index
    %c0_78 = arith.constant 0 : index
    %107 = vector.load %arg9[%c2_76, %c0_77, %c0_78] : memref<8x16x1xf32, #tpu.memory_space<vmem>>, vector<1x16x1xf32>
    %108 = vector.shape_cast %107 : vector<1x16x1xf32> to vector<16x1xf32>
    %109 = vector.shape_cast %106 : vector<16x1xf32> to vector<1x16x1xf32>
    tpu.vector_store %arg9[%c2_76, %c0_77, %c0_78], %109 {strides = array<i32>} : memref<8x16x1xf32, #tpu.memory_space<vmem>>, vector<1x16x1xf32>,
    %c2_79 = arith.constant 2 : index
    %c0_80 = arith.constant 0 : index
    %c0_81 = arith.constant 0 : index
    %110 = vector.load %arg8[%c2_79, %c0_80, %c0_81] : memref<8x16x1xf32, #tpu.memory_space<vmem>>, vector<1x16x1xf32>
    %111 = vector.shape_cast %110 : vector<1x16x1xf32> to vector<16x1xf32>
    %112 = vector.shape_cast %95 : vector<16x1xf32> to vector<1x16x1xf32>
    tpu.vector_store %arg8[%c2_79, %c0_80, %c0_81], %112 {strides = array<i32>} : memref<8x16x1xf32, #tpu.memory_space<vmem>>, vector<1x16x1xf32>,
    %c2_82 = arith.constant 2 : index
    %c0_83 = arith.constant 0 : index
    %c0_84 = arith.constant 0 : index
    %113 = vector.load %arg10[%c2_82, %c0_83, %c0_84] : memref<8x16x16xf32, #tpu.memory_space<vmem>>, vector<1x16x16xf32>
    %114 = vector.shape_cast %113 : vector<1x16x16xf32> to vector<16x16xf32>
    %115 = vector.broadcast %97 : vector<16x1xf32> to vector<16x16xf32>
    %116 = arith.mulf %115, %114 : vector<16x16xf32>
    %c2_85 = arith.constant 2 : index
    %c0_86 = arith.constant 0 : index
    %c0_87 = arith.constant 0 : index
    %117 = vector.load %arg4[%c2_85, %c0_86, %c0_87] : memref<8x128x16xbf16, #tpu.memory_space<vmem>>, vector<1x128x16xbf16>
    %118 = vector.shape_cast %117 : vector<1x128x16xbf16> to vector<128x16xbf16>
    %119 = arith.extf %118 : vector<128x16xbf16> to vector<128x16xf32>
    %cst_88 = arith.constant dense<0.000000e+00> : vector<16x16xf32>
    %120 = tpu.matmul %100, %119, %cst_88 {dimension_numbers = #tpu.dot_dimension_numbers<[1], [0], [0], [1], [0, 0, 1, 1], [], []>} : vector<16x128xf32>, vector<128x16xf32>, vector<16x16xf32> -> vector<16x16xf32>
    %121 = arith.addf %116, %120 : vector<16x16xf32>
    %c2_89 = arith.constant 2 : index
    %c0_90 = arith.constant 0 : index
    %c0_91 = arith.constant 0 : index
    %122 = vector.load %arg10[%c2_89, %c0_90, %c0_91] : memref<8x16x16xf32, #tpu.memory_space<vmem>>, vector<1x16x16xf32>
    %123 = vector.shape_cast %122 : vector<1x16x16xf32> to vector<16x16xf32>
    %124 = vector.shape_cast %121 : vector<16x16xf32> to vector<1x16x16xf32>
    tpu.vector_store %arg10[%c2_89, %c0_90, %c0_91], %124 {strides = array<i32>} : memref<8x16x16xf32, #tpu.memory_space<vmem>>, vector<1x16x16xf32>,
    %c3 = arith.constant 3 : index
    %c0_92 = arith.constant 0 : index
    %c0_93 = arith.constant 0 : index
    %125 = vector.load %arg2[%c3, %c0_92, %c0_93] : memref<8x16x24xbf16, #tpu.memory_space<vmem>>, vector<1x16x24xbf16>
    %126 = vector.shape_cast %125 : vector<1x16x24xbf16> to vector<16x24xbf16>
    %c3_94 = arith.constant 3 : index
    %c0_95 = arith.constant 0 : index
    %c0_96 = arith.constant 0 : index
    %127 = vector.load %arg3[%c3_94, %c0_95, %c0_96] : memref<8x128x24xbf16, #tpu.memory_space<vmem>>, vector<1x128x24xbf16>
    %128 = vector.shape_cast %127 : vector<1x128x24xbf16> to vector<128x24xbf16>
    %cst_97 = arith.constant dense<0.000000e+00> : vector<16x128xf32>
    %129 = tpu.matmul %126, %128, %cst_97 {dimension_numbers = #tpu.dot_dimension_numbers<[1], [1], [0], [0], [0, 0, 1, 0], [], []>} : vector<16x24xbf16>, vector<128x24xbf16>, vector<16x128xf32> -> vector<16x128xf32>
    %130 = arith.addf %129, %4 : vector<16x128xf32>
    %c3_98 = arith.constant 3 : index
    %c0_99 = arith.constant 0 : index
    %c0_100 = arith.constant 0 : index
    %131 = vector.load %arg8[%c3_98, %c0_99, %c0_100] : memref<8x16x1xf32, #tpu.memory_space<vmem>>, vector<1x16x1xf32>
    %132 = vector.shape_cast %131 : vector<1x16x1xf32> to vector<16x1xf32>
    %cst_101 = arith.constant dense<0xFF800000> : vector<16xf32>
    %133 = vector.multi_reduction <maximumf>, %130, %cst_101 [1] : vector<16x128xf32> to vector<16xf32>
    %134 = vector.shape_cast %133 : vector<16xf32> to vector<16x1xf32>
    %135 = arith.maximumf %132, %134 : vector<16x1xf32>
    %136 = arith.subf %132, %135 : vector<16x1xf32>
    %137 = math.exp %136 : vector<16x1xf32>
    %138 = vector.broadcast %135 : vector<16x1xf32> to vector<16x128xf32>
    %139 = arith.subf %130, %138 : vector<16x128xf32>
    %140 = math.exp %139 : vector<16x128xf32>
    %c3_102 = arith.constant 3 : index
    %c0_103 = arith.constant 0 : index
    %c0_104 = arith.constant 0 : index
    %141 = vector.load %arg9[%c3_102, %c0_103, %c0_104] : memref<8x16x1xf32, #tpu.memory_space<vmem>>, vector<1x16x1xf32>
    %142 = vector.shape_cast %141 : vector<1x16x1xf32> to vector<16x1xf32>
    %143 = arith.mulf %137, %142 : vector<16x1xf32>
    %cst_105 = arith.constant dense<0.000000e+00> : vector<16xf32>
    %144 = vector.multi_reduction <add>, %140, %cst_105 [1] : vector<16x128xf32> to vector<16xf32>
    %145 = vector.shape_cast %144 : vector<16xf32> to vector<16x1xf32>
    %146 = arith.addf %143, %145 : vector<16x1xf32>
    %c3_106 = arith.constant 3 : index
    %c0_107 = arith.constant 0 : index
    %c0_108 = arith.constant 0 : index
    %147 = vector.load %arg9[%c3_106, %c0_107, %c0_108] : memref<8x16x1xf32, #tpu.memory_space<vmem>>, vector<1x16x1xf32>
    %148 = vector.shape_cast %147 : vector<1x16x1xf32> to vector<16x1xf32>
    %149 = vector.shape_cast %146 : vector<16x1xf32> to vector<1x16x1xf32>
    tpu.vector_store %arg9[%c3_106, %c0_107, %c0_108], %149 {strides = array<i32>} : memref<8x16x1xf32, #tpu.memory_space<vmem>>, vector<1x16x1xf32>,
    %c3_109 = arith.constant 3 : index
    %c0_110 = arith.constant 0 : index
    %c0_111 = arith.constant 0 : index
    %150 = vector.load %arg8[%c3_109, %c0_110, %c0_111] : memref<8x16x1xf32, #tpu.memory_space<vmem>>, vector<1x16x1xf32>
    %151 = vector.shape_cast %150 : vector<1x16x1xf32> to vector<16x1xf32>
    %152 = vector.shape_cast %135 : vector<16x1xf32> to vector<1x16x1xf32>
    tpu.vector_store %arg8[%c3_109, %c0_110, %c0_111], %152 {strides = array<i32>} : memref<8x16x1xf32, #tpu.memory_space<vmem>>, vector<1x16x1xf32>,
    %c3_112 = arith.constant 3 : index
    %c0_113 = arith.constant 0 : index
    %c0_114 = arith.constant 0 : index
    %153 = vector.load %arg10[%c3_112, %c0_113, %c0_114] : memref<8x16x16xf32, #tpu.memory_space<vmem>>, vector<1x16x16xf32>
    %154 = vector.shape_cast %153 : vector<1x16x16xf32> to vector<16x16xf32>
    %155 = vector.broadcast %137 : vector<16x1xf32> to vector<16x16xf32>
    %156 = arith.mulf %155, %154 : vector<16x16xf32>
    %c3_115 = arith.constant 3 : index
    %c0_116 = arith.constant 0 : index
    %c0_117 = arith.constant 0 : index
    %157 = vector.load %arg4[%c3_115, %c0_116, %c0_117] : memref<8x128x16xbf16, #tpu.memory_space<vmem>>, vector<1x128x16xbf16>
    %158 = vector.shape_cast %157 : vector<1x128x16xbf16> to vector<128x16xbf16>
    %159 = arith.extf %158 : vector<128x16xbf16> to vector<128x16xf32>
    %cst_118 = arith.constant dense<0.000000e+00> : vector<16x16xf32>
    %160 = tpu.matmul %140, %159, %cst_118 {dimension_numbers = #tpu.dot_dimension_numbers<[1], [0], [0], [1], [0, 0, 1, 1], [], []>} : vector<16x128xf32>, vector<128x16xf32>, vector<16x16xf32> -> vector<16x16xf32>
    %161 = arith.addf %156, %160 : vector<16x16xf32>
    %c3_119 = arith.constant 3 : index
    %c0_120 = arith.constant 0 : index
    %c0_121 = arith.constant 0 : index
    %162 = vector.load %arg10[%c3_119, %c0_120, %c0_121] : memref<8x16x16xf32, #tpu.memory_space<vmem>>, vector<1x16x16xf32>
    %163 = vector.shape_cast %162 : vector<1x16x16xf32> to vector<16x16xf32>
    %164 = vector.shape_cast %161 : vector<16x16xf32> to vector<1x16x16xf32>
    tpu.vector_store %arg10[%c3_119, %c0_120, %c0_121], %164 {strides = array<i32>} : memref<8x16x16xf32, #tpu.memory_space<vmem>>, vector<1x16x16xf32>,
    %c4 = arith.constant 4 : index
    %c0_122 = arith.constant 0 : index
    %c0_123 = arith.constant 0 : index
    %165 = vector.load %arg2[%c4, %c0_122, %c0_123] : memref<8x16x24xbf16, #tpu.memory_space<vmem>>, vector<1x16x24xbf16>
    %166 = vector.shape_cast %165 : vector<1x16x24xbf16> to vector<16x24xbf16>
    %c4_124 = arith.constant 4 : index
    %c0_125 = arith.constant 0 : index
    %c0_126 = arith.constant 0 : index
    %167 = vector.load %arg3[%c4_124, %c0_125, %c0_126] : memref<8x128x24xbf16, #tpu.memory_space<vmem>>, vector<1x128x24xbf16>
    %168 = vector.shape_cast %167 : vector<1x128x24xbf16> to vector<128x24xbf16>
    %cst_127 = arith.constant dense<0.000000e+00> : vector<16x128xf32>
    %169 = tpu.matmul %166, %168, %cst_127 {dimension_numbers = #tpu.dot_dimension_numbers<[1], [1], [0], [0], [0, 0, 1, 0], [], []>} : vector<16x24xbf16>, vector<128x24xbf16>, vector<16x128xf32> -> vector<16x128xf32>
    %170 = arith.addf %169, %4 : vector<16x128xf32>
    %c4_128 = arith.constant 4 : index
    %c0_129 = arith.constant 0 : index
    %c0_130 = arith.constant 0 : index
    %171 = vector.load %arg8[%c4_128, %c0_129, %c0_130] : memref<8x16x1xf32, #tpu.memory_space<vmem>>, vector<1x16x1xf32>
    %172 = vector.shape_cast %171 : vector<1x16x1xf32> to vector<16x1xf32>
    %cst_131 = arith.constant dense<0xFF800000> : vector<16xf32>
    %173 = vector.multi_reduction <maximumf>, %170, %cst_131 [1] : vector<16x128xf32> to vector<16xf32>
    %174 = vector.shape_cast %173 : vector<16xf32> to vector<16x1xf32>
    %175 = arith.maximumf %172, %174 : vector<16x1xf32>
    %176 = arith.subf %172, %175 : vector<16x1xf32>
    %177 = math.exp %176 : vector<16x1xf32>
    %178 = vector.broadcast %175 : vector<16x1xf32> to vector<16x128xf32>
    %179 = arith.subf %170, %178 : vector<16x128xf32>
    %180 = math.exp %179 : vector<16x128xf32>
    %c4_132 = arith.constant 4 : index
    %c0_133 = arith.constant 0 : index
    %c0_134 = arith.constant 0 : index
    %181 = vector.load %arg9[%c4_132, %c0_133, %c0_134] : memref<8x16x1xf32, #tpu.memory_space<vmem>>, vector<1x16x1xf32>
    %182 = vector.shape_cast %181 : vector<1x16x1xf32> to vector<16x1xf32>
    %183 = arith.mulf %177, %182 : vector<16x1xf32>
    %cst_135 = arith.constant dense<0.000000e+00> : vector<16xf32>
    %184 = vector.multi_reduction <add>, %180, %cst_135 [1] : vector<16x128xf32> to vector<16xf32>
    %185 = vector.shape_cast %184 : vector<16xf32> to vector<16x1xf32>
    %186 = arith.addf %183, %185 : vector<16x1xf32>
    %c4_136 = arith.constant 4 : index
    %c0_137 = arith.constant 0 : index
    %c0_138 = arith.constant 0 : index
    %187 = vector.load %arg9[%c4_136, %c0_137, %c0_138] : memref<8x16x1xf32, #tpu.memory_space<vmem>>, vector<1x16x1xf32>
    %188 = vector.shape_cast %187 : vector<1x16x1xf32> to vector<16x1xf32>
    %189 = vector.shape_cast %186 : vector<16x1xf32> to vector<1x16x1xf32>
    tpu.vector_store %arg9[%c4_136, %c0_137, %c0_138], %189 {strides = array<i32>} : memref<8x16x1xf32, #tpu.memory_space<vmem>>, vector<1x16x1xf32>,
    %c4_139 = arith.constant 4 : index
    %c0_140 = arith.constant 0 : index
    %c0_141 = arith.constant 0 : index
    %190 = vector.load %arg8[%c4_139, %c0_140, %c0_141] : memref<8x16x1xf32, #tpu.memory_space<vmem>>, vector<1x16x1xf32>
    %191 = vector.shape_cast %190 : vector<1x16x1xf32> to vector<16x1xf32>
    %192 = vector.shape_cast %175 : vector<16x1xf32> to vector<1x16x1xf32>
    tpu.vector_store %arg8[%c4_139, %c0_140, %c0_141], %192 {strides = array<i32>} : memref<8x16x1xf32, #tpu.memory_space<vmem>>, vector<1x16x1xf32>,
    %c4_142 = arith.constant 4 : index
    %c0_143 = arith.constant 0 : index
    %c0_144 = arith.constant 0 : index
    %193 = vector.load %arg10[%c4_142, %c0_143, %c0_144] : memref<8x16x16xf32, #tpu.memory_space<vmem>>, vector<1x16x16xf32>
    %194 = vector.shape_cast %193 : vector<1x16x16xf32> to vector<16x16xf32>
    %195 = vector.broadcast %177 : vector<16x1xf32> to vector<16x16xf32>
    %196 = arith.mulf %195, %194 : vector<16x16xf32>
    %c4_145 = arith.constant 4 : index
    %c0_146 = arith.constant 0 : index
    %c0_147 = arith.constant 0 : index
    %197 = vector.load %arg4[%c4_145, %c0_146, %c0_147] : memref<8x128x16xbf16, #tpu.memory_space<vmem>>, vector<1x128x16xbf16>
    %198 = vector.shape_cast %197 : vector<1x128x16xbf16> to vector<128x16xbf16>
    %199 = arith.extf %198 : vector<128x16xbf16> to vector<128x16xf32>
    %cst_148 = arith.constant dense<0.000000e+00> : vector<16x16xf32>
    %200 = tpu.matmul %180, %199, %cst_148 {dimension_numbers = #tpu.dot_dimension_numbers<[1], [0], [0], [1], [0, 0, 1, 1], [], []>} : vector<16x128xf32>, vector<128x16xf32>, vector<16x16xf32> -> vector<16x16xf32>
    %201 = arith.addf %196, %200 : vector<16x16xf32>
    %c4_149 = arith.constant 4 : index
    %c0_150 = arith.constant 0 : index
    %c0_151 = arith.constant 0 : index
    %202 = vector.load %arg10[%c4_149, %c0_150, %c0_151] : memref<8x16x16xf32, #tpu.memory_space<vmem>>, vector<1x16x16xf32>
    %203 = vector.shape_cast %202 : vector<1x16x16xf32> to vector<16x16xf32>
    %204 = vector.shape_cast %201 : vector<16x16xf32> to vector<1x16x16xf32>
    tpu.vector_store %arg10[%c4_149, %c0_150, %c0_151], %204 {strides = array<i32>} : memref<8x16x16xf32, #tpu.memory_space<vmem>>, vector<1x16x16xf32>,
    %c5 = arith.constant 5 : index
    %c0_152 = arith.constant 0 : index
    %c0_153 = arith.constant 0 : index
    %205 = vector.load %arg2[%c5, %c0_152, %c0_153] : memref<8x16x24xbf16, #tpu.memory_space<vmem>>, vector<1x16x24xbf16>
    %206 = vector.shape_cast %205 : vector<1x16x24xbf16> to vector<16x24xbf16>
    %c5_154 = arith.constant 5 : index
    %c0_155 = arith.constant 0 : index
    %c0_156 = arith.constant 0 : index
    %207 = vector.load %arg3[%c5_154, %c0_155, %c0_156] : memref<8x128x24xbf16, #tpu.memory_space<vmem>>, vector<1x128x24xbf16>
    %208 = vector.shape_cast %207 : vector<1x128x24xbf16> to vector<128x24xbf16>
    %cst_157 = arith.constant dense<0.000000e+00> : vector<16x128xf32>
    %209 = tpu.matmul %206, %208, %cst_157 {dimension_numbers = #tpu.dot_dimension_numbers<[1], [1], [0], [0], [0, 0, 1, 0], [], []>} : vector<16x24xbf16>, vector<128x24xbf16>, vector<16x128xf32> -> vector<16x128xf32>
    %210 = arith.addf %209, %4 : vector<16x128xf32>
    %c5_158 = arith.constant 5 : index
    %c0_159 = arith.constant 0 : index
    %c0_160 = arith.constant 0 : index
    %211 = vector.load %arg8[%c5_158, %c0_159, %c0_160] : memref<8x16x1xf32, #tpu.memory_space<vmem>>, vector<1x16x1xf32>
    %212 = vector.shape_cast %211 : vector<1x16x1xf32> to vector<16x1xf32>
    %cst_161 = arith.constant dense<0xFF800000> : vector<16xf32>
    %213 = vector.multi_reduction <maximumf>, %210, %cst_161 [1] : vector<16x128xf32> to vector<16xf32>
    %214 = vector.shape_cast %213 : vector<16xf32> to vector<16x1xf32>
    %215 = arith.maximumf %212, %214 : vector<16x1xf32>
    %216 = arith.subf %212, %215 : vector<16x1xf32>
    %217 = math.exp %216 : vector<16x1xf32>
    %218 = vector.broadcast %215 : vector<16x1xf32> to vector<16x128xf32>
    %219 = arith.subf %210, %218 : vector<16x128xf32>
    %220 = math.exp %219 : vector<16x128xf32>
    %c5_162 = arith.constant 5 : index
    %c0_163 = arith.constant 0 : index
    %c0_164 = arith.constant 0 : index
    %221 = vector.load %arg9[%c5_162, %c0_163, %c0_164] : memref<8x16x1xf32, #tpu.memory_space<vmem>>, vector<1x16x1xf32>
    %222 = vector.shape_cast %221 : vector<1x16x1xf32> to vector<16x1xf32>
    %223 = arith.mulf %217, %222 : vector<16x1xf32>
    %cst_165 = arith.constant dense<0.000000e+00> : vector<16xf32>
    %224 = vector.multi_reduction <add>, %220, %cst_165 [1] : vector<16x128xf32> to vector<16xf32>
    %225 = vector.shape_cast %224 : vector<16xf32> to vector<16x1xf32>
    %226 = arith.addf %223, %225 : vector<16x1xf32>
    %c5_166 = arith.constant 5 : index
    %c0_167 = arith.constant 0 : index
    %c0_168 = arith.constant 0 : index
    %227 = vector.load %arg9[%c5_166, %c0_167, %c0_168] : memref<8x16x1xf32, #tpu.memory_space<vmem>>, vector<1x16x1xf32>
    %228 = vector.shape_cast %227 : vector<1x16x1xf32> to vector<16x1xf32>
    %229 = vector.shape_cast %226 : vector<16x1xf32> to vector<1x16x1xf32>
    tpu.vector_store %arg9[%c5_166, %c0_167, %c0_168], %229 {strides = array<i32>} : memref<8x16x1xf32, #tpu.memory_space<vmem>>, vector<1x16x1xf32>,
    %c5_169 = arith.constant 5 : index
    %c0_170 = arith.constant 0 : index
    %c0_171 = arith.constant 0 : index
    %230 = vector.load %arg8[%c5_169, %c0_170, %c0_171] : memref<8x16x1xf32, #tpu.memory_space<vmem>>, vector<1x16x1xf32>
    %231 = vector.shape_cast %230 : vector<1x16x1xf32> to vector<16x1xf32>
    %232 = vector.shape_cast %215 : vector<16x1xf32> to vector<1x16x1xf32>
    tpu.vector_store %arg8[%c5_169, %c0_170, %c0_171], %232 {strides = array<i32>} : memref<8x16x1xf32, #tpu.memory_space<vmem>>, vector<1x16x1xf32>,
    %c5_172 = arith.constant 5 : index
    %c0_173 = arith.constant 0 : index
    %c0_174 = arith.constant 0 : index
    %233 = vector.load %arg10[%c5_172, %c0_173, %c0_174] : memref<8x16x16xf32, #tpu.memory_space<vmem>>, vector<1x16x16xf32>
    %234 = vector.shape_cast %233 : vector<1x16x16xf32> to vector<16x16xf32>
    %235 = vector.broadcast %217 : vector<16x1xf32> to vector<16x16xf32>
    %236 = arith.mulf %235, %234 : vector<16x16xf32>
    %c5_175 = arith.constant 5 : index
    %c0_176 = arith.constant 0 : index
    %c0_177 = arith.constant 0 : index
    %237 = vector.load %arg4[%c5_175, %c0_176, %c0_177] : memref<8x128x16xbf16, #tpu.memory_space<vmem>>, vector<1x128x16xbf16>
    %238 = vector.shape_cast %237 : vector<1x128x16xbf16> to vector<128x16xbf16>
    %239 = arith.extf %238 : vector<128x16xbf16> to vector<128x16xf32>
    %cst_178 = arith.constant dense<0.000000e+00> : vector<16x16xf32>
    %240 = tpu.matmul %220, %239, %cst_178 {dimension_numbers = #tpu.dot_dimension_numbers<[1], [0], [0], [1], [0, 0, 1, 1], [], []>} : vector<16x128xf32>, vector<128x16xf32>, vector<16x16xf32> -> vector<16x16xf32>
    %241 = arith.addf %236, %240 : vector<16x16xf32>
    %c5_179 = arith.constant 5 : index
    %c0_180 = arith.constant 0 : index
    %c0_181 = arith.constant 0 : index
    %242 = vector.load %arg10[%c5_179, %c0_180, %c0_181] : memref<8x16x16xf32, #tpu.memory_space<vmem>>, vector<1x16x16xf32>
    %243 = vector.shape_cast %242 : vector<1x16x16xf32> to vector<16x16xf32>
    %244 = vector.shape_cast %241 : vector<16x16xf32> to vector<1x16x16xf32>
    tpu.vector_store %arg10[%c5_179, %c0_180, %c0_181], %244 {strides = array<i32>} : memref<8x16x16xf32, #tpu.memory_space<vmem>>, vector<1x16x16xf32>,
    %c6 = arith.constant 6 : index
    %c0_182 = arith.constant 0 : index
    %c0_183 = arith.constant 0 : index
    %245 = vector.load %arg2[%c6, %c0_182, %c0_183] : memref<8x16x24xbf16, #tpu.memory_space<vmem>>, vector<1x16x24xbf16>
    %246 = vector.shape_cast %245 : vector<1x16x24xbf16> to vector<16x24xbf16>
    %c6_184 = arith.constant 6 : index
    %c0_185 = arith.constant 0 : index
    %c0_186 = arith.constant 0 : index
    %247 = vector.load %arg3[%c6_184, %c0_185, %c0_186] : memref<8x128x24xbf16, #tpu.memory_space<vmem>>, vector<1x128x24xbf16>
    %248 = vector.shape_cast %247 : vector<1x128x24xbf16> to vector<128x24xbf16>
    %cst_187 = arith.constant dense<0.000000e+00> : vector<16x128xf32>
    %249 = tpu.matmul %246, %248, %cst_187 {dimension_numbers = #tpu.dot_dimension_numbers<[1], [1], [0], [0], [0, 0, 1, 0], [], []>} : vector<16x24xbf16>, vector<128x24xbf16>, vector<16x128xf32> -> vector<16x128xf32>
    %250 = arith.addf %249, %4 : vector<16x128xf32>
    %c6_188 = arith.constant 6 : index
    %c0_189 = arith.constant 0 : index
    %c0_190 = arith.constant 0 : index
    %251 = vector.load %arg8[%c6_188, %c0_189, %c0_190] : memref<8x16x1xf32, #tpu.memory_space<vmem>>, vector<1x16x1xf32>
    %252 = vector.shape_cast %251 : vector<1x16x1xf32> to vector<16x1xf32>
    %cst_191 = arith.constant dense<0xFF800000> : vector<16xf32>
    %253 = vector.multi_reduction <maximumf>, %250, %cst_191 [1] : vector<16x128xf32> to vector<16xf32>
    %254 = vector.shape_cast %253 : vector<16xf32> to vector<16x1xf32>
    %255 = arith.maximumf %252, %254 : vector<16x1xf32>
    %256 = arith.subf %252, %255 : vector<16x1xf32>
    %257 = math.exp %256 : vector<16x1xf32>
    %258 = vector.broadcast %255 : vector<16x1xf32> to vector<16x128xf32>
    %259 = arith.subf %250, %258 : vector<16x128xf32>
    %260 = math.exp %259 : vector<16x128xf32>
    %c6_192 = arith.constant 6 : index
    %c0_193 = arith.constant 0 : index
    %c0_194 = arith.constant 0 : index
    %261 = vector.load %arg9[%c6_192, %c0_193, %c0_194] : memref<8x16x1xf32, #tpu.memory_space<vmem>>, vector<1x16x1xf32>
    %262 = vector.shape_cast %261 : vector<1x16x1xf32> to vector<16x1xf32>
    %263 = arith.mulf %257, %262 : vector<16x1xf32>
    %cst_195 = arith.constant dense<0.000000e+00> : vector<16xf32>
    %264 = vector.multi_reduction <add>, %260, %cst_195 [1] : vector<16x128xf32> to vector<16xf32>
    %265 = vector.shape_cast %264 : vector<16xf32> to vector<16x1xf32>
    %266 = arith.addf %263, %265 : vector<16x1xf32>
    %c6_196 = arith.constant 6 : index
    %c0_197 = arith.constant 0 : index
    %c0_198 = arith.constant 0 : index
    %267 = vector.load %arg9[%c6_196, %c0_197, %c0_198] : memref<8x16x1xf32, #tpu.memory_space<vmem>>, vector<1x16x1xf32>
    %268 = vector.shape_cast %267 : vector<1x16x1xf32> to vector<16x1xf32>
    %269 = vector.shape_cast %266 : vector<16x1xf32> to vector<1x16x1xf32>
    tpu.vector_store %arg9[%c6_196, %c0_197, %c0_198], %269 {strides = array<i32>} : memref<8x16x1xf32, #tpu.memory_space<vmem>>, vector<1x16x1xf32>,
    %c6_199 = arith.constant 6 : index
    %c0_200 = arith.constant 0 : index
    %c0_201 = arith.constant 0 : index
    %270 = vector.load %arg8[%c6_199, %c0_200, %c0_201] : memref<8x16x1xf32, #tpu.memory_space<vmem>>, vector<1x16x1xf32>
    %271 = vector.shape_cast %270 : vector<1x16x1xf32> to vector<16x1xf32>
    %272 = vector.shape_cast %255 : vector<16x1xf32> to vector<1x16x1xf32>
    tpu.vector_store %arg8[%c6_199, %c0_200, %c0_201], %272 {strides = array<i32>} : memref<8x16x1xf32, #tpu.memory_space<vmem>>, vector<1x16x1xf32>,
    %c6_202 = arith.constant 6 : index
    %c0_203 = arith.constant 0 : index
    %c0_204 = arith.constant 0 : index
    %273 = vector.load %arg10[%c6_202, %c0_203, %c0_204] : memref<8x16x16xf32, #tpu.memory_space<vmem>>, vector<1x16x16xf32>
    %274 = vector.shape_cast %273 : vector<1x16x16xf32> to vector<16x16xf32>
    %275 = vector.broadcast %257 : vector<16x1xf32> to vector<16x16xf32>
    %276 = arith.mulf %275, %274 : vector<16x16xf32>
    %c6_205 = arith.constant 6 : index
    %c0_206 = arith.constant 0 : index
    %c0_207 = arith.constant 0 : index
    %277 = vector.load %arg4[%c6_205, %c0_206, %c0_207] : memref<8x128x16xbf16, #tpu.memory_space<vmem>>, vector<1x128x16xbf16>
    %278 = vector.shape_cast %277 : vector<1x128x16xbf16> to vector<128x16xbf16>
    %279 = arith.extf %278 : vector<128x16xbf16> to vector<128x16xf32>
    %cst_208 = arith.constant dense<0.000000e+00> : vector<16x16xf32>
    %280 = tpu.matmul %260, %279, %cst_208 {dimension_numbers = #tpu.dot_dimension_numbers<[1], [0], [0], [1], [0, 0, 1, 1], [], []>} : vector<16x128xf32>, vector<128x16xf32>, vector<16x16xf32> -> vector<16x16xf32>
    %281 = arith.addf %276, %280 : vector<16x16xf32>
    %c6_209 = arith.constant 6 : index
    %c0_210 = arith.constant 0 : index
    %c0_211 = arith.constant 0 : index
    %282 = vector.load %arg10[%c6_209, %c0_210, %c0_211] : memref<8x16x16xf32, #tpu.memory_space<vmem>>, vector<1x16x16xf32>
    %283 = vector.shape_cast %282 : vector<1x16x16xf32> to vector<16x16xf32>
    %284 = vector.shape_cast %281 : vector<16x16xf32> to vector<1x16x16xf32>
    tpu.vector_store %arg10[%c6_209, %c0_210, %c0_211], %284 {strides = array<i32>} : memref<8x16x16xf32, #tpu.memory_space<vmem>>, vector<1x16x16xf32>,
    %c7 = arith.constant 7 : index
    %c0_212 = arith.constant 0 : index
    %c0_213 = arith.constant 0 : index
    %285 = vector.load %arg2[%c7, %c0_212, %c0_213] : memref<8x16x24xbf16, #tpu.memory_space<vmem>>, vector<1x16x24xbf16>
    %286 = vector.shape_cast %285 : vector<1x16x24xbf16> to vector<16x24xbf16>
    %c7_214 = arith.constant 7 : index
    %c0_215 = arith.constant 0 : index
    %c0_216 = arith.constant 0 : index
    %287 = vector.load %arg3[%c7_214, %c0_215, %c0_216] : memref<8x128x24xbf16, #tpu.memory_space<vmem>>, vector<1x128x24xbf16>
    %288 = vector.shape_cast %287 : vector<1x128x24xbf16> to vector<128x24xbf16>
    %cst_217 = arith.constant dense<0.000000e+00> : vector<16x128xf32>
    %289 = tpu.matmul %286, %288, %cst_217 {dimension_numbers = #tpu.dot_dimension_numbers<[1], [1], [0], [0], [0, 0, 1, 0], [], []>} : vector<16x24xbf16>, vector<128x24xbf16>, vector<16x128xf32> -> vector<16x128xf32>
    %290 = arith.addf %289, %4 : vector<16x128xf32>
    %c7_218 = arith.constant 7 : index
    %c0_219 = arith.constant 0 : index
    %c0_220 = arith.constant 0 : index
    %291 = vector.load %arg8[%c7_218, %c0_219, %c0_220] : memref<8x16x1xf32, #tpu.memory_space<vmem>>, vector<1x16x1xf32>
    %292 = vector.shape_cast %291 : vector<1x16x1xf32> to vector<16x1xf32>
    %cst_221 = arith.constant dense<0xFF800000> : vector<16xf32>
    %293 = vector.multi_reduction <maximumf>, %290, %cst_221 [1] : vector<16x128xf32> to vector<16xf32>
    %294 = vector.shape_cast %293 : vector<16xf32> to vector<16x1xf32>
    %295 = arith.maximumf %292, %294 : vector<16x1xf32>
    %296 = arith.subf %292, %295 : vector<16x1xf32>
    %297 = math.exp %296 : vector<16x1xf32>
    %298 = vector.broadcast %295 : vector<16x1xf32> to vector<16x128xf32>
    %299 = arith.subf %290, %298 : vector<16x128xf32>
    %300 = math.exp %299 : vector<16x128xf32>
    %c7_222 = arith.constant 7 : index
    %c0_223 = arith.constant 0 : index
    %c0_224 = arith.constant 0 : index
    %301 = vector.load %arg9[%c7_222, %c0_223, %c0_224] : memref<8x16x1xf32, #tpu.memory_space<vmem>>, vector<1x16x1xf32>
    %302 = vector.shape_cast %301 : vector<1x16x1xf32> to vector<16x1xf32>
    %303 = arith.mulf %297, %302 : vector<16x1xf32>
    %cst_225 = arith.constant dense<0.000000e+00> : vector<16xf32>
    %304 = vector.multi_reduction <add>, %300, %cst_225 [1] : vector<16x128xf32> to vector<16xf32>
    %305 = vector.shape_cast %304 : vector<16xf32> to vector<16x1xf32>
    %306 = arith.addf %303, %305 : vector<16x1xf32>
    %c7_226 = arith.constant 7 : index
    %c0_227 = arith.constant 0 : index
    %c0_228 = arith.constant 0 : index
    %307 = vector.load %arg9[%c7_226, %c0_227, %c0_228] : memref<8x16x1xf32, #tpu.memory_space<vmem>>, vector<1x16x1xf32>
    %308 = vector.shape_cast %307 : vector<1x16x1xf32> to vector<16x1xf32>
    %309 = vector.shape_cast %306 : vector<16x1xf32> to vector<1x16x1xf32>
    tpu.vector_store %arg9[%c7_226, %c0_227, %c0_228], %309 {strides = array<i32>} : memref<8x16x1xf32, #tpu.memory_space<vmem>>, vector<1x16x1xf32>,
    %c7_229 = arith.constant 7 : index
    %c0_230 = arith.constant 0 : index
    %c0_231 = arith.constant 0 : index
    %310 = vector.load %arg8[%c7_229, %c0_230, %c0_231] : memref<8x16x1xf32, #tpu.memory_space<vmem>>, vector<1x16x1xf32>
    %311 = vector.shape_cast %310 : vector<1x16x1xf32> to vector<16x1xf32>
    %312 = vector.shape_cast %295 : vector<16x1xf32> to vector<1x16x1xf32>
    tpu.vector_store %arg8[%c7_229, %c0_230, %c0_231], %312 {strides = array<i32>} : memref<8x16x1xf32, #tpu.memory_space<vmem>>, vector<1x16x1xf32>,
    %c7_232 = arith.constant 7 : index
    %c0_233 = arith.constant 0 : index
    %c0_234 = arith.constant 0 : index
    %313 = vector.load %arg10[%c7_232, %c0_233, %c0_234] : memref<8x16x16xf32, #tpu.memory_space<vmem>>, vector<1x16x16xf32>
    %314 = vector.shape_cast %313 : vector<1x16x16xf32> to vector<16x16xf32>
    %315 = vector.broadcast %297 : vector<16x1xf32> to vector<16x16xf32>
    %316 = arith.mulf %315, %314 : vector<16x16xf32>
    %c7_235 = arith.constant 7 : index
    %c0_236 = arith.constant 0 : index
    %c0_237 = arith.constant 0 : index
    %317 = vector.load %arg4[%c7_235, %c0_236, %c0_237] : memref<8x128x16xbf16, #tpu.memory_space<vmem>>, vector<1x128x16xbf16>
    %318 = vector.shape_cast %317 : vector<1x128x16xbf16> to vector<128x16xbf16>
    %319 = arith.extf %318 : vector<128x16xbf16> to vector<128x16xf32>
    %cst_238 = arith.constant dense<0.000000e+00> : vector<16x16xf32>
    %320 = tpu.matmul %300, %319, %cst_238 {dimension_numbers = #tpu.dot_dimension_numbers<[1], [0], [0], [1], [0, 0, 1, 1], [], []>} : vector<16x128xf32>, vector<128x16xf32>, vector<16x16xf32> -> vector<16x16xf32>
    %321 = arith.addf %316, %320 : vector<16x16xf32>
    %c7_239 = arith.constant 7 : index
    %c0_240 = arith.constant 0 : index
    %c0_241 = arith.constant 0 : index
    %322 = vector.load %arg10[%c7_239, %c0_240, %c0_241] : memref<8x16x16xf32, #tpu.memory_space<vmem>>, vector<1x16x16xf32>
    %323 = vector.shape_cast %322 : vector<1x16x16xf32> to vector<16x16xf32>
    %324 = vector.shape_cast %321 : vector<16x16xf32> to vector<1x16x16xf32>
    tpu.vector_store %arg10[%c7_239, %c0_240, %c0_241], %324 {strides = array<i32>} : memref<8x16x16xf32, #tpu.memory_space<vmem>>, vector<1x16x16xf32>,
    %c0_i32_242 = arith.constant 0 : i32
    %325 = arith.cmpi eq, %arg1, %c0_i32_242 : i32
    %326 = arith.extui %325 : i1 to i32
    %c0_i32_243 = arith.constant 0 : i32
    %327 = arith.cmpi ne, %326, %c0_i32_243 : i32
    scf.if %327 {
      %cst_244 = arith.constant 0.000000e+00 : f32
      %328 = vector.broadcast %cst_244 : f32 to vector<16x128xf32>
      %c0_245 = arith.constant 0 : index
      %c0_246 = arith.constant 0 : index
      %c0_247 = arith.constant 0 : index
      %329 = vector.load %arg9[%c0_245, %c0_246, %c0_247] : memref<8x16x1xf32, #tpu.memory_space<vmem>>, vector<1x16x1xf32>
      %330 = vector.shape_cast %329 : vector<1x16x1xf32> to vector<16x1xf32>
      %331 = tpu.reciprocal %330 {approx = true} : vector<16x1xf32> -> vector<16x1xf32>
      %c0_248 = arith.constant 0 : index
      %c0_249 = arith.constant 0 : index
      %c0_250 = arith.constant 0 : index
      %332 = vector.load %arg8[%c0_248, %c0_249, %c0_250] : memref<8x16x1xf32, #tpu.memory_space<vmem>>, vector<1x16x1xf32>
      %333 = vector.shape_cast %332 : vector<1x16x1xf32> to vector<16x1xf32>
      %cst_251 = arith.constant -5.000000e+29 : f32
      %334 = vector.broadcast %cst_251 : f32 to vector<16x1xf32>
      %335 = arith.cmpf ogt, %333, %334 : vector<16x1xf32>
      %cst_252 = arith.constant 0.000000e+00 : f32
      %336 = vector.broadcast %cst_252 : f32 to vector<16x1xf32>
      %337 = arith.select %335, %331, %336 : vector<16x1xi1>, vector<16x1xf32>
      %c0_253 = arith.constant 0 : index
      %c0_254 = arith.constant 0 : index
      %c0_255 = arith.constant 0 : index
      %338 = vector.load %arg10[%c0_253, %c0_254, %c0_255] : memref<8x16x16xf32, #tpu.memory_space<vmem>>, vector<1x16x16xf32>
      %339 = vector.shape_cast %338 : vector<1x16x16xf32> to vector<16x16xf32>
      %340 = vector.broadcast %337 : vector<16x1xf32> to vector<16x16xf32>
      %341 = arith.mulf %339, %340 : vector<16x16xf32>
      %c0_256 = arith.constant 0 : index
      %c0_257 = arith.constant 0 : index
      %c0_258 = arith.constant 0 : index
      %342 = vector.load %arg6[%c0_256, %c0_257, %c0_258] : memref<8x16x128xf32, #tpu.memory_space<vmem>>, vector<1x16x128xf32>
      %343 = vector.shape_cast %342 : vector<1x16x128xf32> to vector<16x128xf32>
      %cst_259 = arith.constant dense<0.000000e+00> : vector<16x128xf32>
      %344 = tpu.matmul %341, %343, %cst_259 {dimension_numbers = #tpu.dot_dimension_numbers<[1], [0], [0], [1], [0, 0, 1, 1], [], []>} : vector<16x16xf32>, vector<16x128xf32>, vector<16x128xf32> -> vector<16x128xf32>
      %345 = arith.addf %328, %344 : vector<16x128xf32>
      %c1_260 = arith.constant 1 : index
      %c0_261 = arith.constant 0 : index
      %c0_262 = arith.constant 0 : index
      %346 = vector.load %arg9[%c1_260, %c0_261, %c0_262] : memref<8x16x1xf32, #tpu.memory_space<vmem>>, vector<1x16x1xf32>
      %347 = vector.shape_cast %346 : vector<1x16x1xf32> to vector<16x1xf32>
      %348 = tpu.reciprocal %347 {approx = true} : vector<16x1xf32> -> vector<16x1xf32>
      %c1_263 = arith.constant 1 : index
      %c0_264 = arith.constant 0 : index
      %c0_265 = arith.constant 0 : index
      %349 = vector.load %arg8[%c1_263, %c0_264, %c0_265] : memref<8x16x1xf32, #tpu.memory_space<vmem>>, vector<1x16x1xf32>
      %350 = vector.shape_cast %349 : vector<1x16x1xf32> to vector<16x1xf32>
      %cst_266 = arith.constant -5.000000e+29 : f32
      %351 = vector.broadcast %cst_266 : f32 to vector<16x1xf32>
      %352 = arith.cmpf ogt, %350, %351 : vector<16x1xf32>
      %cst_267 = arith.constant 0.000000e+00 : f32
      %353 = vector.broadcast %cst_267 : f32 to vector<16x1xf32>
      %354 = arith.select %352, %348, %353 : vector<16x1xi1>, vector<16x1xf32>
      %c1_268 = arith.constant 1 : index
      %c0_269 = arith.constant 0 : index
      %c0_270 = arith.constant 0 : index
      %355 = vector.load %arg10[%c1_268, %c0_269, %c0_270] : memref<8x16x16xf32, #tpu.memory_space<vmem>>, vector<1x16x16xf32>
      %356 = vector.shape_cast %355 : vector<1x16x16xf32> to vector<16x16xf32>
      %357 = vector.broadcast %354 : vector<16x1xf32> to vector<16x16xf32>
      %358 = arith.mulf %356, %357 : vector<16x16xf32>
      %c1_271 = arith.constant 1 : index
      %c0_272 = arith.constant 0 : index
      %c0_273 = arith.constant 0 : index
      %359 = vector.load %arg6[%c1_271, %c0_272, %c0_273] : memref<8x16x128xf32, #tpu.memory_space<vmem>>, vector<1x16x128xf32>
      %360 = vector.shape_cast %359 : vector<1x16x128xf32> to vector<16x128xf32>
      %cst_274 = arith.constant dense<0.000000e+00> : vector<16x128xf32>
      %361 = tpu.matmul %358, %360, %cst_274 {dimension_numbers = #tpu.dot_dimension_numbers<[1], [0], [0], [1], [0, 0, 1, 1], [], []>} : vector<16x16xf32>, vector<16x128xf32>, vector<16x128xf32> -> vector<16x128xf32>
      %362 = arith.addf %345, %361 : vector<16x128xf32>
      %c2_275 = arith.constant 2 : index
      %c0_276 = arith.constant 0 : index
      %c0_277 = arith.constant 0 : index
      %363 = vector.load %arg9[%c2_275, %c0_276, %c0_277] : memref<8x16x1xf32, #tpu.memory_space<vmem>>, vector<1x16x1xf32>
      %364 = vector.shape_cast %363 : vector<1x16x1xf32> to vector<16x1xf32>
      %365 = tpu.reciprocal %364 {approx = true} : vector<16x1xf32> -> vector<16x1xf32>
      %c2_278 = arith.constant 2 : index
      %c0_279 = arith.constant 0 : index
      %c0_280 = arith.constant 0 : index
      %366 = vector.load %arg8[%c2_278, %c0_279, %c0_280] : memref<8x16x1xf32, #tpu.memory_space<vmem>>, vector<1x16x1xf32>
      %367 = vector.shape_cast %366 : vector<1x16x1xf32> to vector<16x1xf32>
      %cst_281 = arith.constant -5.000000e+29 : f32
      %368 = vector.broadcast %cst_281 : f32 to vector<16x1xf32>
      %369 = arith.cmpf ogt, %367, %368 : vector<16x1xf32>
      %cst_282 = arith.constant 0.000000e+00 : f32
      %370 = vector.broadcast %cst_282 : f32 to vector<16x1xf32>
      %371 = arith.select %369, %365, %370 : vector<16x1xi1>, vector<16x1xf32>
      %c2_283 = arith.constant 2 : index
      %c0_284 = arith.constant 0 : index
      %c0_285 = arith.constant 0 : index
      %372 = vector.load %arg10[%c2_283, %c0_284, %c0_285] : memref<8x16x16xf32, #tpu.memory_space<vmem>>, vector<1x16x16xf32>
      %373 = vector.shape_cast %372 : vector<1x16x16xf32> to vector<16x16xf32>
      %374 = vector.broadcast %371 : vector<16x1xf32> to vector<16x16xf32>
      %375 = arith.mulf %373, %374 : vector<16x16xf32>
      %c2_286 = arith.constant 2 : index
      %c0_287 = arith.constant 0 : index
      %c0_288 = arith.constant 0 : index
      %376 = vector.load %arg6[%c2_286, %c0_287, %c0_288] : memref<8x16x128xf32, #tpu.memory_space<vmem>>, vector<1x16x128xf32>
      %377 = vector.shape_cast %376 : vector<1x16x128xf32> to vector<16x128xf32>
      %cst_289 = arith.constant dense<0.000000e+00> : vector<16x128xf32>
      %378 = tpu.matmul %375, %377, %cst_289 {dimension_numbers = #tpu.dot_dimension_numbers<[1], [0], [0], [1], [0, 0, 1, 1], [], []>} : vector<16x16xf32>, vector<16x128xf32>, vector<16x128xf32> -> vector<16x128xf32>
      %379 = arith.addf %362, %378 : vector<16x128xf32>
      %c3_290 = arith.constant 3 : index
      %c0_291 = arith.constant 0 : index
      %c0_292 = arith.constant 0 : index
      %380 = vector.load %arg9[%c3_290, %c0_291, %c0_292] : memref<8x16x1xf32, #tpu.memory_space<vmem>>, vector<1x16x1xf32>
      %381 = vector.shape_cast %380 : vector<1x16x1xf32> to vector<16x1xf32>
      %382 = tpu.reciprocal %381 {approx = true} : vector<16x1xf32> -> vector<16x1xf32>
      %c3_293 = arith.constant 3 : index
      %c0_294 = arith.constant 0 : index
      %c0_295 = arith.constant 0 : index
      %383 = vector.load %arg8[%c3_293, %c0_294, %c0_295] : memref<8x16x1xf32, #tpu.memory_space<vmem>>, vector<1x16x1xf32>
      %384 = vector.shape_cast %383 : vector<1x16x1xf32> to vector<16x1xf32>
      %cst_296 = arith.constant -5.000000e+29 : f32
      %385 = vector.broadcast %cst_296 : f32 to vector<16x1xf32>
      %386 = arith.cmpf ogt, %384, %385 : vector<16x1xf32>
      %cst_297 = arith.constant 0.000000e+00 : f32
      %387 = vector.broadcast %cst_297 : f32 to vector<16x1xf32>
      %388 = arith.select %386, %382, %387 : vector<16x1xi1>, vector<16x1xf32>
      %c3_298 = arith.constant 3 : index
      %c0_299 = arith.constant 0 : index
      %c0_300 = arith.constant 0 : index
      %389 = vector.load %arg10[%c3_298, %c0_299, %c0_300] : memref<8x16x16xf32, #tpu.memory_space<vmem>>, vector<1x16x16xf32>
      %390 = vector.shape_cast %389 : vector<1x16x16xf32> to vector<16x16xf32>
      %391 = vector.broadcast %388 : vector<16x1xf32> to vector<16x16xf32>
      %392 = arith.mulf %390, %391 : vector<16x16xf32>
      %c3_301 = arith.constant 3 : index
      %c0_302 = arith.constant 0 : index
      %c0_303 = arith.constant 0 : index
      %393 = vector.load %arg6[%c3_301, %c0_302, %c0_303] : memref<8x16x128xf32, #tpu.memory_space<vmem>>, vector<1x16x128xf32>
      %394 = vector.shape_cast %393 : vector<1x16x128xf32> to vector<16x128xf32>
      %cst_304 = arith.constant dense<0.000000e+00> : vector<16x128xf32>
      %395 = tpu.matmul %392, %394, %cst_304 {dimension_numbers = #tpu.dot_dimension_numbers<[1], [0], [0], [1], [0, 0, 1, 1], [], []>} : vector<16x16xf32>, vector<16x128xf32>, vector<16x128xf32> -> vector<16x128xf32>
      %396 = arith.addf %379, %395 : vector<16x128xf32>
      %c4_305 = arith.constant 4 : index
      %c0_306 = arith.constant 0 : index
      %c0_307 = arith.constant 0 : index
      %397 = vector.load %arg9[%c4_305, %c0_306, %c0_307] : memref<8x16x1xf32, #tpu.memory_space<vmem>>, vector<1x16x1xf32>
      %398 = vector.shape_cast %397 : vector<1x16x1xf32> to vector<16x1xf32>
      %399 = tpu.reciprocal %398 {approx = true} : vector<16x1xf32> -> vector<16x1xf32>
      %c4_308 = arith.constant 4 : index
      %c0_309 = arith.constant 0 : index
      %c0_310 = arith.constant 0 : index
      %400 = vector.load %arg8[%c4_308, %c0_309, %c0_310] : memref<8x16x1xf32, #tpu.memory_space<vmem>>, vector<1x16x1xf32>
      %401 = vector.shape_cast %400 : vector<1x16x1xf32> to vector<16x1xf32>
      %cst_311 = arith.constant -5.000000e+29 : f32
      %402 = vector.broadcast %cst_311 : f32 to vector<16x1xf32>
      %403 = arith.cmpf ogt, %401, %402 : vector<16x1xf32>
      %cst_312 = arith.constant 0.000000e+00 : f32
      %404 = vector.broadcast %cst_312 : f32 to vector<16x1xf32>
      %405 = arith.select %403, %399, %404 : vector<16x1xi1>, vector<16x1xf32>
      %c4_313 = arith.constant 4 : index
      %c0_314 = arith.constant 0 : index
      %c0_315 = arith.constant 0 : index
      %406 = vector.load %arg10[%c4_313, %c0_314, %c0_315] : memref<8x16x16xf32, #tpu.memory_space<vmem>>, vector<1x16x16xf32>
      %407 = vector.shape_cast %406 : vector<1x16x16xf32> to vector<16x16xf32>
      %408 = vector.broadcast %405 : vector<16x1xf32> to vector<16x16xf32>
      %409 = arith.mulf %407, %408 : vector<16x16xf32>
      %c4_316 = arith.constant 4 : index
      %c0_317 = arith.constant 0 : index
      %c0_318 = arith.constant 0 : index
      %410 = vector.load %arg6[%c4_316, %c0_317, %c0_318] : memref<8x16x128xf32, #tpu.memory_space<vmem>>, vector<1x16x128xf32>
      %411 = vector.shape_cast %410 : vector<1x16x128xf32> to vector<16x128xf32>
      %cst_319 = arith.constant dense<0.000000e+00> : vector<16x128xf32>
      %412 = tpu.matmul %409, %411, %cst_319 {dimension_numbers = #tpu.dot_dimension_numbers<[1], [0], [0], [1], [0, 0, 1, 1], [], []>} : vector<16x16xf32>, vector<16x128xf32>, vector<16x128xf32> -> vector<16x128xf32>
      %413 = arith.addf %396, %412 : vector<16x128xf32>
      %c5_320 = arith.constant 5 : index
      %c0_321 = arith.constant 0 : index
      %c0_322 = arith.constant 0 : index
      %414 = vector.load %arg9[%c5_320, %c0_321, %c0_322] : memref<8x16x1xf32, #tpu.memory_space<vmem>>, vector<1x16x1xf32>
      %415 = vector.shape_cast %414 : vector<1x16x1xf32> to vector<16x1xf32>
      %416 = tpu.reciprocal %415 {approx = true} : vector<16x1xf32> -> vector<16x1xf32>
      %c5_323 = arith.constant 5 : index
      %c0_324 = arith.constant 0 : index
      %c0_325 = arith.constant 0 : index
      %417 = vector.load %arg8[%c5_323, %c0_324, %c0_325] : memref<8x16x1xf32, #tpu.memory_space<vmem>>, vector<1x16x1xf32>
      %418 = vector.shape_cast %417 : vector<1x16x1xf32> to vector<16x1xf32>
      %cst_326 = arith.constant -5.000000e+29 : f32
      %419 = vector.broadcast %cst_326 : f32 to vector<16x1xf32>
      %420 = arith.cmpf ogt, %418, %419 : vector<16x1xf32>
      %cst_327 = arith.constant 0.000000e+00 : f32
      %421 = vector.broadcast %cst_327 : f32 to vector<16x1xf32>
      %422 = arith.select %420, %416, %421 : vector<16x1xi1>, vector<16x1xf32>
      %c5_328 = arith.constant 5 : index
      %c0_329 = arith.constant 0 : index
      %c0_330 = arith.constant 0 : index
      %423 = vector.load %arg10[%c5_328, %c0_329, %c0_330] : memref<8x16x16xf32, #tpu.memory_space<vmem>>, vector<1x16x16xf32>
      %424 = vector.shape_cast %423 : vector<1x16x16xf32> to vector<16x16xf32>
      %425 = vector.broadcast %422 : vector<16x1xf32> to vector<16x16xf32>
      %426 = arith.mulf %424, %425 : vector<16x16xf32>
      %c5_331 = arith.constant 5 : index
      %c0_332 = arith.constant 0 : index
      %c0_333 = arith.constant 0 : index
      %427 = vector.load %arg6[%c5_331, %c0_332, %c0_333] : memref<8x16x128xf32, #tpu.memory_space<vmem>>, vector<1x16x128xf32>
      %428 = vector.shape_cast %427 : vector<1x16x128xf32> to vector<16x128xf32>
      %cst_334 = arith.constant dense<0.000000e+00> : vector<16x128xf32>
      %429 = tpu.matmul %426, %428, %cst_334 {dimension_numbers = #tpu.dot_dimension_numbers<[1], [0], [0], [1], [0, 0, 1, 1], [], []>} : vector<16x16xf32>, vector<16x128xf32>, vector<16x128xf32> -> vector<16x128xf32>
      %430 = arith.addf %413, %429 : vector<16x128xf32>
      %c6_335 = arith.constant 6 : index
      %c0_336 = arith.constant 0 : index
      %c0_337 = arith.constant 0 : index
      %431 = vector.load %arg9[%c6_335, %c0_336, %c0_337] : memref<8x16x1xf32, #tpu.memory_space<vmem>>, vector<1x16x1xf32>
      %432 = vector.shape_cast %431 : vector<1x16x1xf32> to vector<16x1xf32>
      %433 = tpu.reciprocal %432 {approx = true} : vector<16x1xf32> -> vector<16x1xf32>
      %c6_338 = arith.constant 6 : index
      %c0_339 = arith.constant 0 : index
      %c0_340 = arith.constant 0 : index
      %434 = vector.load %arg8[%c6_338, %c0_339, %c0_340] : memref<8x16x1xf32, #tpu.memory_space<vmem>>, vector<1x16x1xf32>
      %435 = vector.shape_cast %434 : vector<1x16x1xf32> to vector<16x1xf32>
      %cst_341 = arith.constant -5.000000e+29 : f32
      %436 = vector.broadcast %cst_341 : f32 to vector<16x1xf32>
      %437 = arith.cmpf ogt, %435, %436 : vector<16x1xf32>
      %cst_342 = arith.constant 0.000000e+00 : f32
      %438 = vector.broadcast %cst_342 : f32 to vector<16x1xf32>
      %439 = arith.select %437, %433, %438 : vector<16x1xi1>, vector<16x1xf32>
      %c6_343 = arith.constant 6 : index
      %c0_344 = arith.constant 0 : index
      %c0_345 = arith.constant 0 : index
      %440 = vector.load %arg10[%c6_343, %c0_344, %c0_345] : memref<8x16x16xf32, #tpu.memory_space<vmem>>, vector<1x16x16xf32>
      %441 = vector.shape_cast %440 : vector<1x16x16xf32> to vector<16x16xf32>
      %442 = vector.broadcast %439 : vector<16x1xf32> to vector<16x16xf32>
      %443 = arith.mulf %441, %442 : vector<16x16xf32>
      %c6_346 = arith.constant 6 : index
      %c0_347 = arith.constant 0 : index
      %c0_348 = arith.constant 0 : index
      %444 = vector.load %arg6[%c6_346, %c0_347, %c0_348] : memref<8x16x128xf32, #tpu.memory_space<vmem>>, vector<1x16x128xf32>
      %445 = vector.shape_cast %444 : vector<1x16x128xf32> to vector<16x128xf32>
      %cst_349 = arith.constant dense<0.000000e+00> : vector<16x128xf32>
      %446 = tpu.matmul %443, %445, %cst_349 {dimension_numbers = #tpu.dot_dimension_numbers<[1], [0], [0], [1], [0, 0, 1, 1], [], []>} : vector<16x16xf32>, vector<16x128xf32>, vector<16x128xf32> -> vector<16x128xf32>
      %447 = arith.addf %430, %446 : vector<16x128xf32>
      %c7_350 = arith.constant 7 : index
      %c0_351 = arith.constant 0 : index
      %c0_352 = arith.constant 0 : index
      %448 = vector.load %arg9[%c7_350, %c0_351, %c0_352] : memref<8x16x1xf32, #tpu.memory_space<vmem>>, vector<1x16x1xf32>
      %449 = vector.shape_cast %448 : vector<1x16x1xf32> to vector<16x1xf32>
      %450 = tpu.reciprocal %449 {approx = true} : vector<16x1xf32> -> vector<16x1xf32>
      %c7_353 = arith.constant 7 : index
      %c0_354 = arith.constant 0 : index
      %c0_355 = arith.constant 0 : index
      %451 = vector.load %arg8[%c7_353, %c0_354, %c0_355] : memref<8x16x1xf32, #tpu.memory_space<vmem>>, vector<1x16x1xf32>
      %452 = vector.shape_cast %451 : vector<1x16x1xf32> to vector<16x1xf32>
      %cst_356 = arith.constant -5.000000e+29 : f32
      %453 = vector.broadcast %cst_356 : f32 to vector<16x1xf32>
      %454 = arith.cmpf ogt, %452, %453 : vector<16x1xf32>
      %cst_357 = arith.constant 0.000000e+00 : f32
      %455 = vector.broadcast %cst_357 : f32 to vector<16x1xf32>
      %456 = arith.select %454, %450, %455 : vector<16x1xi1>, vector<16x1xf32>
      %c7_358 = arith.constant 7 : index
      %c0_359 = arith.constant 0 : index
      %c0_360 = arith.constant 0 : index
      %457 = vector.load %arg10[%c7_358, %c0_359, %c0_360] : memref<8x16x16xf32, #tpu.memory_space<vmem>>, vector<1x16x16xf32>
      %458 = vector.shape_cast %457 : vector<1x16x16xf32> to vector<16x16xf32>
      %459 = vector.broadcast %456 : vector<16x1xf32> to vector<16x16xf32>
      %460 = arith.mulf %458, %459 : vector<16x16xf32>
      %c7_361 = arith.constant 7 : index
      %c0_362 = arith.constant 0 : index
      %c0_363 = arith.constant 0 : index
      %461 = vector.load %arg6[%c7_361, %c0_362, %c0_363] : memref<8x16x128xf32, #tpu.memory_space<vmem>>, vector<1x16x128xf32>
      %462 = vector.shape_cast %461 : vector<1x16x128xf32> to vector<16x128xf32>
      %cst_364 = arith.constant dense<0.000000e+00> : vector<16x128xf32>
      %463 = tpu.matmul %460, %462, %cst_364 {dimension_numbers = #tpu.dot_dimension_numbers<[1], [0], [0], [1], [0, 0, 1, 1], [], []>} : vector<16x16xf32>, vector<16x128xf32>, vector<16x128xf32> -> vector<16x128xf32>
      %464 = arith.addf %447, %463 : vector<16x128xf32>
      %c0_365 = arith.constant 0 : index
      %c0_366 = arith.constant 0 : index
      %465 = vector.load %arg7[%c0_365, %c0_366] : memref<16x128xf32, #tpu.memory_space<vmem>>, vector<16x128xf32>
      tpu.vector_store %arg7[%c0_365, %c0_366], %464 {strides = array<i32>} : memref<16x128xf32, #tpu.memory_space<vmem>>, vector<16x128xf32>,
    } else {
    }
    return
  }
  func.func @transform_0(%arg0: i32, %arg1: i32) -> (i32, i32, i32) {
    %c0_i32 = arith.constant 0 : i32
    %c0_i32_0 = arith.constant 0 : i32
    %c0_i32_1 = arith.constant 0 : i32
    return %c0_i32, %arg0, %c0_i32_0 : i32, i32, i32
  }
  func.func @transform_1(%arg0: i32, %arg1: i32) -> (i32, i32, i32) {
    %c0_i32 = arith.constant 0 : i32
    %c0_i32_0 = arith.constant 0 : i32
    %c0_i32_1 = arith.constant 0 : i32
    return %c0_i32, %arg1, %c0_i32_0 : i32, i32, i32
  }
  func.func @transform_2(%arg0: i32, %arg1: i32) -> (i32, i32, i32) {
    %c0_i32 = arith.constant 0 : i32
    %c0_i32_0 = arith.constant 0 : i32
    %c0_i32_1 = arith.constant 0 : i32
    return %c0_i32, %arg1, %c0_i32_0 : i32, i32, i32
  }
  func.func @transform_3(%arg0: i32, %arg1: i32) -> (i32, i32) {
    %c0_i32 = arith.constant 0 : i32
    return %arg0, %arg1 : i32, i32
  }
  func.func @transform_4(%arg0: i32, %arg1: i32) -> (i32, i32, i32) {
    %c0_i32 = arith.constant 0 : i32
    %c0_i32_0 = arith.constant 0 : i32
    %c0_i32_1 = arith.constant 0 : i32
    %c0_i32_2 = arith.constant 0 : i32
    return %c0_i32, %c0_i32_0, %c0_i32_1 : i32, i32, i32
  }
  func.func @transform_5(%arg0: i32, %arg1: i32) -> (i32, i32) {
    %c0_i32 = arith.constant 0 : i32
    %c0_i32_0 = arith.constant 0 : i32
    return %arg0, %c0_i32 : i32, i32
  }
}

</mosaic_0001>

<bundles_post_ra>
// kernel: point_set_attention_pallas.2
= control target key start
LH: loop header
LB: loop body
LE: loop exit
PB: predicated region body
PF: predicated region fallthrough
CT: control target
= control target key end

     0   :  { %s351_s9 = smov 0   ;;  %s391_s0 = inlined_call_operand.vmem [shape: f32[128,32], index: 0, kind: input, shape index: {}]   ;;  %s392_s1 = inlined_call_operand.vmem [shape: f32[32,128], index: 1, kind: input, shape index: {}]   ;;  %s393_s2 = inlined_call_operand.vmem [shape: f32[128,128], index: 2, kind: output, shape index: {}]  }
   0x1 LB: > { %s289_s10 = sadd.s32 4294967295, %s334_s9   ;;  %p293_p0 = scmp.ge.s32.totalorder %s334_s9, 1  ;;  %s334_s9 = sphi %s351_s9, %s12_s9  }
   0x2   : > { %p113_p1 = scmp.lt.s32.totalorder %s334_s9, 3 }
   0x4   : > { %p114_p2 = pnand %p293_p0, %p113_p1 }
   0x5   : > { %s294_s15 = sshll.u32 (!%p114_p2), %s289_s10, 3 }
   0x6   : > { %117 = sbr.rel (%p114_p2) target bundleno = 161 (0xa1), region = 28  ;;  %p136_p3 = scmp.lt.s32.totalorder (!%p114_p2), %s294_s15, 15 }
   0xb   : > { %v158_v0 = vld [vmem:[%s392_s1 + $0x18] sm:$0xff]  ;;  %v157_v1 = vld [vmem:[%s392_s1 + $0x10] sm:$0xff]  ;;  %v156_v2 = vld [vmem:[%s392_s1 + $0x8] sm:$0xff]  ;;  %s395_s15 = smov (!%p136_p3, %s294_s15), 15  ;;  %vm159_vm0 = vcmask 261120  }
   0xc   : > { %309 = vmatpush.msra.mxu2 %v158_v0  ;;  %310 = vmatpush.msra.mxu3 %v158_v0  ;;  %v155_v3 = vld [vmem:[%s392_s1] sm:$0xff]  ;;  %s295_s20 = sshll.u32 %s395_s15, 3 }
   0xd   : > { %196 = vmatpush.msra.mxu0 %v158_v0  ;;  %308 = vmatpush.msra.mxu1 %v158_v0  ;;  %s139_s23 = scalar_lea.vmem %s391_s0, %s295_s20  ;;  %s145_s26 = scalar_lea.vmem %s393_s2, %s295_s20 }
   0xe   : > { %312 = vmatpush.msra.mxu2 %v157_v1  ;;  %313 = vmatpush.msra.mxu3 %v157_v1  ;;  %v151_v4 = vld [vmem:[%s139_s23 + $0x20] sm:$0xff]  ;;  %v153_v5 = vld [vmem:[%s139_s23 + $0x30] sm:$0xff]  ;;  %v152_v8 = vld [vmem:[%s139_s23 + $0x28] sm:$0xff] }
   0xf   : > { %197 = vmatpush.msra.mxu0 %v157_v1  ;;  %311 = vmatpush.msra.mxu1 %v157_v1  ;;  %v147_v6 = vld [vmem:[%s139_s23] sm:$0xff]  ;;  %v149_v7 = vld [vmem:[%s139_s23 + $0x10] sm:$0xff]  ;;  %v154_v9 = vld [vmem:[%s139_s23 + $0x38] sm:$0xff] }
  0x10   : > { %315 = vmatpush.msra.mxu2 %v156_v2  ;;  %316 = vmatpush.msra.mxu3 %v156_v2  ;;  %v148_v10 = vld [vmem:[%s139_s23 + $0x8] sm:$0xff]  ;;  %v150_v11 = vld [vmem:[%s139_s23 + $0x18] sm:$0xff] }
  0x11   : > { %198 = vmatpush.msra.mxu0 %v156_v2  ;;  %314 = vmatpush.msra.mxu1 %v156_v2 }
  0x12   : > { %318 = vmatpush.msra.mxu2 %v155_v3  ;;  %319 = vmatpush.msra.mxu3 %v155_v3 }
  0x13   : > { %302 = vmatmul.msk.f32.vlgmr.msra.gmra.mxu2 %vm159_vm0, %v151_v4  ;;  %304 = vmatmul.msk.f32.vlgmr.msra.gmra.mxu3 %vm159_vm0, %v153_v5 }
  0x14   : > { %199 = vmatpush.msra.mxu0 %v155_v3  ;;  %317 = vmatpush.msra.mxu1 %v155_v3 }
  0x15   : > { %298 = vmatmul.msk.f32.vlgmr.msra.gmra.mxu0 %vm159_vm0, %v147_v6  ;;  %300 = vmatmul.msk.f32.vlgmr.msra.gmra.mxu1 %vm159_vm0, %v149_v7 }
  0x1b   : > { %303 = vmatmul.msk.f32.gmra.mxu2 %vm159_vm0, %v152_v8  ;;  %305 = vmatmul.msk.f32.gmra.mxu3 %vm159_vm0, %v154_v9 }
  0x1d   : > { %299 = vmatmul.msk.f32.gmra.mxu0 %vm159_vm0, %v148_v10  ;;  %301 = vmatmul.msk.f32.gmra.mxu1 %vm159_vm0, %v150_v11 }
  0x92   : > { %v201_v12 = vpop.f32.mrf.mxu0  ;;  %v207_v13 = vpop.f32.mrf.mxu1 }
  0x93   : > { %225 = vst [vmem:[%s145_s26] sm:$0xff] %v201_v12 }
  0x94   : > { %227 = vst [vmem:[%s145_s26 + $0x10] sm:$0xff] %v207_v13 }
  0x96   : > { %v213_v14 = vpop.f32.mrf.mxu2  ;;  %v219_v15 = vpop.f32.mrf.mxu3 }
  0x97   : > { %229 = vst [vmem:[%s145_s26 + $0x20] sm:$0xff] %v213_v14 }
  0x98   : > { %231 = vst [vmem:[%s145_s26 + $0x30] sm:$0xff] %v219_v15 }
  0x9a   : > { %v204_v16 = vpop.f32.mrf.mxu0  ;;  %v210_v17 = vpop.f32.mrf.mxu1 }
  0x9b   : > { %226 = vst [vmem:[%s145_s26 + $0x8] sm:$0xff] %v204_v16 }
  0x9c   : > { %228 = vst [vmem:[%s145_s26 + $0x18] sm:$0xff] %v210_v17 }
  0x9e   : > { %v216_v18 = vpop.f32.mrf.mxu2  ;;  %v222_v19 = vpop.f32.mrf.mxu3 }
  0x9f   : > { %230 = vst [vmem:[%s145_s26 + $0x28] sm:$0xff] %v216_v18 }
  0xa0   : > { %232 = vst [vmem:[%s145_s26 + $0x38] sm:$0xff] %v222_v19 }
  0xa1 PF: > { %s12_s9 = sadd.s32 1, %s334_s9  }
  0xa2   : > { %p9_p4 = scmp.ge.s32.totalorder %s12_s9, 4  }
  0xa4   :  { %11 = sbr.rel (!%p9_p4) target bundleno = 1 (0x1), region = 58 }

// kernel: point_set_attention_pallas.3
= control target key start
LH: loop header
LB: loop body
LE: loop exit
PB: predicated region body
PF: predicated region fallthrough
CT: control target
= control target key end

     0   :  { %s4063_s18 = smov 0   ;;  %s4065_s19 = smov 0   ;;  %s5190_s0 = inlined_call_operand.vmem [shape: bf16[8,32,24], index: 0, kind: input, shape index: {}]   ;;  %s5191_s1 = inlined_call_operand.vmem [shape: bf16[8,128,24], index: 1, kind: input, shape index: {}]   ;;  %s5192_s2 = inlined_call_operand.vmem [shape: bf16[8,128,16], index: 2, kind: input, shape index: {}]   ;;  %s5193_s3 = inlined_call_operand.vmem [shape: bf16[32,128], index: 3, kind: input, shape index: {}]   ;;  %s5194_s4 = inlined_call_operand.vmem [shape: f32[8,16,128], index: 4, kind: input, shape index: {}]   ;;  %s5195_s5 = inlined_call_operand.vmem [shape: f32[32,128], index: 5, kind: output, shape index: {}]  }
   0x1   :  { %s4067_s20 = smov 0   ;;  %s4069_s21 = smov 0  }
   0x2   :  { %s4071_s22 = smov 0  }
   0x3 LB: > { %s27_s23 = sadd.s32 1, %s4024_s21  ;;  %p41_p1 = scmp.ne.s32.totalorder %s4016_s19, %s4012_s18  ;;  %s4028_s22 = sphi %s4071_s22, %s15_s22   ;;  %s4024_s21 = sphi %s4069_s21, %s5203_s21   ;;  %s4020_s20 = sphi %s4067_s20, %s5202_s20   ;;  %s4016_s19 = sphi %s4065_s19, %s5201_s19   ;;  %s4012_s18 = sphi %s4063_s18, %s5200_s18  }
   0x4   : > { %p29_p0 = scmp.ge.s32.totalorder %s27_s23, 2  ;;  %p42_p2 = scmp.eq.s32.totalorder %s4028_s22, 0 }
   0x5   : > { %s34_s25 = sadd.s32 1, %s4016_s19  ;;  %p2876_p5 = scmp.ge.s32.totalorder %s4028_s22, 2 }
   0x6   : > { %s5205_s23 = smov (%p29_p0, %s27_s23), 0  ;;  %p43_p3 = por %p42_p2, %p41_p1 }
   0x7   : > { %s31_s24 = ssub.s32 %s4024_s21, %s5205_s23  ;;  %215 = sbr.rel (%p2876_p5) target bundleno = 24 (0x18), region = 28 }
   0x8   : > { %p32_p4 = scmp.eq.s32.totalorder %s31_s24, 0 }
   0xa   : > { %s4098_s26 = scalar_select %p32_p4, %s4016_s19, %s34_s25  }
   0xc   : > { %218 = sbr.rel (!%p43_p3) target bundleno = 24 (0x18), region = 32  ;;  %s220_s27 = sand.u32 (%p43_p3), 1, %s4016_s19  }
   0xd   : > { %s3452_s28 = sshll.u32 (%p43_p3), %s4024_s21, 3  ;;  %s2877_s29 = sshll.u32 (%p43_p3), %s220_s27, 6 }
   0xe   : > { %s225_s7 = scalar_lea.vmem (%p43_p3), %s5190_s0, %s3452_s28  ;;  %s222_s8 = scalar_lea.vmem (%p43_p3), [#allocation5], %s2877_s29 }
   0xf   : > { %v242_v0 = vld [vmem:[%s225_s7] sm:$0xff] (%p43_p3)   ;;  %v246_v1 = vld [vmem:[%s225_s7 + $0x10] sm:$0xff] (%p43_p3)  }
  0x10   : > { %v250_v2 = vld [vmem:[%s225_s7 + $0x20] sm:$0xff] (%p43_p3)   ;;  %243 = vst [vmem:[%s222_s8] sm:$0xff] (%p43_p3), %v242_v0   ;;  %v254_v3 = vld [vmem:[%s225_s7 + $0x30] sm:$0xff] (%p43_p3)  }
  0x11   : > { %247 = vst [vmem:[%s222_s8 + $0x8] sm:$0xff] %v246_v1   ;;  %v258_v4 = vld [vmem:[%s225_s7 + $0x40] sm:$0xff]   ;;  %v262_v5 = vld [vmem:[%s225_s7 + $0x50] sm:$0xff]  }
  0x12   : > { %251 = vst [vmem:[%s222_s8 + $0x10] sm:$0xff] %v250_v2   ;;  %v266_v6 = vld [vmem:[%s225_s7 + $0x60] sm:$0xff]   ;;  %v270_v7 = vld [vmem:[%s225_s7 + $0x70] sm:$0xff]  }
  0x13   : > { %255 = vst [vmem:[%s222_s8 + $0x18] sm:$0xff] %v254_v3  }
  0x14   : > { %259 = vst [vmem:[%s222_s8 + $0x20] sm:$0xff] %v258_v4  }
  0x15   : > { %263 = vst [vmem:[%s222_s8 + $0x28] sm:$0xff] %v262_v5  }
  0x16   : > { %267 = vst [vmem:[%s222_s8 + $0x30] sm:$0xff] %v266_v6  }
  0x17   : > { %271 = vst [vmem:[%s222_s8 + $0x38] sm:$0xff] %v270_v7  }
  0x18 PF: > { %p2880_p6 = scmp.ge.s32.totalorder %s4028_s22, 1  ;;  %p340_p7 = scmp.lt.s32.totalorder %s4028_s22, 3 }
  0x1a   : > { %p341_p8 = pnand %p2880_p6, %p340_p7 }
  0x1b   : > { %s347_s13 = sand.u32 (!%p341_p8), 1, %s4012_s18   ;;  %s2882_s7 = sshll.u32 (!%p341_p8), %s4020_s20, 1 }
  0x1c   : > { %344 = sbr.rel (%p341_p8) target bundleno = 2044 (0x7fc), region = 77  ;;  %s2881_s16 = sshll.u32 (!%p341_p8), %s347_s13, 6 }
  0x1d   : > { %s4157_s17 = scalar_lea.vmem (!%p341_p8), [#allocation5], %s2881_s16  ;;  %p406_p9 = scmp.lt.s32.totalorder (!%p341_p8), %s2882_s7, 3 }
  0x21   : > { %v3461_v8 = vld [vmem:[%s5191_s1 + $0x38] sm:$0xff]  ;;  %vm541_vm0 = vcmask 195584   ;;  %v3460_v10 = vld [vmem:[%s5191_s1 + $0x30] sm:$0xff]  ;;  %v3459_v12 = vld [vmem:[%s5191_s1 + $0x28] sm:$0xff]  ;;  %s5207_s7 = smov (!%p406_p9, %s2882_s7), 3  ;;  %vm424_vm1 = vcmask 7168  }
  0x22   : > { %v567_v9 = vsel %vm541_vm0, %v3461_v8, 0  ;;  %v564_v11 = vsel %vm541_vm0, %v3460_v10, 0  ;;  %v561_v13 = vsel %vm541_vm0, %v3459_v12, 0  ;;  %v3458_v14 = vld [vmem:[%s5191_s1 + $0x20] sm:$0xff]  ;;  %v3457_v16 = vld [vmem:[%s5191_s1 + $0x18] sm:$0xff]  ;;  %v3456_v19 = vld [vmem:[%s5191_s1 + $0x10] sm:$0xff] }
  0x23   : > { %569 = vmatpush.bf16.xpose.msra.mxu0 %v567_v9  ;;  %v558_v15 = vsel %vm541_vm0, %v3458_v14, 0  ;;  %v555_v17 = vsel %vm541_vm0, %v3457_v16, 0  ;;  %v3470_v18 = vld [vmem:[%s5191_s1 + $0x78] sm:$0xff]  ;;  %v3469_v21 = vld [vmem:[%s5191_s1 + $0x70] sm:$0xff]  ;;  %v552_v22 = vsel %vm541_vm0, %v3456_v19, 0  ;;  %v3455_v24 = vld [vmem:[%s5191_s1 + $0x8] sm:$0xff] }
  0x24   : > { %v792_v20 = vsel %vm541_vm0, %v3470_v18, 0  ;;  %v789_v23 = vsel %vm541_vm0, %v3469_v21, 0  ;;  %v3468_v25 = vld [vmem:[%s5191_s1 + $0x68] sm:$0xff]  ;;  %v549_v26 = vsel %vm541_vm0, %v3455_v24, 0  ;;  %v3454_v28 = vld [vmem:[%s5191_s1] sm:$0xff]  ;;  %v3466_v33 = vld [vmem:[%s5191_s1 + $0x58] sm:$0xff] }
  0x25   : > { %794 = vmatpush.bf16.xpose.msra.mxu2 %v792_v20  ;;  %v786_v27 = vsel %vm541_vm0, %v3468_v25, 0  ;;  %v3467_v29 = vld [vmem:[%s5191_s1 + $0x60] sm:$0xff]  ;;  %v546_v30 = vsel %vm541_vm0, %v3454_v28, 0  ;;  %v780_v34 = vsel %vm541_vm0, %v3466_v33, 0  ;;  %v3465_v35 = vld [vmem:[%s5191_s1 + $0x50] sm:$0xff]  ;;  %v3464_v37 = vld [vmem:[%s5191_s1 + $0x48] sm:$0xff] }
  0x26   : > { %v783_v31 = vsel %vm541_vm0, %v3467_v29, 0  ;;  %v3453_v32 = vld [vmem:[%s4157_s17] sm:$0xff]  ;;  %v777_v36 = vsel %vm541_vm0, %v3465_v35, 0  ;;  %v774_v38 = vsel %vm541_vm0, %v3464_v37, 0  ;;  %v3462_v41 = vld [vmem:[%s4157_s17 + $0x8] sm:$0xff]  ;;  %v3488_v42 = vld [vmem:[%s5191_s1 + $0xf8] sm:$0xff] }
  0x27   : > { %v3463_v39 = vld [vmem:[%s5191_s1 + $0x40] sm:$0xff]  ;;  %v1246_v43 = vsel %vm541_vm0, %v3488_v42, 0  ;;  %s2883_s10 = sshll.u32 %s5207_s7, 2  ;;  %v3487_v51 = vld [vmem:[%s5191_s1 + $0xf0] sm:$0xff]  ;;  %v4030_v52 = vmov -1e+30  }
  0x28   : > { %v771_v40 = vsel %vm541_vm0, %v3463_v39, 0  ;;  %s412_s13 = scalar_lea.vmem %s5193_s3, %s2883_s10  ;;  %425 = vst.msk [vmem:[#allocation2] sm:$0xff] %vm424_vm1, %v4030_v52  ;;  %v1243_v53 = vsel %vm541_vm0, %v3487_v51, 0  ;;  %v4031_v56 = vmov 0   ;;  %v3486_v57 = vld [vmem:[%s5191_s1 + $0xe8] sm:$0xff]  ;;  %v4032_v59 = vmov 0.0  }
  0x29   : > { %v3526_v44 = vld [vmem:[%s412_s13] sm:$0xff]   ;;  %426 = vst.msk [vmem:[#allocation2 + $0x8] sm:$0xff] %vm424_vm1, %v4030_v52  ;;  %3891 = vset.pattern.permute.xlu1 %v4031_v56  ;;  %3892 = vset.pattern.permute.xlu0 %v4031_v56  ;;  %v1240_v58 = vsel %vm541_vm0, %v3486_v57, 0  ;;  %v3484_v62 = vld [vmem:[%s5191_s1 + $0xd8] sm:$0xff]  ;;  %v3790_v3 = vld [vmem:[%s5192_s2 + $0x30] sm:$0xff]   ;;  %vm457_vm2 = vcmask 130048  }
  0x2a   : > { %v4190_v45 = vunpack.c.l.bf16 %v3526_v44  ;;  %v4196_v48 = vunpack.c.h.bf16 %v3526_v44  ;;  %427 = vst.msk [vmem:[#allocation2 + $0x10] sm:$0xff] %vm424_vm1, %v4030_v52  ;;  %3893 = vset.pattern.permute.xlu2 %v4031_v56  ;;  %v3485_v60 = vld [vmem:[%s5191_s1 + $0xe0] sm:$0xff]  ;;  %v3791_v63 = vld [vmem:[%s5192_s2 + $0x38] sm:$0xff]   ;;  %v1234_v1 = vsel %vm541_vm0, %v3484_v62, 0  ;;  %v3556_v4 = vunpack.c.h.bf16 %v3790_v3  ;;  %v3789_v5 = vld [vmem:[%s5192_s2 + $0x28] sm:$0xff]   ;;  %s2885_s12 = sshll.u32 %s5207_s7, 3 }
  0x2b   : > { %570 = vmatpush.bf16.xpose.msra.mxu0 %v564_v11  ;;  %428 = vst.msk [vmem:[#allocation2 + $0x18] sm:$0xff] %vm424_vm1, %v4030_v52  ;;  %v1237_v61 = vsel %vm541_vm0, %v3485_v60, 0  ;;  %v3560_v0 = vunpack.c.h.bf16 %v3791_v63  ;;  %v3559_v2 = vunpack.c.l.bf16 %v3791_v63  ;;  %v3483_v6 = vld [vmem:[%s5191_s1 + $0xd0] sm:$0xff]  ;;  %v3555_v7 = vunpack.c.l.bf16 %v3790_v3  ;;  %v3788_v9 = vld [vmem:[%s5192_s2 + $0x20] sm:$0xff]   ;;  %v3785_v25 = vld [vmem:[%s5192_s2 + $0x8] sm:$0xff]   ;;  %s418_s14 = scalar_lea.vmem %s5195_s5, %s2885_s12 }
  0x2c   : > { %429 = vst.msk [vmem:[#allocation2 + $0x20] sm:$0xff] %vm424_vm1, %v4030_v52  ;;  %v3552_v8 = vunpack.c.h.bf16 %v3789_v5  ;;  %v1231_v10 = vsel %vm541_vm0, %v3483_v6, 0  ;;  %v3551_v11 = vunpack.c.l.bf16 %v3789_v5  ;;  %v3548_v12 = vunpack.c.h.bf16 %v3788_v9  ;;  %v3786_v20 = vld [vmem:[%s5192_s2 + $0x10] sm:$0xff]   ;;  %v3479_v37 = vld [vmem:[%s5191_s1 + $0xb8] sm:$0xff]  ;;  %v3472_v63 = vld [vmem:[%s5191_s1 + $0x80] sm:$0xff] }
  0x2d   : > { %795 = vmatpush.bf16.xpose.msra.mxu2 %v789_v23  ;;  %430 = vst.msk [vmem:[#allocation2 + $0x28] sm:$0xff] %vm424_vm1, %v4030_v52  ;;  %674 = vmatpush.msra.mxu1 %v3560_v0  ;;  %v3547_v16 = vunpack.c.l.bf16 %v3788_v9  ;;  %v3540_v24 = vunpack.c.h.bf16 %v3786_v20  ;;  %v3539_v28 = vunpack.c.l.bf16 %v3786_v20  ;;  %v3480_v39 = vld [vmem:[%s4157_s17 + $0x18] sm:$0xff]  ;;  %v998_v0 = vsel %vm541_vm0, %v3472_v63, 0 }
  0x2e   : > { %431 = vst.msk [vmem:[#allocation2 + $0x30] sm:$0xff] %vm424_vm1, %v4030_v52  ;;  %v3475_v56 = vld [vmem:[%s5191_s1 + $0x98] sm:$0xff] }
  0x2f   : > { %432 = vst.msk [vmem:[#allocation2 + $0x38] sm:$0xff] %vm424_vm1, %v4030_v52  ;;  %675 = vmatpush.msra.mxu1 %v3559_v2  ;;  %v4289_v14 = vld [vmem:[#allocation2] sm:$0xff]  ;;  %v1007_v57 = vsel %vm541_vm0, %v3475_v56, 0  ;;  %v3799_v6 = vld [vmem:[%s5192_s2 + $0x78] sm:$0xff]  }
  0x30   : > { %433 = vst.msk [vmem:[#allocation2 + $0x40] sm:$0xff] %vm424_vm1, %v4030_v52  ;;  %v3592_v9 = vunpack.c.h.bf16 %v3799_v6 }
  0x31   : > { %434 = vst.msk [vmem:[#allocation2 + $0x48] sm:$0xff] %vm424_vm1, %v4030_v52  ;;  %676 = vmatpush.msra.mxu1 %v3556_v4 }
  0x32   : > { %435 = vst.msk [vmem:[#allocation2 + $0x50] sm:$0xff] %vm424_vm1, %v4030_v52  ;;  %902 = vmatpush.msra.mxu3 %v3592_v9  ;;  %v4420_v56 = vld [vmem:[#allocation2 + $0x18] sm:$0xff] }
  0x33   : > { %571 = vmatpush.bf16.xpose.msra.mxu0 %v561_v13  ;;  %436 = vst.msk [vmem:[#allocation2 + $0x58] sm:$0xff] %vm424_vm1, %v4030_v52  ;;  %677 = vmatpush.msra.mxu1 %v3555_v7  ;;  %v3787_v13 = vld [vmem:[%s5192_s2 + $0x18] sm:$0xff]   ;;  %v3798_v7 = vld [vmem:[%s5192_s2 + $0x70] sm:$0xff]  }
  0x34   : > { %437 = vst.msk [vmem:[#allocation2 + $0x60] sm:$0xff] %vm424_vm1, %v4030_v52  ;;  %v3544_v18 = vunpack.c.h.bf16 %v3787_v13 }
  0x35   : > { %796 = vmatpush.bf16.xpose.msra.mxu2 %v786_v27  ;;  %438 = vst.msk [vmem:[#allocation2 + $0x68] sm:$0xff] %vm424_vm1, %v4030_v52  ;;  %678 = vmatpush.msra.mxu1 %v3552_v8  ;;  %v3481_v27 = vld [vmem:[%s5191_s1 + $0xc0] sm:$0xff] }
  0x36   : > { %439 = vst.msk [vmem:[#allocation2 + $0x70] sm:$0xff] %vm424_vm1, %v4030_v52  ;;  %v1225_v33 = vsel %vm541_vm0, %v3481_v27, 0  ;;  %v3794_v27 = vld [vmem:[%s5192_s2 + $0x50] sm:$0xff]  }
  0x37   : > { %440 = vst.msk [vmem:[#allocation2 + $0x78] sm:$0xff] %vm424_vm1, %v4030_v52  ;;  %679 = vmatpush.msra.mxu1 %v3551_v11 }
  0x38   : > { %442 = vst.msk [vmem:[#allocation3 + $0x8] sm:$0xff] %vm424_vm1, %v4032_v59 }
  0x39   : > { %441 = vst.msk [vmem:[#allocation3] sm:$0xff] %vm424_vm1, %v4032_v59  ;;  %680 = vmatpush.msra.mxu1 %v3548_v12  ;;  %v3588_v12 = vunpack.c.h.bf16 %v3798_v7 }
  0x3a   : > { %443 = vst.msk [vmem:[#allocation3 + $0x10] sm:$0xff] %vm424_vm1, %v4032_v59 }
  0x3b   : > { %572 = vmatpush.bf16.xpose.msra.mxu0 %v558_v15  ;;  %444 = vst.msk [vmem:[#allocation3 + $0x18] sm:$0xff] %vm424_vm1, %v4032_v59  ;;  %v3482_v15 = vld [vmem:[%s5191_s1 + $0xc8] sm:$0xff]  ;;  %681 = vmatpush.msra.mxu1 %v3547_v16  ;;  %v3587_v16 = vunpack.c.l.bf16 %v3798_v7 }
  0x3c   : > { %445 = vst.msk [vmem:[#allocation3 + $0x20] sm:$0xff] %vm424_vm1, %v4032_v59  ;;  %v1228_v21 = vsel %vm541_vm0, %v3482_v15, 0  ;;  %v3797_v15 = vld [vmem:[%s5192_s2 + $0x68] sm:$0xff]  }
  0x3d   : > { %797 = vmatpush.bf16.xpose.msra.mxu2 %v783_v31  ;;  %446 = vst.msk [vmem:[#allocation3 + $0x28] sm:$0xff] %vm424_vm1, %v4032_v59  ;;  %682 = vmatpush.msra.mxu1 %v3544_v18  ;;  %v3583_v18 = vunpack.c.l.bf16 %v3797_v15 }
  0x3e   : > { %447 = vst.msk [vmem:[#allocation3 + $0x30] sm:$0xff] %vm424_vm1, %v4032_v59 }
  0x3f   : > { %448 = vst.msk [vmem:[#allocation3 + $0x38] sm:$0xff] %vm424_vm1, %v4032_v59 }
  0x40   : > { %449 = vst.msk [vmem:[#allocation3 + $0x40] sm:$0xff] %vm424_vm1, %v4032_v59 }
  0x41   : > { %450 = vst.msk [vmem:[#allocation3 + $0x48] sm:$0xff] %vm424_vm1, %v4032_v59 }
  0x42   : > { %451 = vst.msk [vmem:[#allocation3 + $0x50] sm:$0xff] %vm424_vm1, %v4032_v59 }
  0x43   : > { %573 = vmatpush.bf16.xpose.msra.mxu0 %v555_v17  ;;  %452 = vst.msk [vmem:[#allocation3 + $0x58] sm:$0xff] %vm424_vm1, %v4032_v59 }
  0x44   : > { %453 = vst.msk [vmem:[#allocation3 + $0x60] sm:$0xff] %vm424_vm1, %v4032_v59 }
  0x45   : > { %798 = vmatpush.bf16.xpose.msra.mxu2 %v780_v34  ;;  %454 = vst.msk [vmem:[#allocation3 + $0x68] sm:$0xff] %vm424_vm1, %v4032_v59  ;;  %v3535_v34 = vunpack.c.l.bf16 %v3785_v25 }
  0x46   : > { %455 = vst.msk [vmem:[#allocation3 + $0x70] sm:$0xff] %vm424_vm1, %v4032_v59 }
  0x47   : > { %456 = vst.msk [vmem:[#allocation3 + $0x78] sm:$0xff] %vm424_vm1, %v4032_v59 }
  0x48   : > { %458 = vst.msk [vmem:[#allocation4] sm:$0xff] %vm457_vm2, %v4032_v59 }
  0x49   : > { %459 = vst.msk [vmem:[#allocation4 + $0x8] sm:$0xff] %vm457_vm2, %v4032_v59 }
  0x4a   : > { %460 = vst.msk [vmem:[#allocation4 + $0x10] sm:$0xff] %vm457_vm2, %v4032_v59 }
  0x4b   : > { %574 = vmatpush.bf16.xpose.msra.mxu0 %v552_v22  ;;  %v3543_v22 = vunpack.c.l.bf16 %v3787_v13  ;;  %461 = vst.msk [vmem:[#allocation4 + $0x18] sm:$0xff] %vm457_vm2, %v4032_v59 }
  0x4c   : > { %462 = vst.msk [vmem:[#allocation4 + $0x20] sm:$0xff] %vm457_vm2, %v4032_v59 }
  0x4d   : > { %799 = vmatpush.bf16.xpose.msra.mxu2 %v777_v36  ;;  %683 = vmatpush.msra.mxu1 %v3543_v22  ;;  %v3795_v22 = vld [vmem:[%s5192_s2 + $0x58] sm:$0xff]   ;;  %463 = vst.msk [vmem:[#allocation4 + $0x28] sm:$0xff] %vm457_vm2, %v4032_v59 }
  0x4e   : > { %464 = vst.msk [vmem:[#allocation4 + $0x30] sm:$0xff] %vm457_vm2, %v4032_v59 }
  0x4f   : > { %684 = vmatpush.msra.mxu1 %v3540_v24  ;;  %465 = vst.msk [vmem:[#allocation4 + $0x38] sm:$0xff] %vm457_vm2, %v4032_v59 }
  0x50   : > { %466 = vst.msk [vmem:[#allocation4 + $0x40] sm:$0xff] %vm457_vm2, %v4032_v59 }
  0x51   : > { %685 = vmatpush.msra.mxu1 %v3539_v28  ;;  %v3471_v28 = vld [vmem:[%s4157_s17 + $0x10] sm:$0xff]  ;;  %467 = vst.msk [vmem:[#allocation4 + $0x48] sm:$0xff] %vm457_vm2, %v4032_v59 }
  0x52   : > { %468 = vst.msk [vmem:[#allocation4 + $0x50] sm:$0xff] %vm457_vm2, %v4032_v59 }
  0x53   : > { %575 = vmatpush.bf16.xpose.msra.mxu0 %v549_v26  ;;  %v4309_v26 = vld [vmem:[#allocation2 + $0x8] sm:$0xff]  ;;  %469 = vst.msk [vmem:[#allocation4 + $0x58] sm:$0xff] %vm457_vm2, %v4032_v59 }
  0x54   : > { %470 = vst.msk [vmem:[#allocation4 + $0x60] sm:$0xff] %vm457_vm2, %v4032_v59 }
  0x55   : > { %800 = vmatpush.bf16.xpose.msra.mxu2 %v774_v38  ;;  %471 = vst.msk [vmem:[#allocation4 + $0x68] sm:$0xff] %vm457_vm2, %v4032_v59 }
  0x56   : > { %472 = vst.msk [vmem:[#allocation4 + $0x70] sm:$0xff] %vm457_vm2, %v4032_v59 }
  0x57   : > { %473 = vst.msk [vmem:[#allocation4 + $0x78] sm:$0xff] %vm457_vm2, %v4032_v59  ;;  %v628_v59 = vld [vmem:[#allocation4] sm:$0xff] }
  0x5b   : > { %576 = vmatpush.bf16.xpose.msra.mxu0 %v546_v30  ;;  %v3536_v30 = vunpack.c.h.bf16 %v3785_v25  ;;  %v3576_v25 = vunpack.c.h.bf16 %v3795_v22 }
  0x5d   : > { %801 = vmatpush.bf16.xpose.msra.mxu2 %v771_v40  ;;  %686 = vmatpush.msra.mxu1 %v3536_v30  ;;  %v1019_v40 = vsel %vm541_vm0, %v3479_v37, 0  ;;  %v3572_v30 = vunpack.c.h.bf16 %v3794_v27 }
  0x5f   : > { %687 = vmatpush.msra.mxu1 %v3535_v34  ;;  %v3571_v34 = vunpack.c.l.bf16 %v3794_v27 }
  0x62   : > { %2922 = vmatmul.msk.bf16.vlgmr.msra.gmra.mxu0 %vm541_vm0, %v3453_v32  ;;  %v3530_v32 = vld [vmem:[%s5192_s2] sm:$0xff]  }
  0x63   : > { %1248 = vmatpush.bf16.xpose.msrb.mxu0 %v1246_v43  ;;  %v3532_v36 = vunpack.c.h.bf16 %v3530_v32  ;;  %v3531_v38 = vunpack.c.l.bf16 %v3530_v32  ;;  %v3477_v43 = vld [vmem:[%s5191_s1 + $0xa8] sm:$0xff] }
  0x64   : > { %2977 = vmatmul.msk.bf16.vlgmr.msra.gmra.mxu2 %vm541_vm0, %v3462_v41  ;;  %v3478_v41 = vld [vmem:[%s5191_s1 + $0xb0] sm:$0xff]  ;;  %v1013_v44 = vsel %vm541_vm0, %v3477_v43, 0  ;;  %v3793_v32 = vld [vmem:[%s5192_s2 + $0x48] sm:$0xff]  }
  0x65   : > { %688 = vmatpush.msra.mxu1 %v3532_v36  ;;  %v1016_v42 = vsel %vm541_vm0, %v3478_v41, 0  ;;  %v3568_v37 = vunpack.c.h.bf16 %v3793_v32 }
  0x67   : > { %689 = vmatpush.msra.mxu1 %v3531_v38  ;;  %v3792_v38 = vld [vmem:[%s5192_s2 + $0x40] sm:$0xff]  }
  0x69   : > { %1021 = vmatpush.bf16.xpose.msrb.mxu1 %v1019_v40  ;;  %v3564_v40 = vunpack.c.h.bf16 %v3792_v38 }
  0x6b   : > { %1249 = vmatpush.bf16.xpose.msrb.mxu0 %v1243_v53 }
  0x71   : > { %1022 = vmatpush.bf16.xpose.msrb.mxu1 %v1016_v42  ;;  %v3563_v42 = vunpack.c.l.bf16 %v3792_v38  ;;  %v3808_v38 = vld [vmem:[%s5192_s2 + $0xc0] sm:$0xff]  }
  0x73   : > { %1250 = vmatpush.bf16.xpose.msrb.mxu0 %v1240_v58  ;;  %v3474_v58 = vld [vmem:[%s5191_s1 + $0x90] sm:$0xff] }
  0x74   : > { %v1004_v60 = vsel %vm541_vm0, %v3474_v58, 0 }
  0x79   : > { %1023 = vmatpush.bf16.xpose.msrb.mxu1 %v1013_v44 }
  0x7b   : > { %1251 = vmatpush.bf16.xpose.msrb.mxu0 %v1237_v61  ;;  %v3473_v61 = vld [vmem:[%s5191_s1 + $0x88] sm:$0xff] }
  0x7c   : > { %v1001_v62 = vsel %vm541_vm0, %v3473_v61, 0 }
  0x83   : > { %1252 = vmatpush.bf16.xpose.msrb.mxu0 %v1234_v1 }
  0x8b   : > { %1253 = vmatpush.bf16.xpose.msrb.mxu0 %v1231_v10  ;;  %v3591_v10 = vunpack.c.l.bf16 %v3799_v6 }
  0x8d   : > { %903 = vmatpush.msra.mxu3 %v3591_v10 }
  0x8f   : > { %904 = vmatpush.msra.mxu3 %v3588_v12  ;;  %v3814_v12 = vld [vmem:[%s5192_s2 + $0xf0] sm:$0xff]  }
  0x91   : > { %905 = vmatpush.msra.mxu3 %v3587_v16  ;;  %v3652_v16 = vunpack.c.h.bf16 %v3814_v12 }
  0x93   : > { %1254 = vmatpush.bf16.xpose.msrb.mxu0 %v1228_v21 }
  0x9b   : > { %1255 = vmatpush.bf16.xpose.msrb.mxu0 %v1225_v33 }
  0xa2   : > { %3119 = vmatmul.msk.bf16.vlgmr.msrb.gmra.mxu0 %vm541_vm0, %v3480_v39  ;;  %v3567_v39 = vunpack.c.l.bf16 %v3793_v32 }
  0xdf   : > { %v578_v46 = vpop.f32.mrf.mxu0 }
  0xe0   : > { %v4193_v47 = vadd.f32 %v4190_v45, %v578_v46  ;;  %v3476_v46 = vld [vmem:[%s5191_s1 + $0xa0] sm:$0xff] }
  0xe1   : > { %v1010_v51 = vsel %vm541_vm0, %v3476_v46, 0 }
  0xe2   : > { %585 = vmax.xlane.f32.xlu0 %v4193_v47  ;;  %1024 = vmatpush.bf16.xpose.msrb.mxu1 %v1010_v51 }
  0xe7   : > { %v580_v49 = vpop.f32.mrf.mxu0  ;;  %v803_v54 = vpop.f32.mrf.mxu2 }
  0xe8   : > { %v4199_v50 = vadd.f32 %v4196_v48, %v580_v49  ;;  %v4223_v55 = vadd.f32 %v4190_v45, %v803_v54  ;;  %v4343_v49 = vld [vmem:[#allocation2 + $0x10] sm:$0xff] }
  0xea   : > { %587 = vmax.xlane.f32.xlu0 %v4199_v50  ;;  %811 = vmax.xlane.f32.xlu2 %v4223_v55 }
  0xeb   : > { %1025 = vmatpush.bf16.xpose.msrb.mxu1 %v1007_v57 }
  0xef   : > { %v805_v1 = vpop.f32.mrf.mxu2 }
  0xf0   : > { %v4371_v2 = vadd.f32 %v4196_v48, %v805_v1 }
  0xf2   : > { %813 = vmax.xlane.f32.xlu2 %v4371_v2 }
  0xf3   : > { %1026 = vmatpush.bf16.xpose.msrb.mxu1 %v1004_v60 }
  0xfb   : > { %1027 = vmatpush.bf16.xpose.msrb.mxu1 %v1001_v62 }
 0x103   : > { %1028 = vmatpush.bf16.xpose.msrb.mxu1 %v998_v0 }
 0x11f   : > { %v1257_v33 = vpop.f32.mrf.mxu0 }
 0x120   : > { %v4406_v36 = vadd.f32 %v4190_v45, %v1257_v33  ;;  %v3809_v33 = vld [vmem:[%s5192_s2 + $0xc8] sm:$0xff]  }
 0x122   : > { %1265 = vmax.xlane.f32.xlu2 %v4406_v36 }
 0x127   : > { %v1259_v41 = vpop.f32.mrf.mxu0 }
 0x128   : > { %v4413_v43 = vadd.f32 %v4196_v48, %v1259_v41  ;;  %v3506_v41 = vld [vmem:[%s5191_s1 + $0x178] sm:$0xff] }
 0x12a   : > { %1267 = vmax.xlane.f32.xlu2 %v4413_v43 }
 0x155   : > { %v586_v17 = vpop.xlane.xlu0 %585 }
 0x156   : > { %v4295_v19 = vmax.f32 %v4289_v14, %v586_v17  ;;  %v3584_v17 = vunpack.c.h.bf16 %v3797_v15 }
 0x158   : > { %v591_v23 = vsub.f32 %v4289_v14, %v4295_v19  ;;  %626 = vst.msk [vmem:[#allocation2] sm:$0xff] %vm424_vm1, %v4295_v19  ;;  %599 = vperm.xlu1 %3891, %v4295_v19   ;;  %906 = vmatpush.msra.mxu3 %v3584_v17  ;;  %v3813_v17 = vld [vmem:[%s5192_s2 + $0xe8] sm:$0xff]   ;;  %v3511_v14 = vld [vmem:[%s5191_s1 + $0x198] sm:$0xff] }
 0x15a   : > { %907 = vmatpush.msra.mxu3 %v3583_v18  ;;  %v3648_v18 = vunpack.c.h.bf16 %v3813_v17 }
 0x15d   : > { %v588_v29 = vpop.xlane.xlu0 %587  ;;  %v812_v52 = vpop.xlane.xlu2 %811 }
 0x15e   : > { %v4315_v31 = vmax.f32 %v4309_v26, %v588_v29  ;;  %v4347_v53 = vmax.f32 %v4343_v49, %v812_v52  ;;  %v3575_v29 = vunpack.c.l.bf16 %v3795_v22  ;;  %v3647_v22 = vunpack.c.l.bf16 %v3813_v17 }
 0x160   : > { %v592_v35 = vsub.f32 %v4309_v26, %v4315_v31  ;;  %627 = vst.msk [vmem:[#allocation2 + $0x8] sm:$0xff] %vm424_vm1, %v4315_v31  ;;  %604 = vperm.xlu1 %3891, %v4315_v31   ;;  %v817_v54 = vsub.f32 %v4343_v49, %v4347_v53  ;;  %825 = vperm.xlu0 %3892, %v4347_v53  }
 0x161   : > { %852 = vst.msk [vmem:[#allocation2 + $0x10] sm:$0xff] %vm424_vm1, %v4347_v53  ;;  %v840_v53 = vld [vmem:[#allocation3 + $0x10] sm:$0xff] }
 0x165   : > { %v814_v57 = vpop.xlane.xlu2 %813 }
 0x166   : > { %v4423_v58 = vmax.f32 %v4420_v56, %v814_v57  ;;  %v3504_v57 = vld [vmem:[%s5191_s1 + $0x168] sm:$0xff] }
 0x168   : > { %v818_v60 = vsub.f32 %v4420_v56, %v4423_v58  ;;  %853 = vst.msk [vmem:[#allocation2 + $0x18] sm:$0xff] %vm424_vm1, %v4423_v58 }
 0x195   : > { %v1266_v63 = vpop.xlane.xlu2 %1265 }
 0x19d   : > { %v1268_v6 = vpop.xlane.xlu2 %1267 }
 0x1ca   : > { %v600_v3 = vpop.permute.xlu1 %599 }
 0x1cb   : > { %v607_v4 = vsub.f32 %v4193_v47, %v600_v3 }
 0x1cd   : > { %v609_v5 = vmul.f32 1.442695, %v607_v4 }
 0x1cf   : > { %3894 = vpow2.f32 %v609_v5  ;;  %v4446_v5 = vld [vmem:[#allocation2 + $0x38] sm:$0xff] }
 0x1d0   : > { %v4449_v7 = vmax.f32 %v4446_v5, %v1268_v6 }
 0x1d2   : > { %v605_v8 = vpop.permute.xlu1 %604  ;;  %v826_v44 = vpop.permute.xlu0 %825  ;;  %1307 = vst.msk [vmem:[#allocation2 + $0x38] sm:$0xff] %vm424_vm1, %v4449_v7 }
 0x1d3   : > { %v608_v11 = vsub.f32 %v4199_v50, %v605_v8  ;;  %v3796_v50 = vld [vmem:[%s5192_s2 + $0x60] sm:$0xff]   ;;  %v833_v46 = vsub.f32 %v4223_v55, %v826_v44  ;;  %v4431_v55 = vld [vmem:[#allocation2 + $0x30] sm:$0xff]  ;;  %v1700_v44 = vsel %vm541_vm0, %v3506_v41, 0 }
 0x1d4   : > { %v3580_v20 = vunpack.c.h.bf16 %v3796_v50  ;;  %v3579_v24 = vunpack.c.l.bf16 %v3796_v50  ;;  %v4436_v0 = vmax.f32 %v4431_v55, %v1266_v63  ;;  %v3651_v50 = vunpack.c.l.bf16 %v3814_v12  ;;  %v3501_v12 = vld [vmem:[%s5191_s1 + $0x150] sm:$0xff] }
 0x1d5   : > { %v4382_v13 = vpop.eup %3894  ;;  %v611_v47 = vmul.f32 1.442695, %v608_v11  ;;  %v835_v51 = vmul.f32 1.442695, %v833_v46  ;;  %v3815_v11 = vld [vmem:[%s5192_s2 + $0xf8] sm:$0xff]   ;;  %v3505_v46 = vld [vmem:[%s5191_s1 + $0x170] sm:$0xff] }
 0x1d6   : > { %690 = vmatmul.f32.vlgmr.msra.gmra.mxu1 %v4382_v13  ;;  %908 = vmatpush.msra.mxu3 %v3580_v20  ;;  %v1271_v1 = vsub.f32 %v4431_v55, %v4436_v0  ;;  %1306 = vst.msk [vmem:[#allocation2 + $0x30] sm:$0xff] %vm424_vm1, %v4436_v0  ;;  %v3655_v15 = vunpack.c.l.bf16 %v3815_v11  ;;  %v3812_v20 = vld [vmem:[%s5192_s2 + $0xe0] sm:$0xff]   ;;  %v1694_v63 = vsel %vm541_vm0, %v3504_v57, 0 }
 0x1d7   : > { %3896 = vpow2.f32 %v611_v47  ;;  %v3656_v47 = vunpack.c.h.bf16 %v3815_v11  ;;  %v3643_v27 = vunpack.c.l.bf16 %v3812_v20 }
 0x1d8   : > { %909 = vmatpush.msra.mxu3 %v3579_v24  ;;  %3898 = vpow2.f32 %v835_v51  ;;  %v3644_v24 = vunpack.c.h.bf16 %v3812_v20  ;;  %v1697_v51 = vsel %vm541_vm0, %v3505_v46, 0 }
 0x1d9   : > { %1356 = vmatpush.msrb.mxu2 %v3656_v47  ;;  %v1685_v47 = vsel %vm541_vm0, %v3501_v12, 0 }
 0x1da   : > { %910 = vmatpush.msra.mxu3 %v3576_v25  ;;  %v3811_v25 = vld [vmem:[%s5192_s2 + $0xd8] sm:$0xff]  }
 0x1db   : > { %1357 = vmatpush.msrb.mxu2 %v3655_v15  ;;  %v4510_v15 = vld [vmem:[#allocation2 + $0x20] sm:$0xff] }
 0x1dc   : > { %911 = vmatpush.msra.mxu3 %v3575_v29  ;;  %v3810_v29 = vld [vmem:[%s5192_s2 + $0xd0] sm:$0xff]  }
 0x1dd   : > { %v4391_v21 = vpop.eup %3896  ;;  %1358 = vmatpush.msrb.mxu2 %v3652_v16  ;;  %v3636_v32 = vunpack.c.h.bf16 %v3810_v29 }
 0x1de   : > { %693 = vmatmul.f32.gmra.mxu1 %v4391_v21  ;;  %912 = vmatpush.msra.mxu3 %v3572_v30  ;;  %v4417_v52 = vpop.eup %3898  ;;  %v3639_v30 = vunpack.c.l.bf16 %v3811_v25 }
 0x1df   : > { %1359 = vmatpush.msrb.mxu2 %v3651_v50 }
 0x1e0   : > { %913 = vmatpush.msra.mxu3 %v3571_v34  ;;  %v3635_v34 = vunpack.c.l.bf16 %v3810_v29 }
 0x1e1   : > { %1360 = vmatpush.msrb.mxu2 %v3648_v18  ;;  %v3500_v18 = vld [vmem:[%s5191_s1 + $0x148] sm:$0xff] }
 0x1e2   : > { %914 = vmatpush.msra.mxu3 %v3568_v37  ;;  %v3632_v37 = vunpack.c.h.bf16 %v3809_v33  ;;  %v1682_v20 = vsel %vm541_vm0, %v3500_v18, 0  ;;  %v3802_v18 = vld [vmem:[%s5192_s2 + $0x90] sm:$0xff]  }
 0x1e3   : > { %1361 = vmatpush.msrb.mxu2 %v3647_v22  ;;  %v4524_v22 = vld [vmem:[#allocation2 + $0x28] sm:$0xff] }
 0x1e4   : > { %915 = vmatpush.msra.mxu3 %v3567_v39  ;;  %v3631_v39 = vunpack.c.l.bf16 %v3809_v33 }
 0x1e5   : > { %1362 = vmatpush.msrb.mxu2 %v3644_v24 }
 0x1e6   : > { %3048 = vmatmul.msk.bf16.vlgmr.msrb.gmra.mxu1 %vm541_vm0, %v3471_v28  ;;  %916 = vmatpush.msra.mxu3 %v3564_v40  ;;  %v3640_v28 = vunpack.c.h.bf16 %v3811_v25  ;;  %v3628_v40 = vunpack.c.h.bf16 %v3808_v38 }
 0x1e7   : > { %1363 = vmatpush.msrb.mxu2 %v3643_v27 }
 0x1e8   : > { %917 = vmatpush.msra.mxu3 %v3563_v42  ;;  %v3627_v42 = vunpack.c.l.bf16 %v3808_v38 }
 0x1e9   : > { %918 = vmatmul.f32.vlgmr.msra.gmra.mxu3 %v4417_v52  ;;  %1364 = vmatpush.msrb.mxu2 %v3640_v28  ;;  %v3499_v28 = vld [vmem:[%s5191_s1 + $0x140] sm:$0xff] }
 0x1ea   : > { %v1679_v29 = vsel %vm541_vm0, %v3499_v28, 0  ;;  %v3801_v28 = vld [vmem:[%s5192_s2 + $0x88] sm:$0xff]  }
 0x1eb   : > { %1365 = vmatpush.msrb.mxu2 %v3639_v30  ;;  %v3807_v30 = vld [vmem:[%s5192_s2 + $0xb8] sm:$0xff]  }
 0x1ec   : > { %v3623_v38 = vunpack.c.l.bf16 %v3807_v30 }
 0x1ed   : > { %1366 = vmatpush.msrb.mxu2 %v3636_v32  ;;  %v3624_v32 = vunpack.c.h.bf16 %v3807_v30  ;;  %v3600_v30 = vunpack.c.h.bf16 %v3801_v28 }
 0x1ef   : > { %1367 = vmatpush.msrb.mxu2 %v3635_v34  ;;  %1129 = vmatpush.msrb.mxu3 %v3624_v32  ;;  %v3800_v32 = vld [vmem:[%s5192_s2 + $0x80] sm:$0xff]  }
 0x1f1   : > { %1368 = vmatpush.msrb.mxu2 %v3632_v37  ;;  %1130 = vmatpush.msrb.mxu3 %v3623_v38  ;;  %v3497_v38 = vld [vmem:[%s5191_s1 + $0x138] sm:$0xff] }
 0x1f3   : > { %1369 = vmatpush.msrb.mxu2 %v3631_v39  ;;  %v3806_v39 = vld [vmem:[%s5192_s2 + $0xb0] sm:$0xff]  }
 0x1f4   : > { %v3619_v41 = vunpack.c.l.bf16 %v3806_v39 }
 0x1f5   : > { %1370 = vmatpush.msrb.mxu2 %v3628_v40  ;;  %v3620_v40 = vunpack.c.h.bf16 %v3806_v39  ;;  %v3595_v39 = vunpack.c.l.bf16 %v3800_v32 }
 0x1f7   : > { %1371 = vmatpush.msrb.mxu2 %v3627_v42  ;;  %v3805_v42 = vld [vmem:[%s5192_s2 + $0xa8] sm:$0xff]   ;;  %1131 = vmatpush.msrb.mxu3 %v3620_v40 }
 0x1f8   : > { %v3498_v40 = vld [vmem:[%s4157_s17 + $0x28] sm:$0xff] }
 0x1f9   : > { %1702 = vmatpush.bf16.xpose.msra.mxu2 %v1700_v44  ;;  %1132 = vmatpush.msrb.mxu3 %v3619_v41  ;;  %v1473_v41 = vsel %vm541_vm0, %v3497_v38, 0 }
 0x201   : > { %1703 = vmatpush.bf16.xpose.msra.mxu2 %v1697_v51  ;;  %v3616_v51 = vunpack.c.h.bf16 %v3805_v42 }
 0x203   : > { %1133 = vmatpush.msrb.mxu3 %v3616_v51 }
 0x209   : > { %1704 = vmatpush.bf16.xpose.msra.mxu2 %v1694_v63 }
 0x253   : > { %v4429_v61 = vpop.f32.mrf.mxu1 }
 0x25b   : > { %v4433_v62 = vpop.f32.mrf.mxu1 }
 0x263   : > { %v1030_v3 = vpop.f32.mrf.mxu1 }
 0x264   : > { %v4443_v4 = vadd.f32 %v4190_v45, %v1030_v3  ;;  %v3503_v3 = vld [vmem:[%s5191_s1 + $0x160] sm:$0xff] }
 0x265   : > { %v1691_v6 = vsel %vm541_vm0, %v3503_v3, 0 }
 0x266   : > { %1038 = vmax.xlane.f32.xlu1 %v4443_v4  ;;  %1705 = vmatpush.bf16.xpose.msra.mxu2 %v1691_v6  ;;  %v3615_v6 = vunpack.c.l.bf16 %v3805_v42  ;;  %v3496_v42 = vld [vmem:[%s5191_s1 + $0x130] sm:$0xff] }
 0x268   : > { %1134 = vmatpush.msrb.mxu3 %v3615_v6 }
 0x26b   : > { %v1032_v9 = vpop.f32.mrf.mxu1 }
 0x26c   : > { %v4456_v10 = vadd.f32 %v4196_v48, %v1032_v9  ;;  %v3502_v9 = vld [vmem:[%s5191_s1 + $0x158] sm:$0xff] }
 0x26d   : > { %v1688_v11 = vsel %vm541_vm0, %v3502_v9, 0 }
 0x26e   : > { %1040 = vmax.xlane.f32.xlu2 %v4456_v10  ;;  %1706 = vmatpush.bf16.xpose.msra.mxu2 %v1688_v11 }
 0x276   : > { %1707 = vmatpush.bf16.xpose.msra.mxu2 %v1685_v47 }
 0x27e   : > { %1708 = vmatpush.bf16.xpose.msra.mxu2 %v1682_v20 }
 0x27f   : > { %1279 = vperm.xlu1 %3891, %v4436_v0  }
 0x286   : > { %830 = vperm.xlu2 %3893, %v4423_v58   ;;  %1709 = vmatpush.bf16.xpose.msra.mxu2 %v1679_v29  ;;  %v3603_v29 = vunpack.c.l.bf16 %v3802_v18 }
 0x28e   : > { %1284 = vperm.xlu2 %3893, %v4449_v7  }
 0x2d9   : > { %v1039_v16 = vpop.xlane.xlu1 %1038 }
 0x2da   : > { %v4513_v17 = vmax.f32 %v4510_v15, %v1039_v16 }
 0x2dc   : > { %v1044_v50 = vsub.f32 %v4510_v15, %v4513_v17  ;;  %1079 = vst.msk [vmem:[#allocation2 + $0x20] sm:$0xff] %vm424_vm1, %v4513_v17  ;;  %1052 = vperm.xlu0 %3892, %v4513_v17   ;;  %v1273_v17 = vmul.f32 1.442695, %v1271_v1  ;;  %v3508_v1 = vld [vmem:[%s5191_s1 + $0x180] sm:$0xff] }
 0x2de   : > { %v1046_v56 = vmul.f32 1.442695, %v1044_v50 }
 0x2e1   : > { %v1041_v24 = vpop.xlane.xlu2 %1040 }
 0x2e2   : > { %v4527_v25 = vmax.f32 %v4524_v22, %v1041_v24 }
 0x2e4   : > { %v1045_v27 = vsub.f32 %v4524_v22, %v4527_v25  ;;  %1080 = vst.msk [vmem:[#allocation2 + $0x28] sm:$0xff] %vm424_vm1, %v4527_v25  ;;  %1057 = vperm.xlu0 %3892, %v4527_v25  }
 0x2e6   : > { %v1048_v31 = vmul.f32 1.442695, %v1045_v27 }
 0x2e9   : > { %v831_v33 = vpop.permute.xlu2 %830 }
 0x2ea   : > { %v834_v34 = vsub.f32 %v4371_v2, %v831_v33  ;;  %v3804_v2 = vld [vmem:[%s5192_s2 + $0xa0] sm:$0xff]   ;;  %v3599_v33 = vunpack.c.l.bf16 %v3801_v28 }
 0x2eb   : > { %v3612_v9 = vunpack.c.h.bf16 %v3804_v2  ;;  %v3611_v12 = vunpack.c.l.bf16 %v3804_v2  ;;  %v3494_v2 = vld [vmem:[%s5191_s1 + $0x120] sm:$0xff] }
 0x2ec   : > { %v837_v37 = vmul.f32 1.442695, %v834_v34 }
 0x2ed   : > { %1135 = vmatpush.msrb.mxu3 %v3612_v9  ;;  %v3492_v9 = vld [vmem:[%s5191_s1 + $0x110] sm:$0xff] }
 0x2ee   : > { %3900 = vpow2.f32 %v837_v37  ;;  %v3596_v37 = vunpack.c.h.bf16 %v3800_v32 }
 0x2ef   : > { %1136 = vmatpush.msrb.mxu3 %v3611_v12 }
 0x2f1   : > { %v1280_v44 = vpop.permute.xlu1 %1279  ;;  %v1285_v63 = vpop.permute.xlu2 %1284 }
 0x2f2   : > { %v1287_v46 = vsub.f32 %v4406_v36, %v1280_v44  ;;  %v1288_v11 = vsub.f32 %v4413_v43, %v1285_v63  ;;  %v3803_v36 = vld [vmem:[%s5192_s2 + $0x98] sm:$0xff]   ;;  %v3604_v43 = vunpack.c.h.bf16 %v3802_v18  ;;  %v1470_v44 = vsel %vm541_vm0, %v3496_v42, 0  ;;  %v4627_v42 = vpop.f32.mrf.mxu3 }
 0x2f3   : > { %v3608_v47 = vunpack.c.h.bf16 %v3803_v36  ;;  %v3607_v20 = vunpack.c.l.bf16 %v3803_v36  ;;  %v1464_v63 = vsel %vm541_vm0, %v3494_v2, 0  ;;  %v3491_v36 = vld [vmem:[%s5191_s1 + $0x108] sm:$0xff] }
 0x2f4   : > { %v4552_v57 = vpop.eup %3900  ;;  %v1289_v3 = vmul.f32 1.442695, %v1287_v46  ;;  %v1291_v16 = vmul.f32 1.442695, %v1288_v11  ;;  %v3495_v46 = vld [vmem:[%s5191_s1 + $0x128] sm:$0xff]  ;;  %v1458_v11 = vsel %vm541_vm0, %v3492_v9, 0 }
 0x2f5   : > { %921 = vmatmul.f32.gmra.mxu3 %v4552_v57  ;;  %v1467_v51 = vsel %vm541_vm0, %v3495_v46, 0  ;;  %v1455_v12 = vsel %vm541_vm0, %v3491_v36, 0  ;;  %v4643_v9 = vld [vmem:[#allocation2 + $0x50] sm:$0xff] }
 0x2f6   : > { %3902 = vpow2.f32 %v1289_v3  ;;  %1137 = vmatpush.msrb.mxu3 %v3608_v47  ;;  %v3493_v3 = vld [vmem:[%s5191_s1 + $0x118] sm:$0xff]  ;;  %v3490_v47 = vld [vmem:[%s5191_s1 + $0x100] sm:$0xff] }
 0x2f7   : > { %3904 = vpow2.f32 %v1291_v16  ;;  %v1461_v6 = vsel %vm541_vm0, %v3493_v3, 0  ;;  %v1452_v16 = vsel %vm541_vm0, %v3490_v47, 0  ;;  %v3831_v47 = vld [vmem:[%s5192_s2 + $0x178] sm:$0xff]  }
 0x2f8   : > { %1138 = vmatpush.msrb.mxu3 %v3607_v20 }
 0x2fa   : > { %1139 = vmatpush.msrb.mxu3 %v3604_v43 }
 0x2fc   : > { %v4562_v24 = vpop.eup %3902  ;;  %1140 = vmatpush.msrb.mxu3 %v3603_v29 }
 0x2fd   : > { %1372 = vmatmul.f32.vlgmr.msrb.gmra.mxu2 %v4562_v24  ;;  %v4571_v34 = vpop.eup %3904 }
 0x2fe   : > { %1141 = vmatpush.msrb.mxu3 %v3600_v30 }
 0x300   : > { %1142 = vmatpush.msrb.mxu3 %v3599_v33 }
 0x302   : > { %1143 = vmatpush.msrb.mxu3 %v3596_v37  ;;  %v3489_v37 = vld [vmem:[%s4157_s17 + $0x20] sm:$0xff] }
 0x304   : > { %1144 = vmatpush.msrb.mxu3 %v3595_v39 }
 0x305   : > { %1375 = vmatmul.f32.gmra.mxu2 %v4571_v34 }
 0x306   : > { %1475 = vmatpush.bf16.xpose.msra.mxu3 %v1473_v41 }
 0x30d   : > { %3261 = vmatmul.msk.bf16.vlgmr.msra.gmra.mxu2 %vm541_vm0, %v3498_v40 }
 0x30e   : > { %1476 = vmatpush.bf16.xpose.msra.mxu3 %v1470_v44 }
 0x316   : > { %1477 = vmatpush.bf16.xpose.msra.mxu3 %v1467_v51 }
 0x31e   : > { %1478 = vmatpush.bf16.xpose.msra.mxu3 %v1464_v63 }
 0x326   : > { %1479 = vmatpush.bf16.xpose.msra.mxu3 %v1461_v6 }
 0x32e   : > { %1480 = vmatpush.bf16.xpose.msra.mxu3 %v1458_v11 }
 0x336   : > { %1481 = vmatpush.bf16.xpose.msra.mxu3 %v1455_v12  ;;  %v3819_v12 = vld [vmem:[%s5192_s2 + $0x118] sm:$0xff]  }
 0x337   : > { %v3672_v8 = vunpack.c.h.bf16 %v3819_v12 }
 0x33e   : > { %1482 = vmatpush.bf16.xpose.msra.mxu3 %v1452_v16  ;;  %v3830_v16 = vld [vmem:[%s5192_s2 + $0x170] sm:$0xff]  }
 0x34e   : > { %v1053_v18 = vpop.permute.xlu0 %1052 }
 0x34f   : > { %v1060_v20 = vsub.f32 %v4443_v4, %v1053_v18  ;;  %v3720_v18 = vunpack.c.h.bf16 %v3831_v47 }
 0x351   : > { %v1062_v43 = vmul.f32 1.442695, %v1060_v20  ;;  %v3719_v20 = vunpack.c.l.bf16 %v3831_v47  ;;  %1810 = vmatpush.msra.mxu0 %v3720_v18 }
 0x353   : > { %3906 = vpow2.f32 %v1062_v43  ;;  %v3716_v43 = vunpack.c.h.bf16 %v3830_v16  ;;  %1811 = vmatpush.msra.mxu0 %v3719_v20 }
 0x355   : > { %1812 = vmatpush.msra.mxu0 %v3716_v43 }
 0x356   : > { %v1058_v28 = vpop.permute.xlu0 %1057 }
 0x357   : > { %v1061_v29 = vsub.f32 %v4456_v10, %v1058_v28  ;;  %v3829_v28 = vld [vmem:[%s5192_s2 + $0x168] sm:$0xff]  }
 0x359   : > { %v4610_v30 = vpop.eup %3906  ;;  %v1064_v32 = vmul.f32 1.442695, %v1061_v29  ;;  %v3715_v29 = vunpack.c.l.bf16 %v3830_v16  ;;  %v4669_v16 = vld [vmem:[#allocation2 + $0x58] sm:$0xff] }
 0x35a   : > { %1145 = vmatmul.f32.vlgmr.msrb.gmra.mxu3 %v4610_v30 }
 0x35b   : > { %3908 = vpow2.f32 %v1064_v32  ;;  %v3712_v32 = vunpack.c.h.bf16 %v3829_v28  ;;  %1813 = vmatpush.msra.mxu0 %v3715_v29 }
 0x35d   : > { %1814 = vmatpush.msra.mxu0 %v3712_v32 }
 0x361   : > { %v3909_v33 = vpop.eup %3908 }
 0x362   : > { %1148 = vmatmul.f32.gmra.mxu3 %v3909_v33 }
 0x36a   : > { %3190 = vmatmul.msk.bf16.vlgmr.msra.gmra.mxu3 %vm541_vm0, %v3489_v37  ;;  %v3828_v37 = vld [vmem:[%s5192_s2 + $0x160] sm:$0xff]  }
 0x378   : > { %v4629_v44 = vpop.f32.mrf.mxu3 }
 0x380   : > { %v4615_v38 = vpop.f32.mrf.mxu2 }
 0x388   : > { %v4617_v39 = vpop.f32.mrf.mxu2 }
 0x390   : > { %v1711_v4 = vpop.f32.mrf.mxu2 }
 0x391   : > { %v4620_v40 = vadd.f32 %v4190_v45, %v1711_v4  ;;  %v3711_v4 = vunpack.c.l.bf16 %v3829_v28  ;;  %v3826_v28 = vld [vmem:[%s5192_s2 + $0x150] sm:$0xff]  }
 0x392   : > { %v3700_v29 = vunpack.c.h.bf16 %v3826_v28 }
 0x393   : > { %1719 = vmax.xlane.f32.xlu2 %v4620_v40  ;;  %1815 = vmatpush.msra.mxu0 %v3711_v4  ;;  %v3824_v4 = vld [vmem:[%s5192_s2 + $0x140] sm:$0xff]  }
 0x398   : > { %v1713_v10 = vpop.f32.mrf.mxu2 }
 0x399   : > { %v4624_v41 = vadd.f32 %v4196_v48, %v1713_v10  ;;  %v3708_v10 = vunpack.c.h.bf16 %v3828_v37 }
 0x39b   : > { %1721 = vmax.xlane.f32.xlu2 %v4624_v41  ;;  %1816 = vmatpush.msra.mxu0 %v3708_v10  ;;  %v3692_v10 = vunpack.c.h.bf16 %v3824_v4 }
 0x3dd   : > { %v4631_v46 = vpop.f32.mrf.mxu3 }
 0x3e5   : > { %v4633_v51 = vpop.f32.mrf.mxu3 }
 0x3ed   : > { %v1484_v2 = vpop.f32.mrf.mxu3 }
 0x3ee   : > { %v4636_v63 = vadd.f32 %v4190_v45, %v1484_v2  ;;  %v3827_v2 = vld [vmem:[%s5192_s2 + $0x158] sm:$0xff]  }
 0x3ef   : > { %v3703_v47 = vunpack.c.l.bf16 %v3827_v2 }
 0x3f0   : > { %1492 = vmax.xlane.f32.xlu0 %v4636_v63 }
 0x3f5   : > { %v1486_v3 = vpop.f32.mrf.mxu3 }
 0x3f6   : > { %v4640_v6 = vadd.f32 %v4196_v48, %v1486_v3  ;;  %v3707_v3 = vunpack.c.l.bf16 %v3828_v37 }
 0x3f8   : > { %1494 = vmax.xlane.f32.xlu1 %v4640_v6  ;;  %1817 = vmatpush.msra.mxu0 %v3707_v3  ;;  %v3823_v3 = vld [vmem:[%s5192_s2 + $0x138] sm:$0xff]  }
 0x406   : > { %v1720_v11 = vpop.xlane.xlu2 %1719 }
 0x407   : > { %v4646_v36 = vmax.f32 %v4643_v9, %v1720_v11  ;;  %v3704_v11 = vunpack.c.h.bf16 %v3827_v2  ;;  %v3691_v2 = vunpack.c.l.bf16 %v3824_v4  ;;  %v4701_v4 = vld [vmem:[#allocation2 + $0x48] sm:$0xff] }
 0x409   : > { %1760 = vst.msk [vmem:[#allocation2 + $0x50] sm:$0xff] %vm424_vm1, %v4646_v36  ;;  %1733 = vperm.xlu2 %3893, %v4646_v36   ;;  %1818 = vmatpush.msra.mxu0 %v3704_v11  ;;  %v3688_v11 = vunpack.c.h.bf16 %v3823_v3 }
 0x40b   : > { %1819 = vmatpush.msra.mxu0 %v3703_v47  ;;  %v3687_v47 = vunpack.c.l.bf16 %v3823_v3  ;;  %1583 = vmatpush.msra.mxu1 %v3688_v11  ;;  %v3822_v11 = vld [vmem:[%s5192_s2 + $0x130] sm:$0xff]  }
 0x40d   : > { %1820 = vmatpush.msra.mxu0 %v3700_v29  ;;  %1584 = vmatpush.msra.mxu1 %v3687_v47  ;;  %v3821_v47 = vld [vmem:[%s5192_s2 + $0x128] sm:$0xff]  }
 0x40e   : > { %v1722_v18 = vpop.xlane.xlu2 %1721 }
 0x40f   : > { %v4672_v20 = vmax.f32 %v4669_v16, %v1722_v18  ;;  %v4690_v18 = vld [vmem:[#allocation2 + $0x40] sm:$0xff] }
 0x411   : > { %1761 = vst.msk [vmem:[#allocation2 + $0x58] sm:$0xff] %vm424_vm1, %v4672_v20 }
 0x432   : > { %619 = vadd.xlane.f32.xlu2 %v4391_v21  ;;  %v3699_v21 = vunpack.c.l.bf16 %v3826_v28 }
 0x434   : > { %1821 = vmatpush.msra.mxu0 %v3699_v21 }
 0x43a   : > { %1073 = vadd.xlane.f32.xlu2 %v3909_v33  ;;  %v3825_v33 = vld [vmem:[%s5192_s2 + $0x148] sm:$0xff]  }
 0x43b   : > { %v3696_v32 = vunpack.c.h.bf16 %v3825_v33  ;;  %v3695_v37 = vunpack.c.l.bf16 %v3825_v33 }
 0x43d   : > { %1822 = vmatpush.msra.mxu0 %v3696_v32 }
 0x43f   : > { %1823 = vmatpush.msra.mxu0 %v3695_v37 }
 0x441   : > { %1824 = vmatpush.msra.mxu0 %v3692_v10 }
 0x443   : > { %1825 = vmatpush.msra.mxu0 %v3691_v2 }
 0x463   : > { %v1493_v28 = vpop.xlane.xlu0 %1492  ;;  %v1734_v29 = vpop.permute.xlu2 %1733 }
 0x464   : > { %v4693_v21 = vmax.f32 %v4690_v18, %v1493_v28  ;;  %v1741_v33 = vsub.f32 %v4620_v40, %v1734_v29  ;;  %v3684_v28 = vunpack.c.h.bf16 %v3822_v11  ;;  %v3683_v29 = vunpack.c.l.bf16 %v3822_v11 }
 0x465   : > { %v3671_v11 = vunpack.c.l.bf16 %v3819_v12  ;;  %v3524_v12 = vld [vmem:[%s5191_s1 + $0x1f8] sm:$0xff] }
 0x466   : > { %v1498_v32 = vsub.f32 %v4690_v18, %v4693_v21  ;;  %1533 = vst.msk [vmem:[#allocation2 + $0x40] sm:$0xff] %vm424_vm1, %v4693_v21  ;;  %1506 = vperm.xlu0 %3892, %v4693_v21   ;;  %v1743_v37 = vmul.f32 1.442695, %v1741_v33  ;;  %1585 = vmatpush.msra.mxu1 %v3684_v28  ;;  %v3680_v33 = vunpack.c.h.bf16 %v3821_v47 }
 0x468   : > { %3910 = vpow2.f32 %v1743_v37  ;;  %1586 = vmatpush.msra.mxu1 %v3683_v29  ;;  %v3679_v37 = vunpack.c.l.bf16 %v3821_v47  ;;  %v3818_v47 = vld [vmem:[%s5192_s2 + $0x110] sm:$0xff]  }
 0x469   : > { %v3668_v28 = vunpack.c.h.bf16 %v3818_v47  ;;  %v3667_v29 = vunpack.c.l.bf16 %v3818_v47 }
 0x46a   : > { %1587 = vmatpush.msra.mxu1 %v3680_v33 }
 0x46b   : > { %v1495_v10 = vpop.xlane.xlu1 %1494 }
 0x46c   : > { %v4704_v2 = vmax.f32 %v4701_v4, %v1495_v10  ;;  %v3820_v10 = vld [vmem:[%s5192_s2 + $0x120] sm:$0xff]   ;;  %1588 = vmatpush.msra.mxu1 %v3679_v37 }
 0x46d   : > { %v3676_v43 = vunpack.c.h.bf16 %v3820_v10  ;;  %v3675_v3 = vunpack.c.l.bf16 %v3820_v10  ;;  %v3515_v10 = vld [vmem:[%s5191_s1 + $0x1b8] sm:$0xff] }
 0x46e   : > { %1534 = vst.msk [vmem:[#allocation2 + $0x48] sm:$0xff] %vm424_vm1, %v4704_v2  ;;  %1511 = vperm.xlu1 %3891, %v4704_v2   ;;  %1738 = vperm.xlu0 %3892, %v4672_v20   ;;  %v4712_v40 = vpop.eup %3910 }
 0x46f   : > { %1826 = vmatmul.f32.vlgmr.msra.gmra.mxu0 %v4712_v40  ;;  %1589 = vmatpush.msra.mxu1 %v3676_v43  ;;  %v3817_v43 = vld [vmem:[%s5192_s2 + $0x108] sm:$0xff]  }
 0x470   : > { %v3664_v33 = vunpack.c.h.bf16 %v3817_v43  ;;  %v3663_v37 = vunpack.c.l.bf16 %v3817_v43  ;;  %v3514_v43 = vld [vmem:[%s5191_s1 + $0x1b0] sm:$0xff] }
 0x471   : > { %1590 = vmatpush.msra.mxu1 %v3675_v3  ;;  %v1924_v26 = vsel %vm541_vm0, %v3514_v43, 0 }
 0x473   : > { %1591 = vmatpush.msra.mxu1 %v3672_v8  ;;  %v3816_v8 = vld [vmem:[%s5192_s2 + $0x100] sm:$0xff]  }
 0x474   : > { %v3660_v3 = vunpack.c.h.bf16 %v3816_v8  ;;  %v3659_v47 = vunpack.c.l.bf16 %v3816_v8  ;;  %v3522_v8 = vld [vmem:[%s5191_s1 + $0x1e8] sm:$0xff] }
 0x475   : > { %1592 = vmatpush.msra.mxu1 %v3671_v11  ;;  %v2154_v11 = vsel %vm541_vm0, %v3524_v12, 0  ;;  %v2148_v22 = vsel %vm541_vm0, %v3522_v8, 0  ;;  %v3509_v8 = vld [vmem:[%s5191_s1 + $0x188] sm:$0xff] }
 0x476   : > { %2156 = vmatpush.bf16.xpose.msrb.mxu0 %v2154_v11  ;;  %v3521_v11 = vld [vmem:[%s5191_s1 + $0x1e0] sm:$0xff] }
 0x477   : > { %1593 = vmatpush.msra.mxu1 %v3668_v28  ;;  %v1927_v28 = vsel %vm541_vm0, %v3515_v10, 0  ;;  %v3512_v10 = vld [vmem:[%s5191_s1 + $0x1a0] sm:$0xff] }
 0x479   : > { %1594 = vmatpush.msra.mxu1 %v3667_v29  ;;  %v595_v29 = vmul.f32 1.442695, %v592_v35 }
 0x47b   : > { %1595 = vmatpush.msra.mxu1 %v3664_v33  ;;  %3912 = vpow2.f32 %v595_v29  ;;  %v3523_v33 = vld [vmem:[%s5191_s1 + $0x1f0] sm:$0xff] }
 0x47c   : > { %3914 = vpow2.f32 %v1048_v31 }
 0x47d   : > { %1596 = vmatpush.msra.mxu1 %v3663_v37  ;;  %v2151_v37 = vsel %vm541_vm0, %v3523_v33, 0  ;;  %v1918_v33 = vsel %vm541_vm0, %v3512_v10, 0 }
 0x47e   : > { %2157 = vmatpush.bf16.xpose.msrb.mxu0 %v2151_v37  ;;  %v3520_v37 = vld [vmem:[%s5191_s1 + $0x1d8] sm:$0xff] }
 0x47f   : > { %1597 = vmatpush.msra.mxu1 %v3660_v3  ;;  %v2142_v19 = vsel %vm541_vm0, %v3520_v37, 0 }
 0x481   : > { %1598 = vmatpush.msra.mxu1 %v3659_v47  ;;  %v3913_v35 = vpop.eup %3912 }
 0x483   : > { %1929 = vmatpush.bf16.xpose.msrb.mxu1 %v1927_v28  ;;  %v593_v28 = vmul.f32 1.442695, %v591_v23  ;;  %v1915_v23 = vsel %vm541_vm0, %v3511_v14, 0 }
 0x485   : > { %3916 = vpow2.f32 %v593_v28 }
 0x486   : > { %2158 = vmatpush.bf16.xpose.msrb.mxu0 %v2148_v22  ;;  %v1906_v22 = vsel %vm541_vm0, %v3508_v1, 0 }
 0x48b   : > { %1930 = vmatpush.bf16.xpose.msrb.mxu1 %v1924_v26  ;;  %v821_v26 = vmul.f32 1.442695, %v818_v60  ;;  %v3510_v60 = vld [vmem:[%s5191_s1 + $0x190] sm:$0xff] }
 0x48d   : > { %3918 = vpow2.f32 %v821_v26  ;;  %v3516_v26 = vld [vmem:[%s4157_s17 + $0x38] sm:$0xff] }
 0x48e   : > { %3920 = vpow2.f32 %v1046_v56 }
 0x48f   : > { %3922 = vpow2.f32 %v1273_v17 }
 0x498   : > { %844 = vadd.xlane.f32.xlu1 %v4417_v52  ;;  %617 = vadd.xlane.f32.xlu0 %v4382_v13  ;;  %v614_v13 = vld [vmem:[#allocation3 + $0x8] sm:$0xff] }
 0x499   : > { %v3513_v52 = vld [vmem:[%s5191_s1 + $0x1a8] sm:$0xff]  ;;  %v616_v12 = vmul.f32 %v3913_v35, %v614_v13  ;;  %v3519_v13 = vld [vmem:[%s5191_s1 + $0x1d0] sm:$0xff] }
 0x49a   : > { %v1921_v27 = vsel %vm541_vm0, %v3513_v52, 0  ;;  %v1912_v52 = vsel %vm541_vm0, %v3510_v60, 0  ;;  %v2139_v15 = vsel %vm541_vm0, %v3519_v13, 0  ;;  %v841_v13 = vld [vmem:[#allocation3 + $0x18] sm:$0xff] }
 0x49b   : > { %1931 = vmatpush.bf16.xpose.msrb.mxu1 %v1921_v27 }
 0x4a0   : > { %1071 = vadd.xlane.f32.xlu1 %v4610_v30  ;;  %846 = vadd.xlane.f32.xlu0 %v4552_v57  ;;  %v3915_v57 = vpop.eup %3914  ;;  %v1068_v30 = vld [vmem:[#allocation3 + $0x28] sm:$0xff] }
 0x4a1   : > { %v1070_v47 = vmul.f32 %v3915_v57, %v1068_v30  ;;  %v4795_v31 = vpop.eup %3916 }
 0x4a2   : > { %v4801_v58 = vpop.eup %3918 }
 0x4a3   : > { %1932 = vmatpush.bf16.xpose.msrb.mxu1 %v1918_v33  ;;  %v4815_v50 = vpop.eup %3920 }
 0x4a4   : > { %v4826_v0 = vpop.eup %3922 }
 0x4a5   : > { %v620_v3 = vpop.xlane.xlu2 %619 }
 0x4a6   : > { %v622_v25 = vadd.f32 %v620_v3, %v616_v12  ;;  %v3518_v12 = vld [vmem:[%s5191_s1 + $0x1c8] sm:$0xff]  ;;  %v1909_v3 = vsel %vm541_vm0, %v3509_v8, 0 }
 0x4a7   : > { %v2136_v55 = vsel %vm541_vm0, %v3518_v12, 0 }
 0x4a8   : > { %1298 = vadd.xlane.f32.xlu0 %v4562_v24  ;;  %625 = vst.msk [vmem:[#allocation3 + $0x8] sm:$0xff] %vm424_vm1, %v622_v25  ;;  %v2145_v24 = vsel %vm541_vm0, %v3521_v11, 0 }
 0x4a9   : > { %2159 = vmatpush.bf16.xpose.msrb.mxu0 %v2145_v24 }
 0x4ab   : > { %1933 = vmatpush.bf16.xpose.msrb.mxu1 %v1915_v23 }
 0x4ad   : > { %v1074_v29 = vpop.xlane.xlu2 %1073 }
 0x4ae   : > { %v1076_v43 = vadd.f32 %v1074_v29, %v1070_v47 }
 0x4b0   : > { %1078 = vst.msk [vmem:[#allocation3 + $0x28] sm:$0xff] %vm424_vm1, %v1076_v43 }
 0x4b1   : > { %2160 = vmatpush.bf16.xpose.msrb.mxu0 %v2142_v19 }
 0x4b3   : > { %1934 = vmatpush.bf16.xpose.msrb.mxu1 %v1912_v52 }
 0x4b9   : > { %632 = vperm.xlu1 %3891, %v4795_v31   ;;  %2161 = vmatpush.bf16.xpose.msrb.mxu0 %v2139_v15  ;;  %v843_v15 = vmul.f32 %v4801_v58, %v841_v13 }
 0x4bb   : > { %1935 = vmatpush.bf16.xpose.msrb.mxu1 %v1909_v3 }
 0x4bc   : > { %864 = vperm.xlu0 %3892, %v4801_v58  }
 0x4c1   : > { %637 = vperm.xlu1 %3891, %v3913_v35   ;;  %2162 = vmatpush.bf16.xpose.msrb.mxu0 %v2136_v55  ;;  %v3517_v35 = vld [vmem:[%s5191_s1 + $0x1c0] sm:$0xff]  ;;  %v1294_v55 = vld [vmem:[#allocation3 + $0x30] sm:$0xff] }
 0x4c2   : > { %v2133_v25 = vsel %vm541_vm0, %v3517_v35, 0  ;;  %v1296_v1 = vmul.f32 %v4826_v0, %v1294_v55 }
 0x4c3   : > { %1936 = vmatpush.bf16.xpose.msrb.mxu1 %v1906_v22 }
 0x4c4   : > { %1086 = vperm.xlu0 %3892, %v4815_v50  }
 0x4c9   : > { %1091 = vperm.xlu1 %3891, %v3915_v57   ;;  %2163 = vmatpush.bf16.xpose.msrb.mxu0 %v2133_v25 }
 0x4cc   : > { %1313 = vperm.xlu0 %3892, %v4826_v0  }
 0x4d8   : > { %v1507_v27 = vpop.permute.xlu0 %1506 }
 0x4d9   : > { %v1514_v57 = vsub.f32 %v4636_v63, %v1507_v27  ;;  %v3507_v63 = vld [vmem:[%s4157_s17 + $0x30] sm:$0xff]  ;;  %v856_v27 = vld [vmem:[#allocation4 + $0x18] sm:$0xff] }
 0x4db   : > { %v1516_v30 = vmul.f32 1.442695, %v1514_v57 }
 0x4dd   : > { %3924 = vpow2.f32 %v1516_v30 }
 0x4e0   : > { %v1512_v10 = vpop.permute.xlu1 %1511  ;;  %v1739_v11 = vpop.permute.xlu0 %1738 }
 0x4e1   : > { %v1515_v47 = vsub.f32 %v4640_v6, %v1512_v10  ;;  %v1742_v28 = vsub.f32 %v4624_v41, %v1739_v11  ;;  %v819_v41 = vmul.f32 1.442695, %v817_v54  ;;  %v613_v54 = vld [vmem:[#allocation3] sm:$0xff]  ;;  %v629_v11 = vld [vmem:[#allocation4 + $0x8] sm:$0xff] }
 0x4e2   : > { %v615_v14 = vmul.f32 %v4795_v31, %v613_v54  ;;  %v1067_v31 = vld [vmem:[#allocation3 + $0x20] sm:$0xff] }
 0x4e3   : > { %v3925_v29 = vpop.eup %3924  ;;  %v1518_v24 = vmul.f32 1.442695, %v1515_v47  ;;  %v1745_v43 = vmul.f32 1.442695, %v1742_v28  ;;  %v1069_v52 = vmul.f32 %v4815_v50, %v1067_v31  ;;  %v1082_v28 = vld [vmem:[#allocation4 + $0x20] sm:$0xff] }
 0x4e4   : > { %1599 = vmatmul.f32.vlgmr.msra.gmra.mxu1 %v3925_v29 }
 0x4e5   : > { %3926 = vpow2.f32 %v1518_v24 }
 0x4e6   : > { %3928 = vpow2.f32 %v1745_v43 }
 0x4e7   : > { %3930 = vpow2.f32 %v819_v41 }
 0x4eb   : > { %v4840_v33 = vpop.eup %3926 }
 0x4ec   : > { %v4842_v37 = vpop.eup %3928  ;;  %1602 = vmatmul.f32.gmra.mxu1 %v4840_v33 }
 0x4ed   : > { %1829 = vmatmul.f32.gmra.mxu0 %v4842_v37  ;;  %v4869_v49 = vpop.eup %3930 }
 0x4ee   : > { %v842_v6 = vmul.f32 %v4869_v49, %v840_v53 }
 0x4f3   : > { %1525 = vadd.xlane.f32.xlu1 %v3925_v29 }
 0x4f4   : > { %3332 = vmatmul.msk.bf16.vlgmr.msrb.gmra.mxu1 %vm541_vm0, %v3507_v63  ;;  %v1083_v63 = vld [vmem:[#allocation4 + $0x28] sm:$0xff] }
 0x4f5   : > { %3403 = vmatmul.msk.bf16.vlgmr.msrb.gmra.mxu0 %vm541_vm0, %v3516_v26 }
 0x50b   : > { %v845_v19 = vpop.xlane.xlu1 %844  ;;  %v618_v23 = vpop.xlane.xlu0 %617 }
 0x50c   : > { %v848_v56 = vadd.f32 %v845_v19, %v842_v6  ;;  %v621_v60 = vadd.f32 %v618_v23, %v615_v14  ;;  %v4916_v23 = vpop.f32.mrf.mxu0 }
 0x50e   : > { %850 = vst.msk [vmem:[#allocation3 + $0x10] sm:$0xff] %vm424_vm1, %v848_v56 }
 0x50f   : > { %624 = vst.msk [vmem:[#allocation3] sm:$0xff] %vm424_vm1, %v621_v60 }
 0x513   : > { %v1072_v17 = vpop.xlane.xlu1 %1071  ;;  %v847_v8 = vpop.xlane.xlu0 %846 }
 0x514   : > { %v1075_v12 = vadd.f32 %v1072_v17, %v1069_v52  ;;  %v849_v3 = vadd.f32 %v847_v8, %v843_v15 }
 0x516   : > { %1077 = vst.msk [vmem:[#allocation3 + $0x20] sm:$0xff] %vm424_vm1, %v1075_v12 }
 0x517   : > { %851 = vst.msk [vmem:[#allocation3 + $0x18] sm:$0xff] %vm424_vm1, %v849_v3 }
 0x51b   : > { %v1299_v35 = vpop.xlane.xlu0 %1298 }
 0x51c   : > { %v1302_v22 = vadd.f32 %v1299_v35, %v1296_v1  ;;  %v4945_v1 = vld [vmem:[#allocation2 + $0x60] sm:$0xff]  ;;  %v4947_v35 = vld [vmem:[#allocation2 + $0x70] sm:$0xff] }
 0x51e   : > { %1304 = vst.msk [vmem:[#allocation3 + $0x30] sm:$0xff] %vm424_vm1, %v1302_v22 }
 0x52b   : > { %v633_v25 = vpop.permute.xlu1 %632 }
 0x52c   : > { %v640_v50 = vmul.f32 %v633_v25, %v628_v59  ;;  %v4965_v25 = vld [vmem:[#allocation2 + $0x68] sm:$0xff] }
 0x52e   : > { %v697_v58 = vadd.f32 %v4429_v61, %v640_v50  ;;  %v865_v57 = vpop.permute.xlu0 %864 }
 0x52f   : > { %v868_v30 = vmul.f32 %v865_v57, %v856_v27 }
 0x530   : > { %700 = vst.msk [vmem:[#allocation4] sm:$0xff] %vm457_vm2, %v697_v58 }
 0x531   : > { %v926_v10 = vadd.f32 %v4629_v44, %v868_v30  ;;  %v1309_v44 = vld [vmem:[#allocation4 + $0x30] sm:$0xff] }
 0x533   : > { %928 = vst.msk [vmem:[#allocation4 + $0x18] sm:$0xff] %vm457_vm2, %v926_v10  ;;  %v638_v0 = vpop.permute.xlu1 %637 }
 0x534   : > { %v641_v47 = vmul.f32 %v638_v0, %v629_v11  ;;  %v4976_v11 = vld [vmem:[#allocation2 + $0x78] sm:$0xff] }
 0x536   : > { %v698_v29 = vadd.f32 %v4433_v62, %v641_v47  ;;  %v1087_v24 = vpop.permute.xlu0 %1086 }
 0x537   : > { %v1094_v43 = vmul.f32 %v1087_v24, %v1082_v28 }
 0x538   : > { %701 = vst.msk [vmem:[#allocation4 + $0x8] sm:$0xff] %vm457_vm2, %v698_v29  ;;  %v855_v29 = vld [vmem:[#allocation4 + $0x10] sm:$0xff] }
 0x539   : > { %v1152_v61 = vadd.f32 %v4631_v46, %v1094_v43  ;;  %v1500_v46 = vmul.f32 1.442695, %v1498_v32 }
 0x53b   : > { %1154 = vst.msk [vmem:[#allocation4 + $0x20] sm:$0xff] %vm457_vm2, %v1152_v61  ;;  %v1092_v26 = vpop.permute.xlu1 %1091  ;;  %3932 = vpow2.f32 %v1500_v46  ;;  %v2325_v46 = vld [vmem:[#allocation2 + $0x18] sm:$0xff] }
 0x53c   : > { %v1095_v41 = vmul.f32 %v1092_v26, %v1083_v63  ;;  %v1310_v63 = vld [vmem:[#allocation4 + $0x38] sm:$0xff]  ;;  %vm2327_vm3 = vcmp.gt.f32.partialorder %v2325_v46, -5e+29  ;;  %v3833_v46 = vld [vmem:[%s5192_s2 + $0x188] sm:$0xff]  }
 0x53e   : > { %v1153_v53 = vadd.f32 %v4633_v51, %v1095_v41  ;;  %v1314_v54 = vpop.permute.xlu0 %1313  ;;  %v1521_v51 = vld [vmem:[#allocation3 + $0x40] sm:$0xff] }
 0x53f   : > { %v1321_v6 = vmul.f32 %v1314_v54, %v1309_v44  ;;  %v3847_v54 = vld [vmem:[%s5192_s2 + $0x1f8] sm:$0xff]  }
 0x540   : > { %1155 = vst.msk [vmem:[#allocation4 + $0x28] sm:$0xff] %vm457_vm2, %v1153_v53  ;;  %v2321_v53 = vld [vmem:[#allocation3 + $0x18] sm:$0xff] }
 0x541   : > { %v1379_v62 = vadd.f32 %v4615_v38, %v1321_v6  ;;  %v4914_v19 = vpop.eup %3932 }
 0x542   : > { %v1523_v56 = vmul.f32 %v4914_v19, %v1521_v51  ;;  %v2295_v51 = vld [vmem:[#allocation3 + $0x8] sm:$0xff] }
 0x543   : > { %1381 = vst.msk [vmem:[#allocation4 + $0x30] sm:$0xff] %vm457_vm2, %v1379_v62 }
 0x561   : > { %v4912_v14 = vpop.f32.mrf.mxu1 }
 0x566   : > { %v1526_v60 = vpop.xlane.xlu1 %1525 }
 0x567   : > { %v1529_v31 = vadd.f32 %v1526_v60, %v1523_v56 }
 0x569   : > { %1531 = vst.msk [vmem:[#allocation3 + $0x40] sm:$0xff] %vm424_vm1, %v1529_v31  ;;  %v4920_v38 = vpop.f32.mrf.mxu1 }
 0x56a   : > { %v4922_v13 = vpop.f32.mrf.mxu0 }
 0x571   : > { %v1938_v18 = vpop.f32.mrf.mxu1 }
 0x572   : > { %v4925_v21 = vadd.f32 %v4190_v45, %v1938_v18  ;;  %v2165_v32 = vpop.f32.mrf.mxu0  ;;  %v3837_v18 = vld [vmem:[%s5192_s2 + $0x1a8] sm:$0xff]  }
 0x573   : > { %v4928_v52 = vadd.f32 %v4190_v45, %v2165_v32  ;;  %v5196_v45 = vsub.f32 %v4446_v5, %v4449_v7  ;;  %v3845_v32 = vld [vmem:[%s5192_s2 + $0x1e8] sm:$0xff]  }
 0x574   : > { %1946 = vmax.xlane.f32.xlu1 %v4925_v21 }
 0x575   : > { %2173 = vmax.xlane.f32.xlu2 %v4928_v52  ;;  %v1275_v3 = vmul.f32 1.442695, %v5196_v45 }
 0x577   : > { %3934 = vpow2.f32 %v1275_v3  ;;  %v3744_v3 = vunpack.c.h.bf16 %v3837_v18 }
 0x578   : > { %3936 = vrcp.f32 %v2321_v53  ;;  %v3843_v53 = vld [vmem:[%s5192_s2 + $0x1d8] sm:$0xff]  }
 0x579   : > { %v1940_v15 = vpop.f32.mrf.mxu1  ;;  %3938 = vrcp.f32 %v2295_v51  ;;  %v3841_v51 = vld [vmem:[%s5192_s2 + $0x1c8] sm:$0xff]  }
 0x57a   : > { %v4933_v17 = vadd.f32 %v4196_v48, %v1940_v15  ;;  %v2167_v8 = vpop.f32.mrf.mxu0 }
 0x57b   : > { %v4938_v12 = vadd.f32 %v4196_v48, %v2167_v8 }
 0x57c   : > { %1948 = vmax.xlane.f32.xlu0 %v4933_v17 }
 0x57d   : > { %1300 = vadd.xlane.f32.xlu2 %v4571_v34  ;;  %v3935_v55 = vpop.eup %3934 }
 0x57e   : > { %v3937_v31 = vpop.eup %3936 }
 0x57f   : > { %v2329_v45 = vsel %vm2327_vm3, %v3937_v31, 0.0  ;;  %v3727_v31 = vunpack.c.l.bf16 %v3833_v46 }
 0x585   : > { %2175 = vmax.xlane.f32.xlu2 %v4938_v12 }
 0x59d   : > { %859 = vperm.xlu2 %3893, %v4869_v49   ;;  %v1295_v49 = vld [vmem:[#allocation3 + $0x38] sm:$0xff] }
 0x59e   : > { %v1297_v50 = vmul.f32 %v3935_v55, %v1295_v49  ;;  %v2299_v49 = vld [vmem:[#allocation2 + $0x8] sm:$0xff] }
 0x59f   : > { %vm2301_vm4 = vcmp.gt.f32.partialorder %v2299_v49, -5e+29 }
 0x5a5   : > { %1318 = vperm.xlu2 %3893, %v3935_v55   ;;  %v3776_v55 = vunpack.c.h.bf16 %v3845_v32 }
 0x5e7   : > { %v1947_v34 = vpop.xlane.xlu1 %1946 }
 0x5e8   : > { %v4950_v22 = vmax.f32 %v4945_v1, %v1947_v34  ;;  %v2174_v48 = vpop.xlane.xlu2 %2173  ;;  %v3743_v34 = vunpack.c.l.bf16 %v3837_v18  ;;  %v3759_v18 = vunpack.c.l.bf16 %v3841_v51 }
 0x5e9   : > { %v4953_v59 = vmax.f32 %v4947_v35, %v2174_v48  ;;  %v3775_v48 = vunpack.c.l.bf16 %v3845_v32 }
 0x5ea   : > { %v1952_v5 = vsub.f32 %v4945_v1, %v4950_v22  ;;  %1987 = vst.msk [vmem:[#allocation2 + $0x60] sm:$0xff] %vm424_vm1, %v4950_v22  ;;  %1960 = vperm.xlu0 %3892, %v4950_v22   ;;  %v1748_v22 = vld [vmem:[#allocation3 + $0x50] sm:$0xff] }
 0x5eb   : > { %v2179_v7 = vsub.f32 %v4947_v35, %v4953_v59  ;;  %2214 = vst.msk [vmem:[#allocation2 + $0x70] sm:$0xff] %vm424_vm1, %v4953_v59  ;;  %2187 = vperm.xlu1 %3891, %v4953_v59   ;;  %v3834_v35 = vld [vmem:[%s5192_s2 + $0x190] sm:$0xff]  }
 0x5ec   : > { %v3842_v59 = vld [vmem:[%s5192_s2 + $0x1d0] sm:$0xff]  }
 0x5ef   : > { %v1949_v27 = vpop.xlane.xlu0 %1948 }
 0x5f0   : > { %v1301_v58 = vpop.xlane.xlu2 %1300  ;;  %v4968_v57 = vmax.f32 %v4965_v25, %v1949_v27  ;;  %v3939_v27 = vpop.eup %3938 }
 0x5f1   : > { %v1303_v30 = vadd.f32 %v1301_v58, %v1297_v50  ;;  %v2521_v50 = vld [vmem:[#allocation3 + $0x40] sm:$0xff]  ;;  %v2303_v58 = vsel %vm2301_vm4, %v3939_v27, 0.0 }
 0x5f2   : > { %v1953_v10 = vsub.f32 %v4965_v25, %v4968_v57  ;;  %1988 = vst.msk [vmem:[#allocation2 + $0x68] sm:$0xff] %vm424_vm1, %v4968_v57  ;;  %1965 = vperm.xlu0 %3892, %v4968_v57   ;;  %3940 = vrcp.f32 %v2521_v50  ;;  %v2584_v57 = vld [vmem:[#allocation2 + $0x58] sm:$0xff] }
 0x5f3   : > { %1305 = vst.msk [vmem:[#allocation3 + $0x38] sm:$0xff] %vm424_vm1, %v1303_v30  ;;  %v3836_v30 = vld [vmem:[%s5192_s2 + $0x1a0] sm:$0xff]   ;;  %vm2586_vm14 = vcmp.gt.f32.partialorder %v2584_v57, -5e+29 }
 0x5f8   : > { %v2176_v0 = vpop.xlane.xlu2 %2175 }
 0x5f9   : > { %v4979_v47 = vmax.f32 %v4976_v11, %v2176_v0  ;;  %v3844_v0 = vld [vmem:[%s5192_s2 + $0x1e0] sm:$0xff]  }
 0x5fb   : > { %v2180_v28 = vsub.f32 %v4976_v11, %v4979_v47  ;;  %2215 = vst.msk [vmem:[#allocation2 + $0x78] sm:$0xff] %vm424_vm1, %v4979_v47  ;;  %2192 = vperm.xlu2 %3893, %v4979_v47   ;;  %v2468_v11 = vld [vmem:[#allocation2 + $0x38] sm:$0xff] }
 0x5fc   : > { %vm2470_vm12 = vcmp.gt.f32.partialorder %v2468_v11, -5e+29 }
 0x600   : > { %v860_v24 = vpop.permute.xlu2 %859 }
 0x601   : > { %v867_v43 = vmul.f32 %v860_v24, %v855_v29  ;;  %v3740_v29 = vunpack.c.h.bf16 %v3836_v30  ;;  %v3772_v24 = vunpack.c.h.bf16 %v3844_v0 }
 0x603   : > { %v925_v61 = vadd.f32 %v4627_v42, %v867_v43  ;;  %v3839_v42 = vld [vmem:[%s5192_s2 + $0x1b8] sm:$0xff]   ;;  %v2525_v43 = vld [vmem:[#allocation2 + $0x40] sm:$0xff] }
 0x604   : > { %v3752_v6 = vunpack.c.h.bf16 %v3839_v42  ;;  %v3751_v62 = vunpack.c.l.bf16 %v3839_v42  ;;  %vm2527_vm5 = vcmp.gt.f32.partialorder %v2525_v43, -5e+29 }
 0x605   : > { %927 = vst.msk [vmem:[#allocation4 + $0x10] sm:$0xff] %vm457_vm2, %v925_v61  ;;  %v3739_v61 = vunpack.c.l.bf16 %v3836_v30 }
 0x606   : > { %2037 = vmatpush.msrb.mxu3 %v3752_v6  ;;  %v3767_v6 = vunpack.c.l.bf16 %v3843_v53 }
 0x608   : > { %v1319_v26 = vpop.permute.xlu2 %1318  ;;  %2038 = vmatpush.msrb.mxu3 %v3751_v62  ;;  %v3764_v62 = vunpack.c.h.bf16 %v3842_v59 }
 0x609   : > { %v1322_v41 = vmul.f32 %v1319_v26, %v1310_v63  ;;  %v3771_v63 = vunpack.c.l.bf16 %v3844_v0  ;;  %v3941_v26 = vpop.eup %3940 }
 0x60b   : > { %v1380_v44 = vadd.f32 %v4617_v39, %v1322_v41  ;;  %v3838_v39 = vld [vmem:[%s5192_s2 + $0x1b0] sm:$0xff]   ;;  %v2181_v41 = vmul.f32 1.442695, %v2179_v7  ;;  %v3732_v7 = vunpack.c.h.bf16 %v3834_v35 }
 0x60c   : > { %v3748_v56 = vunpack.c.h.bf16 %v3838_v39  ;;  %v3747_v15 = vunpack.c.l.bf16 %v3838_v39  ;;  %v2330_v57 = vld [vmem:[#allocation4 + $0x10] sm:$0xff] }
 0x60d   : > { %1382 = vst.msk [vmem:[#allocation4 + $0x38] sm:$0xff] %vm457_vm2, %v1380_v44  ;;  %v3835_v44 = vld [vmem:[%s5192_s2 + $0x198] sm:$0xff]   ;;  %3942 = vpow2.f32 %v2181_v41 }
 0x60e   : > { %2039 = vmatpush.msrb.mxu3 %v3748_v56  ;;  %v3736_v42 = vunpack.c.h.bf16 %v3835_v44  ;;  %v3735_v39 = vunpack.c.l.bf16 %v3835_v44  ;;  %v3728_v56 = vunpack.c.h.bf16 %v3833_v46 }
 0x610   : > { %2040 = vmatpush.msrb.mxu3 %v3747_v15  ;;  %v3832_v15 = vld [vmem:[%s5192_s2 + $0x180] sm:$0xff]  }
 0x612   : > { %2041 = vmatpush.msrb.mxu3 %v3744_v3 }
 0x613   : > { %v5038_v32 = vpop.eup %3942 }
 0x614   : > { %2042 = vmatpush.msrb.mxu3 %v3743_v34 }
 0x615   : > { %1752 = vadd.xlane.f32.xlu1 %v4712_v40  ;;  %v3784_v40 = vunpack.c.h.bf16 %v3847_v54 }
 0x616   : > { %2043 = vmatpush.msrb.mxu3 %v3740_v29 }
 0x617   : > { %2264 = vmatpush.msrb.mxu2 %v3784_v40  ;;  %v2529_v40 = vsel %vm2527_vm5, %v3941_v26, 0.0 }
 0x618   : > { %2044 = vmatpush.msrb.mxu3 %v3739_v61 }
 0x61a   : > { %2045 = vmatpush.msrb.mxu3 %v3736_v42  ;;  %v2406_v42 = vld [vmem:[#allocation3 + $0x28] sm:$0xff] }
 0x61c   : > { %1527 = vadd.xlane.f32.xlu0 %v4840_v33  ;;  %v3783_v33 = vunpack.c.l.bf16 %v3847_v54  ;;  %v3768_v54 = vunpack.c.h.bf16 %v3843_v53  ;;  %2046 = vmatpush.msrb.mxu3 %v3735_v39  ;;  %v2410_v39 = vld [vmem:[#allocation2 + $0x28] sm:$0xff] }
 0x61d   : > { %vm2412_vm6 = vcmp.gt.f32.partialorder %v2410_v39, -5e+29 }
 0x61e   : > { %2265 = vmatpush.msrb.mxu2 %v3783_v33  ;;  %2047 = vmatpush.msrb.mxu3 %v3732_v7  ;;  %v3731_v33 = vunpack.c.l.bf16 %v3834_v35  ;;  %v5199_v7 = vsub.f32 %v4669_v16, %v4672_v20  ;;  %v1749_v20 = vld [vmem:[#allocation3 + $0x58] sm:$0xff] }
 0x620   : > { %2048 = vmatpush.msrb.mxu3 %v3731_v33  ;;  %v2294_v33 = vld [vmem:[#allocation3] sm:$0xff] }
 0x622   : > { %2049 = vmatpush.msrb.mxu3 %v3728_v56 }
 0x624   : > { %1754 = vadd.xlane.f32.xlu2 %v4842_v37  ;;  %v3846_v37 = vld [vmem:[%s5192_s2 + $0x1f0] sm:$0xff]   ;;  %2050 = vmatpush.msrb.mxu3 %v3727_v31  ;;  %v2298_v31 = vld [vmem:[#allocation2] sm:$0xff] }
 0x625   : > { %v3780_v60 = vunpack.c.h.bf16 %v3846_v37  ;;  %v3779_v8 = vunpack.c.l.bf16 %v3846_v37  ;;  %v3763_v37 = vunpack.c.l.bf16 %v3842_v59  ;;  %vm2300_vm8 = vcmp.gt.f32.partialorder %v2298_v31, -5e+29  ;;  %v3430_v31 = vld [vmem:[%s5194_s4 + $0x30] sm:$0xff] }
 0x627   : > { %2266 = vmatpush.msrb.mxu2 %v3780_v60  ;;  %v3760_v60 = vunpack.c.h.bf16 %v3841_v51 }
 0x629   : > { %2267 = vmatpush.msrb.mxu2 %v3779_v8  ;;  %v3840_v8 = vld [vmem:[%s5192_s2 + $0x1c0] sm:$0xff]  }
 0x62a   : > { %v3756_v3 = vunpack.c.h.bf16 %v3840_v8  ;;  %v3755_v34 = vunpack.c.l.bf16 %v3840_v8 }
 0x62b   : > { %2268 = vmatpush.msrb.mxu2 %v3776_v55  ;;  %v3723_v55 = vunpack.c.l.bf16 %v3832_v15 }
 0x62d   : > { %2269 = vmatpush.msrb.mxu2 %v3775_v48 }
 0x62e   : > { %2339 = vperm.xlu1 %3891, %v2329_v45   ;;  %v3724_v45 = vunpack.c.h.bf16 %v3832_v15 }
 0x62f   : > { %2270 = vmatpush.msrb.mxu2 %v3772_v24 }
 0x630   : > { %2051 = vmatpush.msrb.mxu3 %v3724_v45 }
 0x631   : > { %2271 = vmatpush.msrb.mxu2 %v3771_v63 }
 0x632   : > { %2052 = vmatpush.msrb.mxu3 %v3723_v55 }
 0x633   : > { %2272 = vmatpush.msrb.mxu2 %v3768_v54 }
 0x635   : > { %2273 = vmatpush.msrb.mxu2 %v3767_v6 }
 0x636   : > { %2313 = vperm.xlu1 %3891, %v2303_v58  }
 0x637   : > { %2274 = vmatpush.msrb.mxu2 %v3764_v62  ;;  %v1729_v62 = vmul.f32 1.442695, %v5199_v7 }
 0x639   : > { %2275 = vmatpush.msrb.mxu2 %v3763_v37 }
 0x63b   : > { %2276 = vmatpush.msrb.mxu2 %v3760_v60 }
 0x63d   : > { %2277 = vmatpush.msrb.mxu2 %v3759_v18  ;;  %v2463_v18 = vld [vmem:[#allocation3 + $0x30] sm:$0xff] }
 0x63e   : > { %2535 = vperm.xlu1 %3891, %v2529_v40  }
 0x63f   : > { %2278 = vmatpush.msrb.mxu2 %v3756_v3 }
 0x641   : > { %2279 = vmatpush.msrb.mxu2 %v3755_v34 }
 0x646   : > { %2221 = vperm.xlu1 %3891, %v5038_v32  }
 0x655   : > { %v2193_v48 = vpop.permute.xlu2 %2192 }
 0x656   : > { %v2196_v49 = vsub.f32 %v4938_v12, %v2193_v48  ;;  %v2467_v48 = vld [vmem:[#allocation2 + $0x30] sm:$0xff] }
 0x657   : > { %vm2469_vm9 = vcmp.gt.f32.partialorder %v2467_v48, -5e+29 }
 0x658   : > { %v2199_v50 = vmul.f32 1.442695, %v2196_v49  ;;  %v2405_v49 = vld [vmem:[#allocation3 + $0x20] sm:$0xff] }
 0x65a   : > { %3944 = vpow2.f32 %v2199_v50 }
 0x65c   : > { %v1961_v27 = vpop.permute.xlu0 %1960 }
 0x65d   : > { %v2188_v58 = vpop.permute.xlu1 %2187  ;;  %v1968_v30 = vsub.f32 %v4925_v21, %v1961_v27  ;;  %v5197_v21 = vsub.f32 %v4643_v9, %v4646_v36  ;;  %v5198_v9 = vsub.f32 %v4701_v4, %v4704_v2  ;;  %v1522_v2 = vld [vmem:[#allocation3 + $0x48] sm:$0xff] }
 0x65e   : > { %v2195_v0 = vsub.f32 %v4928_v52, %v2188_v58  ;;  %v2526_v27 = vld [vmem:[#allocation2 + $0x48] sm:$0xff]  ;;  %v2183_v58 = vmul.f32 1.442695, %v2180_v28  ;;  %v1956_v28 = vmul.f32 1.442695, %v1953_v10 }
 0x65f   : > { %v1970_v29 = vmul.f32 1.442695, %v1968_v30  ;;  %v1727_v52 = vmul.f32 1.442695, %v5197_v21  ;;  %v1502_v36 = vmul.f32 1.442695, %v5198_v9 }
 0x660   : > { %v3945_v24 = vpop.eup %3944  ;;  %v2197_v43 = vmul.f32 1.442695, %v2195_v0  ;;  %vm2528_vm10 = vcmp.gt.f32.partialorder %v2526_v27, -5e+29 }
 0x661   : > { %3946 = vpow2.f32 %v1970_v29  ;;  %2208 = vadd.xlane.f32.xlu0 %v3945_v24 }
 0x662   : > { %3948 = vpow2.f32 %v2197_v43  ;;  %v2464_v43 = vld [vmem:[#allocation3 + $0x38] sm:$0xff] }
 0x664   : > { %v1966_v61 = vpop.permute.xlu0 %1965 }
 0x665   : > { %v1969_v63 = vsub.f32 %v4933_v17, %v1966_v61  ;;  %v1954_v17 = vmul.f32 1.442695, %v1952_v5  ;;  %v2320_v5 = vld [vmem:[#allocation3 + $0x10] sm:$0xff] }
 0x667   : > { %v3947_v26 = vpop.eup %3946  ;;  %v1972_v41 = vmul.f32 1.442695, %v1969_v63 }
 0x668   : > { %v3949_v12 = vpop.eup %3948  ;;  %2053 = vmatmul.f32.vlgmr.msrb.gmra.mxu3 %v3947_v26 }
 0x669   : > { %3950 = vpow2.f32 %v1972_v41  ;;  %2280 = vmatmul.f32.vlgmr.msrb.gmra.mxu2 %v3949_v12  ;;  %2206 = vadd.xlane.f32.xlu2 %v3949_v12 }
 0x66a   : > { %3952 = vpow2.f32 %v1727_v52 }
 0x66b   : > { %3954 = vpow2.f32 %v1954_v17 }
 0x66c   : > { %3956 = vrcp.f32 %v2406_v42 }
 0x66d   : > { %3958 = vpow2.f32 %v1502_v36  ;;  %v2203_v36 = vld [vmem:[#allocation3 + $0x78] sm:$0xff] }
 0x66e   : > { %3960 = vrcp.f32 %v2320_v5 }
 0x66f   : > { %v3951_v44 = vpop.eup %3950  ;;  %3962 = vpow2.f32 %v1729_v62 }
 0x670   : > { %1979 = vadd.xlane.f32.xlu1 %v3947_v26  ;;  %2056 = vmatmul.f32.gmra.mxu3 %v3951_v44  ;;  %v3953_v53 = vpop.eup %3952  ;;  %3964 = vrcp.f32 %v2294_v33  ;;  %v3431_v33 = vld [vmem:[%s5194_s4 + $0x38] sm:$0xff] }
 0x671   : > { %2283 = vmatmul.f32.gmra.mxu2 %v3945_v24  ;;  %v5057_v54 = vpop.eup %3954  ;;  %v1750_v40 = vmul.f32 %v3953_v53, %v1748_v22  ;;  %3966 = vrcp.f32 %v2463_v18  ;;  %v2409_v24 = vld [vmem:[#allocation2 + $0x20] sm:$0xff]  ;;  %v3421_v22 = vld [vmem:[%s5194_s4 + $0x18] sm:$0xff] }
 0x672   : > { %v3957_v6 = vpop.eup %3956  ;;  %vm2411_vm11 = vcmp.gt.f32.partialorder %v2409_v24, -5e+29  ;;  %2367 = vmatpush.msra.mxu3 %v3421_v22  ;;  %2510 = vmatpush.msra.mxu2 %v3431_v33  ;;  %v3434_v22 = vld [vmem:[%s5194_s4 + $0x40] sm:$0xff] }
 0x673   : > { %v2414_v1 = vsel %vm2412_vm6, %v3957_v6, 0.0  ;;  %v3959_v35 = vpop.eup %3958 }
 0x674   : > { %v3961_v37 = vpop.eup %3960  ;;  %v1524_v46 = vmul.f32 %v3959_v35, %v1522_v2  ;;  %v1975_v2 = vld [vmem:[#allocation3 + $0x60] sm:$0xff]  ;;  %2511 = vmatpush.msra.mxu2 %v3430_v31 }
 0x675   : > { %1767 = vperm.xlu0 %3892, %v3953_v53   ;;  %v3963_v16 = vpop.eup %3962 }
 0x676   : > { %v3965_v15 = vpop.eup %3964  ;;  %v1751_v8 = vmul.f32 %v3963_v16, %v1749_v20  ;;  %v2318_v20 = vld [vmem:[%s5194_s4] sm:$0xff] }
 0x677   : > { %v2302_v55 = vsel %vm2300_vm8, %v3965_v15, 0.0  ;;  %v3967_v50 = vpop.eup %3966 }
 0x678   : > { %1981 = vadd.xlane.f32.xlu1 %v3951_v44  ;;  %v2471_v0 = vsel %vm2469_vm9, %v3967_v50, 0.0  ;;  %v2583_v44 = vld [vmem:[#allocation2 + $0x50] sm:$0xff] }
 0x679   : > { %vm2585_vm13 = vcmp.gt.f32.partialorder %v2583_v44, -5e+29  ;;  %v2699_v50 = vld [vmem:[#allocation2 + $0x70] sm:$0xff] }
 0x67a   : > { %vm2701_vm15 = vcmp.gt.f32.partialorder %v2699_v50, -5e+29 }
 0x67d   : > { %1994 = vperm.xlu0 %3892, %v5057_v54  }
 0x681   : > { %1540 = vperm.xlu2 %3893, %v4914_v19   ;;  %v2324_v19 = vld [vmem:[#allocation2 + $0x10] sm:$0xff] }
 0x682   : > { %vm2326_vm7 = vcmp.gt.f32.partialorder %v2324_v19, -5e+29  ;;  %v2319_v19 = vld [vmem:[%s5194_s4 + $0x8] sm:$0xff] }
 0x683   : > { %v2328_v60 = vsel %vm2326_vm7, %v3961_v37, 0.0  ;;  %v1977_v37 = vmul.f32 %v5057_v54, %v1975_v2  ;;  %v2473_v2 = vld [vmem:[#allocation4 + $0x30] sm:$0xff] }
 0x685   : > { %2424 = vperm.xlu0 %3892, %v2414_v1  }
 0x688   : > { %v1753_v59 = vpop.xlane.xlu1 %1752 }
 0x689   : > { %v1756_v4 = vadd.f32 %v1753_v59, %v1750_v40  ;;  %1545 = vperm.xlu2 %3893, %v3959_v35   ;;  %v3420_v40 = vld [vmem:[%s5194_s4 + $0x10] sm:$0xff] }
 0x68a   : > { %2368 = vmatpush.msra.mxu3 %v3420_v40  ;;  %v2202_v35 = vld [vmem:[#allocation3 + $0x70] sm:$0xff] }
 0x68b   : > { %1758 = vst.msk [vmem:[#allocation3 + $0x50] sm:$0xff] %vm424_vm1, %v1756_v4  ;;  %v2204_v7 = vmul.f32 %v5038_v32, %v2202_v35  ;;  %v2331_v35 = vld [vmem:[#allocation4 + $0x18] sm:$0xff] }
 0x68c   : > { %2396 = vmatpush.msrb.mxu3 %v2319_v19 }
 0x68e   : > { %2397 = vmatpush.msrb.mxu3 %v2318_v20 }
 0x68f   : > { %v1528_v51 = vpop.xlane.xlu0 %1527 }
 0x690   : > { %v1530_v56 = vadd.f32 %v1528_v51, %v1524_v46  ;;  %v1536_v46 = vld [vmem:[#allocation4 + $0x40] sm:$0xff] }
 0x691   : > { %2334 = vperm.xlu2 %3893, %v2328_v60  }
 0x692   : > { %1532 = vst.msk [vmem:[#allocation3 + $0x48] sm:$0xff] %vm424_vm1, %v1530_v56  ;;  %v2579_v21 = vld [vmem:[#allocation3 + $0x50] sm:$0xff] }
 0x697   : > { %v1755_v45 = vpop.xlane.xlu2 %1754 }
 0x698   : > { %v1757_v3 = vadd.f32 %v1755_v45, %v1751_v8  ;;  %v1976_v8 = vld [vmem:[#allocation3 + $0x68] sm:$0xff] }
 0x699   : > { %2308 = vperm.xlu2 %3893, %v2302_v55   ;;  %v2522_v34 = vld [vmem:[#allocation3 + $0x48] sm:$0xff] }
 0x69a   : > { %1759 = vst.msk [vmem:[#allocation3 + $0x58] sm:$0xff] %vm424_vm1, %v1757_v3  ;;  %3968 = vrcp.f32 %v2522_v34  ;;  %v3427_v45 = vld [vmem:[%s5194_s4 + $0x28] sm:$0xff]  ;;  %v2217_v3 = vld [vmem:[#allocation4 + $0x70] sm:$0xff] }
 0x69b   : > { %3970 = vrcp.f32 %v2405_v49  ;;  %2452 = vmatpush.msra.mxu1 %v3427_v45  ;;  %v1537_v49 = vld [vmem:[#allocation4 + $0x48] sm:$0xff] }
 0x69c   : > { %3972 = vpow2.f32 %v2183_v58 }
 0x69d   : > { %3974 = vrcp.f32 %v2464_v43 }
 0x69e   : > { %3976 = vpow2.f32 %v1956_v28 }
 0x69f   : > { %3978 = vrcp.f32 %v2579_v21  ;;  %v2641_v21 = vld [vmem:[#allocation2 + $0x60] sm:$0xff] }
 0x6a0   : > { %v3969_v30 = vpop.eup %3968  ;;  %v5079_v52 = vpop.permute.xlu1 %2339  ;;  %vm2643_vm0 = vcmp.gt.f32.partialorder %v2641_v21, -5e+29 }
 0x6a1   : > { %2477 = vperm.xlu2 %3893, %v2471_v0   ;;  %v2530_v29 = vsel %vm2528_vm10, %v3969_v30, 0.0  ;;  %v3971_v61 = vpop.eup %3970  ;;  %v2580_v17 = vld [vmem:[#allocation3 + $0x58] sm:$0xff] }
 0x6a2   : > { %2540 = vperm.xlu1 %3891, %v2530_v29   ;;  %v2413_v63 = vsel %vm2411_vm11, %v3971_v61, 0.0  ;;  %v3973_v26 = vpop.eup %3972  ;;  %3980 = vrcp.f32 %v2580_v17  ;;  %v2700_v17 = vld [vmem:[#allocation2 + $0x78] sm:$0xff] }
 0x6a3   : > { %v3975_v47 = vpop.eup %3974  ;;  %v2205_v6 = vmul.f32 %v3973_v26, %v2203_v36 }
 0x6a4   : > { %v2472_v41 = vsel %vm2470_vm12, %v3975_v47, 0.0  ;;  %v5076_v12 = vpop.eup %3976 }
 0x6a5   : > { %v3979_v53 = vpop.eup %3978  ;;  %v1978_v48 = vmul.f32 %v5076_v12, %v1976_v8 }
 0x6a6   : > { %v2587_v25 = vsel %vm2585_vm13, %v3979_v53, 0.0 }
 0x6a8   : > { %v5081_v42 = vpop.permute.xlu1 %2313  ;;  %v3981_v10 = vpop.eup %3980 }
 0x6a9   : > { %2419 = vperm.xlu2 %3893, %v2413_v63   ;;  %v2588_v9 = vsel %vm2586_vm14, %v3981_v10, 0.0  ;;  %v1990_v63 = vld [vmem:[#allocation4 + $0x60] sm:$0xff] }
 0x6aa   : > { %2226 = vperm.xlu1 %3891, %v3973_v26  }
 0x6b0   : > { %v5083_v39 = vpop.permute.xlu1 %2535 }
 0x6b1   : > { %2482 = vperm.xlu2 %3893, %v2472_v41  }
 0x6b8   : > { %v2222_v59 = vpop.permute.xlu1 %2221 }
 0x6b9   : > { %1999 = vperm.xlu2 %3893, %v5076_v12  }
 0x6c1   : > { %1772 = vperm.xlu2 %3893, %v3963_v16   ;;  %v1763_v16 = vld [vmem:[#allocation4 + $0x50] sm:$0xff] }
 0x6c9   : > { %2593 = vperm.xlu2 %3893, %v2587_v25  }
 0x6d1   : > { %2598 = vperm.xlu2 %3893, %v2588_v9  }
 0x6d4   : > { %v2209_v1 = vpop.xlane.xlu0 %2208 }
 0x6d5   : > { %v2211_v5 = vadd.f32 %v2209_v1, %v2205_v6  ;;  %v3435_v6 = vld [vmem:[%s5194_s4 + $0x48] sm:$0xff] }
 0x6d7   : > { %2213 = vst.msk [vmem:[#allocation3 + $0x78] sm:$0xff] %vm424_vm1, %v2211_v5  ;;  %v2642_v5 = vld [vmem:[#allocation2 + $0x68] sm:$0xff] }
 0x6d8   : > { %vm2644_vm3 = vcmp.gt.f32.partialorder %v2642_v5, -5e+29 }
 0x6dc   : > { %v2207_v62 = vpop.xlane.xlu2 %2206 }
 0x6dd   : > { %v2210_v4 = vadd.f32 %v2207_v62, %v2204_v7  ;;  %v2343_v7 = vmul.f32 %v5079_v52, %v2331_v35  ;;  %v2415_v52 = vld [vmem:[#allocation4 + $0x20] sm:$0xff] }
 0x6de   : > { %v2696_v27 = vld [vmem:[#allocation3 + $0x78] sm:$0xff] }
 0x6df   : > { %2212 = vst.msk [vmem:[#allocation3 + $0x70] sm:$0xff] %vm424_vm1, %v2210_v4  ;;  %v2304_v4 = vld [vmem:[#allocation4] sm:$0xff] }
 0x6e3   : > { %v1980_v51 = vpop.xlane.xlu1 %1979 }
 0x6e4   : > { %v1983_v32 = vadd.f32 %v1980_v51, %v1977_v37  ;;  %v1541_v56 = vpop.permute.xlu2 %1540  ;;  %v2305_v51 = vld [vmem:[#allocation4 + $0x8] sm:$0xff] }
 0x6e5   : > { %v1548_v60 = vmul.f32 %v1541_v56, %v1536_v46  ;;  %v3439_v46 = vld [vmem:[%s5194_s4 + $0x58] sm:$0xff]  ;;  %v2317_v56 = vmul.f32 %v5081_v42, %v2305_v51 }
 0x6e6   : > { %1985 = vst.msk [vmem:[#allocation3 + $0x60] sm:$0xff] %vm424_vm1, %v1983_v32  ;;  %v2695_v18 = vld [vmem:[#allocation3 + $0x70] sm:$0xff] }
 0x6e7   : > { %v1606_v54 = vadd.f32 %v4912_v14, %v1548_v60  ;;  %v1768_v15 = vpop.permute.xlu0 %1767  ;;  %3982 = vrcp.f32 %v2695_v18  ;;  %v2229_v14 = vmul.f32 %v2222_v59, %v2217_v3  ;;  %v2416_v18 = vld [vmem:[#allocation4 + $0x28] sm:$0xff] }
 0x6e8   : > { %v1775_v55 = vmul.f32 %v1768_v15, %v1763_v16  ;;  %3984 = vrcp.f32 %v2696_v27  ;;  %v3438_v16 = vld [vmem:[%s5194_s4 + $0x50] sm:$0xff] }
 0x6e9   : > { %1608 = vst.msk [vmem:[#allocation4 + $0x40] sm:$0xff] %vm457_vm2, %v1606_v54  ;;  %v2474_v54 = vld [vmem:[#allocation4 + $0x38] sm:$0xff] }
 0x6ea   : > { %v1833_v34 = vadd.f32 %v4916_v23, %v1775_v55  ;;  %v3426_v23 = vld [vmem:[%s5194_s4 + $0x20] sm:$0xff]  ;;  %v3443_v55 = vld [vmem:[%s5194_s4 + $0x68] sm:$0xff] }
 0x6eb   : > { %v1982_v58 = vpop.xlane.xlu1 %1981  ;;  %2453 = vmatpush.msra.mxu1 %v3426_v23  ;;  %v2054_v12 = vpop.f32.mrf.mxu3  ;;  %2684 = vmatpush.msrb.mxu2 %v3443_v55 }
 0x6ec   : > { %1835 = vst.msk [vmem:[#allocation4 + $0x50] sm:$0xff] %vm457_vm2, %v1833_v34  ;;  %v1984_v30 = vadd.f32 %v1982_v58, %v1978_v48  ;;  %v2281_v0 = vpop.f32.mrf.mxu2  ;;  %v1546_v29 = vpop.permute.xlu2 %1545  ;;  %v3447_v34 = vld [vmem:[%s5194_s4 + $0x78] sm:$0xff]  ;;  %v1991_v48 = vld [vmem:[#allocation4 + $0x68] sm:$0xff] }
 0x6ed   : > { %v3983_v24 = vpop.eup %3982  ;;  %v2287_v43 = vadd.f32 %v2281_v0, %v2229_v14  ;;  %v1549_v61 = vmul.f32 %v1546_v29, %v1537_v49  ;;  %v2637_v26 = vld [vmem:[#allocation3 + $0x60] sm:$0xff]  ;;  %2626 = vmatpush.msrb.mxu1 %v3439_v46  ;;  %v2218_v49 = vld [vmem:[#allocation4 + $0x78] sm:$0xff] }
 0x6ee   : > { %1986 = vst.msk [vmem:[#allocation3 + $0x68] sm:$0xff] %vm424_vm1, %v1984_v30  ;;  %v2703_v11 = vsel %vm2701_vm15, %v3983_v24, 0.0  ;;  %3986 = vrcp.f32 %v2637_v26  ;;  %v3985_v53 = vpop.eup %3984  ;;  %vm2702_vm1 = vcmp.gt.f32.partialorder %v2700_v17, -5e+29 }
 0x6ef   : > { %2289 = vst.msk [vmem:[#allocation4 + $0x70] sm:$0xff] %vm457_vm2, %v2287_v43  ;;  %v1607_v47 = vadd.f32 %v4920_v38, %v1549_v61  ;;  %v1995_v28 = vpop.permute.xlu0 %1994  ;;  %2709 = vperm.xlu1 %3891, %v2703_v11   ;;  %v2704_v1 = vsel %vm2702_vm1, %v3985_v53, 0.0  ;;  %2627 = vmatpush.msrb.mxu1 %v3438_v16  ;;  %v1764_v61 = vld [vmem:[#allocation4 + $0x58] sm:$0xff] }
 0x6f0   : > { %v2002_v41 = vmul.f32 %v1995_v28, %v1990_v63  ;;  %v2531_v31 = vld [vmem:[#allocation4 + $0x40] sm:$0xff] }
 0x6f1   : > { %1609 = vst.msk [vmem:[#allocation4 + $0x48] sm:$0xff] %vm457_vm2, %v1607_v47  ;;  %v2543_v42 = vmul.f32 %v5083_v39, %v2531_v31 }
 0x6f2   : > { %v2060_v44 = vadd.f32 %v2054_v12, %v2002_v41 }
 0x6f3   : > { %v2057_v30 = vpop.f32.mrf.mxu3  ;;  %v2589_v11 = vld [vmem:[#allocation4 + $0x50] sm:$0xff] }
 0x6f4   : > { %v3987_v25 = vpop.eup %3986  ;;  %2062 = vst.msk [vmem:[#allocation4 + $0x60] sm:$0xff] %vm457_vm2, %v2060_v44  ;;  %v2335_v10 = vpop.permute.xlu2 %2334  ;;  %v3442_v44 = vld [vmem:[%s5194_s4 + $0x60] sm:$0xff] }
 0x6f5   : > { %v2342_v9 = vmul.f32 %v2335_v10, %v2330_v57  ;;  %v2645_v36 = vsel %vm2643_vm0, %v3987_v25, 0.0  ;;  %v2638_v38 = vld [vmem:[#allocation3 + $0x68] sm:$0xff]  ;;  %v2284_v0 = vpop.f32.mrf.mxu2  ;;  %2685 = vmatpush.msrb.mxu2 %v3442_v44 }
 0x6f6   : > { %2651 = vperm.xlu0 %3892, %v2645_v36   ;;  %3988 = vrcp.f32 %v2638_v38  ;;  %v2705_v17 = vld [vmem:[#allocation4 + $0x70] sm:$0xff] }
 0x6f7   : > { %3422 = vmatmul.msk.f32.vlgmr.msra.gmra.mxu3 %vm457_vm2, %v2342_v9  ;;  %2714 = vperm.xlu1 %3891, %v2704_v1   ;;  %v2425_v20 = vpop.permute.xlu0 %2424 }
 0x6f8   : > { %2568 = vmatpush.msra.mxu3 %v3435_v6  ;;  %v2428_v45 = vmul.f32 %v2425_v20, %v2416_v18  ;;  %v2532_v27 = vld [vmem:[#allocation4 + $0x48] sm:$0xff] }
 0x6fa   : > { %2569 = vmatpush.msra.mxu3 %v3434_v22 }
 0x6fb   : > { %v2647_v57 = vld [vmem:[#allocation4 + $0x60] sm:$0xff] }
 0x6fc   : > { %v3989_v40 = vpop.eup %3988  ;;  %v2309_v59 = vpop.permute.xlu2 %2308 }
 0x6fd   : > { %v2646_v62 = vsel %vm2644_vm3, %v3989_v40, 0.0  ;;  %v2316_v33 = vmul.f32 %v2309_v59, %v2304_v4 }
 0x6fe   : > { %2656 = vperm.xlu0 %3892, %v2646_v62  }
 0x6ff   : > { %3423 = vmatmul.msk.f32.gmra.mxu3 %vm457_vm2, %v2343_v7 }
 0x704   : > { %v2478_v19 = vpop.permute.xlu2 %2477 }
 0x705   : > { %v2485_v37 = vmul.f32 %v2478_v19, %v2473_v2 }
 0x707   : > { %3424 = vmatmul.msk.f32.vlgmr.msrb.gmra.mxu3 %vm457_vm2, %v2316_v33  ;;  %3432 = vmatmul.msk.f32.vlgmr.msra.gmra.mxu2 %vm457_vm2, %v2485_v37 }
 0x708   : > { %2742 = vmatpush.msrb.mxu3 %v3447_v34 }
 0x70c   : > { %v2420_v32 = vpop.permute.xlu2 %2419 }
 0x70d   : > { %v2427_v60 = vmul.f32 %v2420_v32, %v2415_v52 }
 0x70f   : > { %3425 = vmatmul.msk.f32.gmra.mxu3 %vm457_vm2, %v2317_v56  ;;  %3428 = vmatmul.msk.f32.vlgmr.msra.gmra.mxu1 %vm457_vm2, %v2427_v60 }
 0x714   : > { %v2483_v15 = vpop.permute.xlu2 %2482  ;;  %v2541_v8 = vpop.permute.xlu1 %2540 }
 0x715   : > { %v2486_v3 = vmul.f32 %v2483_v15, %v2474_v54  ;;  %v2544_v29 = vmul.f32 %v2541_v8, %v2532_v27 }
 0x717   : > { %3429 = vmatmul.msk.f32.gmra.mxu1 %vm457_vm2, %v2428_v45  ;;  %3433 = vmatmul.msk.f32.gmra.mxu2 %vm457_vm2, %v2486_v3 }
 0x718   : > { %3436 = vmatmul.msk.f32.vlgmr.msra.gmra.mxu3 %vm457_vm2, %v2543_v42 }
 0x71c   : > { %v2000_v50 = vpop.permute.xlu2 %1999  ;;  %v2227_v39 = vpop.permute.xlu1 %2226 }
 0x71d   : > { %v2003_v14 = vmul.f32 %v2000_v50, %v1991_v48  ;;  %v2230_v58 = vmul.f32 %v2227_v39, %v2218_v49 }
 0x71f   : > { %v2061_v24 = vadd.f32 %v2057_v30, %v2003_v14  ;;  %v2288_v43 = vadd.f32 %v2284_v0, %v2230_v58 }
 0x720   : > { %3437 = vmatmul.msk.f32.gmra.mxu3 %vm457_vm2, %v2544_v29 }
 0x721   : > { %2063 = vst.msk [vmem:[#allocation4 + $0x68] sm:$0xff] %vm457_vm2, %v2061_v24 }
 0x722   : > { %2290 = vst.msk [vmem:[#allocation4 + $0x78] sm:$0xff] %vm457_vm2, %v2288_v43 }
 0x724   : > { %v1773_v63 = vpop.permute.xlu2 %1772 }
 0x725   : > { %v1776_v26 = vmul.f32 %v1773_v63, %v1764_v61 }
 0x727   : > { %v1834_v23 = vadd.f32 %v4922_v13, %v1776_v26  ;;  %v3446_v13 = vld [vmem:[%s5194_s4 + $0x70] sm:$0xff] }
 0x728   : > { %2743 = vmatpush.msrb.mxu3 %v3446_v13  ;;  %v2648_v1 = vld [vmem:[#allocation4 + $0x68] sm:$0xff] }
 0x729   : > { %1836 = vst.msk [vmem:[#allocation4 + $0x58] sm:$0xff] %vm457_vm2, %v1834_v23  ;;  %v2706_v36 = vld [vmem:[#allocation4 + $0x78] sm:$0xff] }
 0x72c   : > { %v2594_v47 = vpop.permute.xlu2 %2593 }
 0x72d   : > { %v2601_v28 = vmul.f32 %v2594_v47, %v2589_v11 }
 0x72f   : > { %3440 = vmatmul.msk.f32.vlgmr.msrb.gmra.mxu1 %vm457_vm2, %v2601_v28 }
 0x730   : > { %v2590_v41 = vld [vmem:[#allocation4 + $0x58] sm:$0xff] }
 0x734   : > { %v2599_v12 = vpop.permute.xlu2 %2598 }
 0x735   : > { %v2602_v21 = vmul.f32 %v2599_v12, %v2590_v41 }
 0x737   : > { %3441 = vmatmul.msk.f32.gmra.mxu1 %vm457_vm2, %v2602_v21 }
 0x761   : > { %v2710_v53 = vpop.permute.xlu1 %2709 }
 0x762   : > { %v2717_v25 = vmul.f32 %v2710_v53, %v2705_v17 }
 0x764   : > { %3448 = vmatmul.msk.f32.vlgmr.msrb.gmra.mxu3 %vm457_vm2, %v2717_v25 }
 0x768   : > { %v2652_v10 = vpop.permute.xlu0 %2651 }
 0x769   : > { %v2659_v9 = vmul.f32 %v2652_v10, %v2647_v57  ;;  %v2715_v38 = vpop.permute.xlu1 %2714 }
 0x76a   : > { %v2718_v6 = vmul.f32 %v2715_v38, %v2706_v36 }
 0x76b   : > { %3444 = vmatmul.msk.f32.vlgmr.msrb.gmra.mxu2 %vm457_vm2, %v2659_v9 }
 0x76c   : > { %3449 = vmatmul.msk.f32.gmra.mxu3 %vm457_vm2, %v2718_v6 }
 0x770   : > { %v2657_v22 = vpop.permute.xlu0 %2656 }
 0x771   : > { %v2660_v5 = vmul.f32 %v2657_v22, %v2648_v1 }
 0x773   : > { %3445 = vmatmul.msk.f32.gmra.mxu2 %vm457_vm2, %v2660_v5 }
 0x77a   : > { %v2370_v40 = vpop.f32.mrf.mxu3 }
 0x782   : > { %v2373_v35 = vpop.f32.mrf.mxu3 }
 0x78a   : > { %v2399_v59 = vpop.f32.mrf.mxu3  ;;  %v2513_v2 = vpop.f32.mrf.mxu2 }
 0x78b   : > { %v2400_v33 = vadd.f32 %v2399_v59, %v2370_v40 }
 0x78c   : > { %v2455_v62 = vpop.f32.mrf.mxu1 }
 0x78d   : > { %v2461_v37 = vadd.f32 %v2455_v62, %v2400_v33 }
 0x78f   : > { %v2519_v32 = vadd.f32 %v2513_v2, %v2461_v37 }
 0x792   : > { %v2402_v7 = vpop.f32.mrf.mxu3 }
 0x793   : > { %v2403_v56 = vadd.f32 %v2402_v7, %v2373_v35 }
 0x794   : > { %v2458_v19 = vpop.f32.mrf.mxu1 }
 0x795   : > { %v2462_v18 = vadd.f32 %v2458_v19, %v2403_v56 }
 0x79a   : > { %v2516_v46 = vpop.f32.mrf.mxu2 }
 0x79b   : > { %v2571_v4 = vpop.f32.mrf.mxu3  ;;  %v2520_v15 = vadd.f32 %v2516_v46, %v2462_v18 }
 0x79c   : > { %v2577_v60 = vadd.f32 %v2571_v4, %v2519_v32 }
 0x7a3   : > { %v2574_v51 = vpop.f32.mrf.mxu3 }
 0x7a4   : > { %v2578_v3 = vadd.f32 %v2574_v51, %v2520_v15 }
 0x7ac   : > { %v2629_v52 = vpop.f32.mrf.mxu1 }
 0x7ad   : > { %v2635_v16 = vadd.f32 %v2629_v52, %v2577_v60 }
 0x7b4   : > { %v2632_v45 = vpop.f32.mrf.mxu1 }
 0x7b5   : > { %v2636_v42 = vadd.f32 %v2632_v45, %v2578_v3 }
 0x7e7   : > { %v2745_v20 = vpop.f32.mrf.mxu3 }
 0x7ee   : > { %v2687_v31 = vpop.f32.mrf.mxu2 }
 0x7ef   : > { %v2693_v54 = vadd.f32 %v2687_v31, %v2635_v16  ;;  %v2748_v48 = vpop.f32.mrf.mxu3 }
 0x7f1   : > { %v2751_v8 = vadd.f32 %v2745_v20, %v2693_v54 }
 0x7f3   : > { %2753 = vst [vmem:[%s418_s14] sm:$0xff] %v2751_v8 }
 0x7f6   : > { %v2690_v55 = vpop.f32.mrf.mxu2 }
 0x7f7   : > { %v2694_v34 = vadd.f32 %v2690_v55, %v2636_v42 }
 0x7f9   : > { %v2752_v49 = vadd.f32 %v2748_v48, %v2694_v34 }
 0x7fb   : > { %2754 = vst [vmem:[%s418_s14 + $0x8] sm:$0xff] %v2752_v49 }
 0x7fc PF: > { %s15_s22 = sadd.s32 1, %s4028_s22   ;;  %s5200_s18 = smov %s4016_s19 }
 0x7fd   : > { %p12_p10 = scmp.ge.s32.totalorder %s15_s22, 4   ;;  %s5201_s19 = smov %s4098_s26 }
 0x7fe   : > { %s5202_s20 = smov %s4024_s21  ;;  %s5203_s21 = smov %s5205_s23 }
 0x7ff   :  { %14 = sbr.rel (!%p12_p10) target bundleno = 3 (0x3), region = 182 }

</bundles_post_ra>
